<compile_context>
chip_gen: v7x
topology: tpu7x:2x2x1
jax: 0.10.0
libtpu: 0.0.40
codegen_flags: <defaults>
</compile_context>

<pallas_src>
import jax
import jax.numpy as jnp
from jax.experimental import pallas as pl
from jax.experimental.pallas import tpu as pltpu


# ------------------ fused conv(5x5, SAME) + bias + ReLU + maxpool(2) kernel ------------------

def _make_conv_pool_kernel(H, W, Ci, Co, K=5, PAD=2):
    """Builds a kernel that processes one image per grid step."""
    Hp, Wp = H + 2 * PAD, W + 2 * PAD
    Ho, Wo = H // 2, W // 2

    def kernel(x_ref, w_ref, b_ref, o_ref, xpad_ref):
        # x_ref: [H, W, Ci] (one image)   w_ref: [K*K, Ci, Co]   b_ref: [1, Co]
        # o_ref: [Ho, Wo, Co]             xpad_ref: VMEM scratch [Hp, Wp, Ci]
        # SAME padding, done entirely in VMEM (never written to HBM).
        xpad_ref[...] = jnp.zeros((Hp, Wp, Ci), jnp.float32)
        xpad_ref[PAD:PAD + H, PAD:PAD + W, :] = x_ref[...]
        bias = b_ref[...]                                        # [1, Co]

        # Exact 0/1 selection matrices: row q picks column 2q (even) / 2q+1 (odd).
        # W-pooling compaction then becomes two tiny matmuls (no strided relayouts).
        qq = jax.lax.broadcasted_iota(jnp.int32, (Wo, W), 0)
        ww = jax.lax.broadcasted_iota(jnp.int32, (Wo, W), 1)
        s_even = (ww == 2 * qq).astype(jnp.float32)              # [Wo, W]
        s_odd = (ww == 2 * qq + 1).astype(jnp.float32)           # [Wo, W]

        def conv_row(r):
            """conv + bias + ReLU for output row r -> [W, Co]."""
            acc = jnp.zeros((W, Co), jnp.float32)
            for dh in range(K):
                for dw in range(K):
                    xwin = xpad_ref[r + dh, dw:dw + W, :]        # [W, Ci]
                    wt = w_ref[dh * K + dw]                      # [Ci, Co]
                    if Ci == 1:
                        acc = acc + xwin * wt                    # rank-1 update on the VPU
                    else:
                        acc = acc + jnp.dot(xwin, wt,
                                            preferred_element_type=jnp.float32)
            return jnp.maximum(acc + bias, 0.0)

        def row_pair(p, carry):
            # rows 2p and 2p+1: pool over H elementwise, then pool over W via selection.
            m = jnp.maximum(conv_row(2 * p), conv_row(2 * p + 1))          # [W, Co]
            o_ref[p] = jnp.maximum(
                jnp.dot(s_even, m, preferred_element_type=jnp.float32),
                jnp.dot(s_odd, m, preferred_element_type=jnp.float32))     # [Wo, Co]
            return carry

        jax.lax.fori_loop(0, Ho, row_pair, 0)

    return kernel


def conv_pool(x, w_packed, b_packed, *, H, Ci, Co):
    """x: [B*H, W, Ci] -> [B*(H//2), W//2, Co]; grid over images (parallel)."""
    BH, W, _ = x.shape
    B = BH // H
    Ho, Wo = H // 2, W // 2
    kernel = _make_conv_pool_kernel(H, W, Ci, Co)
    return pl.pallas_call(
        kernel,
        out_shape=jax.ShapeDtypeStruct((B * Ho, Wo, Co), jnp.float32),
        grid=(B,),
        in_specs=[
            pl.BlockSpec((H, W, Ci), lambda b: (b, 0, 0)),       # this image
            pl.BlockSpec((25, Ci, Co), lambda b: (0, 0, 0)),     # packed conv weight (resident)
            pl.BlockSpec((1, Co), lambda b: (0, 0)),             # bias
        ],
        out_specs=pl.BlockSpec((Ho, Wo, Co), lambda b: (b, 0, 0)),
        scratch_shapes=[pltpu.VMEM((H + 4, W + 4, Ci), jnp.float32)],
        compiler_params=pltpu.CompilerParams(dimension_semantics=("parallel",)),
    )(x, w_packed, b_packed)


# ------------------------- classifier: M-tiled matmul + bias -------------------------

def _linear_kernel(x_ref, w_ref, b_ref, o_ref):
    o_ref[...] = jnp.dot(x_ref[...], w_ref[...],
                         preferred_element_type=jnp.float32) + b_ref[...]


def linear(x, w, b, *, tm=256):
    """x:[M,K] @ w:[K,N] + b:[1,N].  M-tiled ('parallel'); N is already lane-dense (128)."""
    M, K = x.shape
    N = w.shape[1]
    TM = min(tm, M)
    return pl.pallas_call(
        _linear_kernel,
        out_shape=jax.ShapeDtypeStruct((M, N), jnp.float32),
        grid=(pl.cdiv(M, TM),),
        in_specs=[
            pl.BlockSpec((TM, K), lambda i: (i, 0)),
            pl.BlockSpec((K, N), lambda i: (0, 0)),
            pl.BlockSpec((1, N), lambda i: (0, 0)),
        ],
        out_specs=pl.BlockSpec((TM, N), lambda i: (i, 0)),
        compiler_params=pltpu.CompilerParams(dimension_semantics=("parallel",)),
    )(x, w, b)


# ------------------------- params & one-time weight packing -------------------------

N_PAD = 128  # lane-dense classifier width; logits live in [:, :10]


def init_params(key):
    k1, k2, k3, k4, k5, k6 = jax.random.split(key, 6)
    return {
        # same shapes as the PyTorch module's parameters
        "w1": 0.10 * jax.random.normal(k1, (16, 1, 5, 5), jnp.float32),
        "b1": 0.10 * jax.random.normal(k2, (16,), jnp.float32),
        "w2": 0.05 * jax.random.normal(k3, (32, 16, 5, 5), jnp.float32),
        "b2": 0.05 * jax.random.normal(k4, (32,), jnp.float32),
        "wl": 0.02 * jax.random.normal(k5, (10, 32 * 7 * 7), jnp.float32),
        "bl": 0.02 * jax.random.normal(k6, (10,), jnp.float32),
    }


def pack_params(params):
    """One-time repacking, hoisted out of the per-forward path."""
    def pack_conv(w):                       # [Co, Ci, kh, kw] -> [kh*kw, Ci, Co]
        Co, Ci, kh, kw = w.shape
        return jnp.transpose(w, (2, 3, 1, 0)).reshape(kh * kw, Ci, Co)

    # Classifier: permute columns from PyTorch's (C,H,W) flatten order to our (H,W,C)
    # layout (so no activation transpose is needed), then pad N: 10 -> 128 lanes.
    wl = params["wl"].reshape(10, 32, 7, 7)                        # [n, c, h, w]
    wl = jnp.transpose(wl, (2, 3, 1, 0)).reshape(7 * 7 * 32, 10)   # [(h,w,c), n]
    wl = jnp.pad(wl, ((0, 0), (0, N_PAD - 10)))
    bl = jnp.pad(params["bl"], (0, N_PAD - 10)).reshape(1, N_PAD)

    return {
        "w1": pack_conv(params["w1"]), "b1": params["b1"].reshape(1, 16),
        "w2": pack_conv(params["w2"]), "b2": params["b2"].reshape(1, 32),
        "wl": wl, "bl": bl,
    }


def cnn_forward(x_nchw, packed):
    """Matches CNN.forward: conv1->ReLU->pool, conv2->ReLU->pool, flatten, linear."""
    B = x_nchw.shape[0]
    # NCHW with C=1 -> [B*28, 28, 1] slab: a pure (contiguous) reshape, no copy.
    h = x_nchw.reshape(B * 28, 28, 1)
    h = conv_pool(h, packed["w1"], packed["b1"], H=28, Ci=1, Co=16)    # [B*14, 14, 16]
    h = conv_pool(h, packed["w2"], packed["b2"], H=14, Ci=16, Co=32)   # [B*7,  7,  32]
    flat = h.reshape(B, 7 * 7 * 32)                                    # contiguous flatten
    logits = linear(flat, packed["wl"], packed["bl"])                  # [B, 128]
    return logits[:, :10]


# ------------------------- pure-JAX reference -------------------------

def reference_forward(x_nchw, params):
    x = jnp.transpose(x_nchw, (0, 2, 3, 1))
    for w, b in ((params["w1"], params["b1"]), (params["w2"], params["b2"])):
        wh = jnp.transpose(w, (2, 3, 1, 0))                       # HWIO
        x = jax.lax.conv_general_dilated(
            x, wh, (1, 1), "SAME",
            dimension_numbers=("NHWC", "HWIO", "NHWC"),
            precision=jax.lax.Precision.HIGHEST)
        x = jnp.maximum(x + b, 0.0)
        x = jax.lax.reduce_window(x, -jnp.inf, jax.lax.max,
                                  (1, 2, 2, 1), (1, 2, 2, 1), "VALID")
    B = x.shape[0]
    flat = jnp.transpose(x, (0, 3, 1, 2)).reshape(B, -1)
    return jnp.dot(flat, params["wl"].T,
                   precision=jax.lax.Precision.HIGHEST) + params["bl"]


# ------------------------- main -------------------------

if __name__ == "__main__":
    key = jax.random.PRNGKey(0)
    kx, kp = jax.random.split(key)
    # Module implies 1x28x28 inputs (32*7*7 flatten after two 2x2 pools).
    x = jax.random.normal(kx, (2, 1, 28, 28), jnp.float32)
    params = init_params(kp)
    packed = pack_params(params)          # hoisted, one-time weight packing

    out = jax.block_until_ready(jax.jit(cnn_forward)(x, packed))
    assert out.shape == (2, 10), out.shape

    ref = jax.block_until_ready(reference_forward(x, params))
    err = float(jnp.max(jnp.abs(out - ref)))
    # kernels run the MXU at default (single-pass) precision; reference is HIGHEST
    assert jnp.allclose(out, ref, atol=5e-2, rtol=5e-2), err

    print("KERNEL_OK")
</pallas_src>

<mosaic_0001>
module attributes {stable_mosaic.version = 11 : i64} {
  func.func @kernel(%arg0: i32, %arg1: memref<28x28x1xf32, #tpu.memory_space<vmem>>, %arg2: memref<25x1x16xf32, #tpu.memory_space<vmem>>, %arg3: memref<1x16xf32, #tpu.memory_space<vmem>>, %arg4: memref<14x14x16xf32, #tpu.memory_space<vmem>>, %arg5: memref<32x32x1xf32, #tpu.memory_space<vmem>>) attributes {dimension_semantics = [#tpu.dimension_semantics<parallel>], iteration_bounds = array<i64: 2>, scalar_prefetch = 0 : i64, scratch_operands = 1 : i64, tpu.core_type = #tpu.core_type<tc>, window_params = [{transform_indices = @transform_0, window_bounds = array<i64: 28, 28, 1>}, {pipeline_mode = #tpu.pipeline_mode<synchronous>, transform_indices = @transform_1, window_bounds = array<i64: 25, 1, 16>}, {pipeline_mode = #tpu.pipeline_mode<synchronous>, transform_indices = @transform_2, window_bounds = array<i64: 1, 16>}, {transform_indices = @transform_3, window_bounds = array<i64: 14, 14, 16>}]} {
    %cst = arith.constant 0.000000e+00 : f32
    %0 = vector.broadcast %cst : f32 to vector<32x32x1xf32>
    %c0 = arith.constant 0 : index
    %c0_0 = arith.constant 0 : index
    %c0_1 = arith.constant 0 : index
    %1 = vector.load %arg5[%c0, %c0_0, %c0_1] : memref<32x32x1xf32, #tpu.memory_space<vmem>>, vector<32x32x1xf32>
    tpu.vector_store %arg5[%c0, %c0_0, %c0_1], %0 {strides = array<i32>} : memref<32x32x1xf32, #tpu.memory_space<vmem>>, vector<32x32x1xf32>,
    %c0_2 = arith.constant 0 : index
    %c0_3 = arith.constant 0 : index
    %c0_4 = arith.constant 0 : index
    %2 = vector.load %arg1[%c0_2, %c0_3, %c0_4] : memref<28x28x1xf32, #tpu.memory_space<vmem>>, vector<28x28x1xf32>
    %c2 = arith.constant 2 : index
    %c2_5 = arith.constant 2 : index
    %c0_6 = arith.constant 0 : index
    %3 = vector.load %arg5[%c2, %c2_5, %c0_6] : memref<32x32x1xf32, #tpu.memory_space<vmem>>, vector<28x28x1xf32>
    tpu.vector_store %arg5[%c2, %c2_5, %c0_6], %2 {strides = array<i32>} : memref<32x32x1xf32, #tpu.memory_space<vmem>>, vector<28x28x1xf32>,
    %c0_7 = arith.constant 0 : index
    %c0_8 = arith.constant 0 : index
    %4 = vector.load %arg3[%c0_7, %c0_8] : memref<1x16xf32, #tpu.memory_space<vmem>>, vector<1x16xf32>
    %5 = tpu.iota {dimensions = array<i32: 0>} : vector<14x28xi32>
    %6 = tpu.iota {dimensions = array<i32: 1>} : vector<14x28xi32>
    %c2_i32 = arith.constant 2 : i32
    %7 = vector.broadcast %c2_i32 : i32 to vector<14x28xi32>
    %8 = arith.muli %7, %5 : vector<14x28xi32>
    %9 = arith.cmpi eq, %6, %8 : vector<14x28xi32>
    %10 = arith.extui %9 : vector<14x28xi1> to vector<14x28xi32>
    %11 = arith.sitofp %10 : vector<14x28xi32> to vector<14x28xf32>
    %c2_i32_9 = arith.constant 2 : i32
    %12 = vector.broadcast %c2_i32_9 : i32 to vector<14x28xi32>
    %13 = arith.muli %12, %5 : vector<14x28xi32>
    %c1_i32 = arith.constant 1 : i32
    %14 = vector.broadcast %c1_i32 : i32 to vector<14x28xi32>
    %15 = arith.addi %13, %14 : vector<14x28xi32>
    %16 = arith.cmpi eq, %6, %15 : vector<14x28xi32>
    %17 = arith.extui %16 : vector<14x28xi1> to vector<14x28xi32>
    %18 = arith.sitofp %17 : vector<14x28xi32> to vector<14x28xf32>
    %c0_i32 = arith.constant 0 : i32
    %c14_i32 = arith.constant 14 : i32
    %19 = arith.addi %c0_i32, %c14_i32 : i32
    %c1_i32_10 = arith.constant 1 : i32
    scf.for %arg6 = %c0_i32 to %19 step %c1_i32_10  : i32 {
      %c2_i32_12 = arith.constant 2 : i32
      %20 = arith.muli %c2_i32_12, %arg6 : i32
      %cst_13 = arith.constant 0.000000e+00 : f32
      %21 = vector.broadcast %cst_13 : f32 to vector<28x16xf32>
      %c0_i32_14 = arith.constant 0 : i32
      %22 = arith.addi %20, %c0_i32_14 : i32
      %23 = arith.index_cast %22 : i32 to index
      %c0_15 = arith.constant 0 : index
      %c0_16 = arith.constant 0 : index
      %24 = vector.load %arg5[%23, %c0_15, %c0_16] : memref<32x32x1xf32, #tpu.memory_space<vmem>>, vector<1x28x1xf32>
      %25 = vector.shape_cast %24 : vector<1x28x1xf32> to vector<28x1xf32>
      %c0_17 = arith.constant 0 : index
      %c0_18 = arith.constant 0 : index
      %c0_19 = arith.constant 0 : index
      %26 = vector.load %arg2[%c0_17, %c0_18, %c0_19] : memref<25x1x16xf32, #tpu.memory_space<vmem>>, vector<1x1x16xf32>
      %27 = vector.shape_cast %26 : vector<1x1x16xf32> to vector<1x16xf32>
      %28 = vector.broadcast %25 : vector<28x1xf32> to vector<28x16xf32>
      %29 = vector.broadcast %27 : vector<1x16xf32> to vector<28x16xf32>
      %30 = arith.mulf %28, %29 : vector<28x16xf32>
      %31 = arith.addf %21, %30 : vector<28x16xf32>
      %c0_i32_20 = arith.constant 0 : i32
      %32 = arith.addi %20, %c0_i32_20 : i32
      %33 = arith.index_cast %32 : i32 to index
      %c1 = arith.constant 1 : index
      %c0_21 = arith.constant 0 : index
      %34 = vector.load %arg5[%33, %c1, %c0_21] : memref<32x32x1xf32, #tpu.memory_space<vmem>>, vector<1x28x1xf32>
      %35 = vector.shape_cast %34 : vector<1x28x1xf32> to vector<28x1xf32>
      %c1_22 = arith.constant 1 : index
      %c0_23 = arith.constant 0 : index
      %c0_24 = arith.constant 0 : index
      %36 = vector.load %arg2[%c1_22, %c0_23, %c0_24] : memref<25x1x16xf32, #tpu.memory_space<vmem>>, vector<1x1x16xf32>
      %37 = vector.shape_cast %36 : vector<1x1x16xf32> to vector<1x16xf32>
      %38 = vector.broadcast %35 : vector<28x1xf32> to vector<28x16xf32>
      %39 = vector.broadcast %37 : vector<1x16xf32> to vector<28x16xf32>
      %40 = arith.mulf %38, %39 : vector<28x16xf32>
      %41 = arith.addf %31, %40 : vector<28x16xf32>
      %c0_i32_25 = arith.constant 0 : i32
      %42 = arith.addi %20, %c0_i32_25 : i32
      %43 = arith.index_cast %42 : i32 to index
      %c2_26 = arith.constant 2 : index
      %c0_27 = arith.constant 0 : index
      %44 = vector.load %arg5[%43, %c2_26, %c0_27] : memref<32x32x1xf32, #tpu.memory_space<vmem>>, vector<1x28x1xf32>
      %45 = vector.shape_cast %44 : vector<1x28x1xf32> to vector<28x1xf32>
      %c2_28 = arith.constant 2 : index
      %c0_29 = arith.constant 0 : index
      %c0_30 = arith.constant 0 : index
      %46 = vector.load %arg2[%c2_28, %c0_29, %c0_30] : memref<25x1x16xf32, #tpu.memory_space<vmem>>, vector<1x1x16xf32>
      %47 = vector.shape_cast %46 : vector<1x1x16xf32> to vector<1x16xf32>
      %48 = vector.broadcast %45 : vector<28x1xf32> to vector<28x16xf32>
      %49 = vector.broadcast %47 : vector<1x16xf32> to vector<28x16xf32>
      %50 = arith.mulf %48, %49 : vector<28x16xf32>
      %51 = arith.addf %41, %50 : vector<28x16xf32>
      %c0_i32_31 = arith.constant 0 : i32
      %52 = arith.addi %20, %c0_i32_31 : i32
      %53 = arith.index_cast %52 : i32 to index
      %c3 = arith.constant 3 : index
      %c0_32 = arith.constant 0 : index
      %54 = vector.load %arg5[%53, %c3, %c0_32] : memref<32x32x1xf32, #tpu.memory_space<vmem>>, vector<1x28x1xf32>
      %55 = vector.shape_cast %54 : vector<1x28x1xf32> to vector<28x1xf32>
      %c3_33 = arith.constant 3 : index
      %c0_34 = arith.constant 0 : index
      %c0_35 = arith.constant 0 : index
      %56 = vector.load %arg2[%c3_33, %c0_34, %c0_35] : memref<25x1x16xf32, #tpu.memory_space<vmem>>, vector<1x1x16xf32>
      %57 = vector.shape_cast %56 : vector<1x1x16xf32> to vector<1x16xf32>
      %58 = vector.broadcast %55 : vector<28x1xf32> to vector<28x16xf32>
      %59 = vector.broadcast %57 : vector<1x16xf32> to vector<28x16xf32>
      %60 = arith.mulf %58, %59 : vector<28x16xf32>
      %61 = arith.addf %51, %60 : vector<28x16xf32>
      %c0_i32_36 = arith.constant 0 : i32
      %62 = arith.addi %20, %c0_i32_36 : i32
      %63 = arith.index_cast %62 : i32 to index
      %c4 = arith.constant 4 : index
      %c0_37 = arith.constant 0 : index
      %64 = vector.load %arg5[%63, %c4, %c0_37] : memref<32x32x1xf32, #tpu.memory_space<vmem>>, vector<1x28x1xf32>
      %65 = vector.shape_cast %64 : vector<1x28x1xf32> to vector<28x1xf32>
      %c4_38 = arith.constant 4 : index
      %c0_39 = arith.constant 0 : index
      %c0_40 = arith.constant 0 : index
      %66 = vector.load %arg2[%c4_38, %c0_39, %c0_40] : memref<25x1x16xf32, #tpu.memory_space<vmem>>, vector<1x1x16xf32>
      %67 = vector.shape_cast %66 : vector<1x1x16xf32> to vector<1x16xf32>
      %68 = vector.broadcast %65 : vector<28x1xf32> to vector<28x16xf32>
      %69 = vector.broadcast %67 : vector<1x16xf32> to vector<28x16xf32>
      %70 = arith.mulf %68, %69 : vector<28x16xf32>
      %71 = arith.addf %61, %70 : vector<28x16xf32>
      %c1_i32_41 = arith.constant 1 : i32
      %72 = arith.addi %20, %c1_i32_41 : i32
      %73 = arith.index_cast %72 : i32 to index
      %c0_42 = arith.constant 0 : index
      %c0_43 = arith.constant 0 : index
      %74 = vector.load %arg5[%73, %c0_42, %c0_43] : memref<32x32x1xf32, #tpu.memory_space<vmem>>, vector<1x28x1xf32>
      %75 = vector.shape_cast %74 : vector<1x28x1xf32> to vector<28x1xf32>
      %c5 = arith.constant 5 : index
      %c0_44 = arith.constant 0 : index
      %c0_45 = arith.constant 0 : index
      %76 = vector.load %arg2[%c5, %c0_44, %c0_45] : memref<25x1x16xf32, #tpu.memory_space<vmem>>, vector<1x1x16xf32>
      %77 = vector.shape_cast %76 : vector<1x1x16xf32> to vector<1x16xf32>
      %78 = vector.broadcast %75 : vector<28x1xf32> to vector<28x16xf32>
      %79 = vector.broadcast %77 : vector<1x16xf32> to vector<28x16xf32>
      %80 = arith.mulf %78, %79 : vector<28x16xf32>
      %81 = arith.addf %71, %80 : vector<28x16xf32>
      %c1_i32_46 = arith.constant 1 : i32
      %82 = arith.addi %20, %c1_i32_46 : i32
      %83 = arith.index_cast %82 : i32 to index
      %c1_47 = arith.constant 1 : index
      %c0_48 = arith.constant 0 : index
      %84 = vector.load %arg5[%83, %c1_47, %c0_48] : memref<32x32x1xf32, #tpu.memory_space<vmem>>, vector<1x28x1xf32>
      %85 = vector.shape_cast %84 : vector<1x28x1xf32> to vector<28x1xf32>
      %c6 = arith.constant 6 : index
      %c0_49 = arith.constant 0 : index
      %c0_50 = arith.constant 0 : index
      %86 = vector.load %arg2[%c6, %c0_49, %c0_50] : memref<25x1x16xf32, #tpu.memory_space<vmem>>, vector<1x1x16xf32>
      %87 = vector.shape_cast %86 : vector<1x1x16xf32> to vector<1x16xf32>
      %88 = vector.broadcast %85 : vector<28x1xf32> to vector<28x16xf32>
      %89 = vector.broadcast %87 : vector<1x16xf32> to vector<28x16xf32>
      %90 = arith.mulf %88, %89 : vector<28x16xf32>
      %91 = arith.addf %81, %90 : vector<28x16xf32>
      %c1_i32_51 = arith.constant 1 : i32
      %92 = arith.addi %20, %c1_i32_51 : i32
      %93 = arith.index_cast %92 : i32 to index
      %c2_52 = arith.constant 2 : index
      %c0_53 = arith.constant 0 : index
      %94 = vector.load %arg5[%93, %c2_52, %c0_53] : memref<32x32x1xf32, #tpu.memory_space<vmem>>, vector<1x28x1xf32>
      %95 = vector.shape_cast %94 : vector<1x28x1xf32> to vector<28x1xf32>
      %c7 = arith.constant 7 : index
      %c0_54 = arith.constant 0 : index
      %c0_55 = arith.constant 0 : index
      %96 = vector.load %arg2[%c7, %c0_54, %c0_55] : memref<25x1x16xf32, #tpu.memory_space<vmem>>, vector<1x1x16xf32>
      %97 = vector.shape_cast %96 : vector<1x1x16xf32> to vector<1x16xf32>
      %98 = vector.broadcast %95 : vector<28x1xf32> to vector<28x16xf32>
      %99 = vector.broadcast %97 : vector<1x16xf32> to vector<28x16xf32>
      %100 = arith.mulf %98, %99 : vector<28x16xf32>
      %101 = arith.addf %91, %100 : vector<28x16xf32>
      %c1_i32_56 = arith.constant 1 : i32
      %102 = arith.addi %20, %c1_i32_56 : i32
      %103 = arith.index_cast %102 : i32 to index
      %c3_57 = arith.constant 3 : index
      %c0_58 = arith.constant 0 : index
      %104 = vector.load %arg5[%103, %c3_57, %c0_58] : memref<32x32x1xf32, #tpu.memory_space<vmem>>, vector<1x28x1xf32>
      %105 = vector.shape_cast %104 : vector<1x28x1xf32> to vector<28x1xf32>
      %c8 = arith.constant 8 : index
      %c0_59 = arith.constant 0 : index
      %c0_60 = arith.constant 0 : index
      %106 = vector.load %arg2[%c8, %c0_59, %c0_60] : memref<25x1x16xf32, #tpu.memory_space<vmem>>, vector<1x1x16xf32>
      %107 = vector.shape_cast %106 : vector<1x1x16xf32> to vector<1x16xf32>
      %108 = vector.broadcast %105 : vector<28x1xf32> to vector<28x16xf32>
      %109 = vector.broadcast %107 : vector<1x16xf32> to vector<28x16xf32>
      %110 = arith.mulf %108, %109 : vector<28x16xf32>
      %111 = arith.addf %101, %110 : vector<28x16xf32>
      %c1_i32_61 = arith.constant 1 : i32
      %112 = arith.addi %20, %c1_i32_61 : i32
      %113 = arith.index_cast %112 : i32 to index
      %c4_62 = arith.constant 4 : index
      %c0_63 = arith.constant 0 : index
      %114 = vector.load %arg5[%113, %c4_62, %c0_63] : memref<32x32x1xf32, #tpu.memory_space<vmem>>, vector<1x28x1xf32>
      %115 = vector.shape_cast %114 : vector<1x28x1xf32> to vector<28x1xf32>
      %c9 = arith.constant 9 : index
      %c0_64 = arith.constant 0 : index
      %c0_65 = arith.constant 0 : index
      %116 = vector.load %arg2[%c9, %c0_64, %c0_65] : memref<25x1x16xf32, #tpu.memory_space<vmem>>, vector<1x1x16xf32>
      %117 = vector.shape_cast %116 : vector<1x1x16xf32> to vector<1x16xf32>
      %118 = vector.broadcast %115 : vector<28x1xf32> to vector<28x16xf32>
      %119 = vector.broadcast %117 : vector<1x16xf32> to vector<28x16xf32>
      %120 = arith.mulf %118, %119 : vector<28x16xf32>
      %121 = arith.addf %111, %120 : vector<28x16xf32>
      %c2_i32_66 = arith.constant 2 : i32
      %122 = arith.addi %20, %c2_i32_66 : i32
      %123 = arith.index_cast %122 : i32 to index
      %c0_67 = arith.constant 0 : index
      %c0_68 = arith.constant 0 : index
      %124 = vector.load %arg5[%123, %c0_67, %c0_68] : memref<32x32x1xf32, #tpu.memory_space<vmem>>, vector<1x28x1xf32>
      %125 = vector.shape_cast %124 : vector<1x28x1xf32> to vector<28x1xf32>
      %c10 = arith.constant 10 : index
      %c0_69 = arith.constant 0 : index
      %c0_70 = arith.constant 0 : index
      %126 = vector.load %arg2[%c10, %c0_69, %c0_70] : memref<25x1x16xf32, #tpu.memory_space<vmem>>, vector<1x1x16xf32>
      %127 = vector.shape_cast %126 : vector<1x1x16xf32> to vector<1x16xf32>
      %128 = vector.broadcast %125 : vector<28x1xf32> to vector<28x16xf32>
      %129 = vector.broadcast %127 : vector<1x16xf32> to vector<28x16xf32>
      %130 = arith.mulf %128, %129 : vector<28x16xf32>
      %131 = arith.addf %121, %130 : vector<28x16xf32>
      %c2_i32_71 = arith.constant 2 : i32
      %132 = arith.addi %20, %c2_i32_71 : i32
      %133 = arith.index_cast %132 : i32 to index
      %c1_72 = arith.constant 1 : index
      %c0_73 = arith.constant 0 : index
      %134 = vector.load %arg5[%133, %c1_72, %c0_73] : memref<32x32x1xf32, #tpu.memory_space<vmem>>, vector<1x28x1xf32>
      %135 = vector.shape_cast %134 : vector<1x28x1xf32> to vector<28x1xf32>
      %c11 = arith.constant 11 : index
      %c0_74 = arith.constant 0 : index
      %c0_75 = arith.constant 0 : index
      %136 = vector.load %arg2[%c11, %c0_74, %c0_75] : memref<25x1x16xf32, #tpu.memory_space<vmem>>, vector<1x1x16xf32>
      %137 = vector.shape_cast %136 : vector<1x1x16xf32> to vector<1x16xf32>
      %138 = vector.broadcast %135 : vector<28x1xf32> to vector<28x16xf32>
      %139 = vector.broadcast %137 : vector<1x16xf32> to vector<28x16xf32>
      %140 = arith.mulf %138, %139 : vector<28x16xf32>
      %141 = arith.addf %131, %140 : vector<28x16xf32>
      %c2_i32_76 = arith.constant 2 : i32
      %142 = arith.addi %20, %c2_i32_76 : i32
      %143 = arith.index_cast %142 : i32 to index
      %c2_77 = arith.constant 2 : index
      %c0_78 = arith.constant 0 : index
      %144 = vector.load %arg5[%143, %c2_77, %c0_78] : memref<32x32x1xf32, #tpu.memory_space<vmem>>, vector<1x28x1xf32>
      %145 = vector.shape_cast %144 : vector<1x28x1xf32> to vector<28x1xf32>
      %c12 = arith.constant 12 : index
      %c0_79 = arith.constant 0 : index
      %c0_80 = arith.constant 0 : index
      %146 = vector.load %arg2[%c12, %c0_79, %c0_80] : memref<25x1x16xf32, #tpu.memory_space<vmem>>, vector<1x1x16xf32>
      %147 = vector.shape_cast %146 : vector<1x1x16xf32> to vector<1x16xf32>
      %148 = vector.broadcast %145 : vector<28x1xf32> to vector<28x16xf32>
      %149 = vector.broadcast %147 : vector<1x16xf32> to vector<28x16xf32>
      %150 = arith.mulf %148, %149 : vector<28x16xf32>
      %151 = arith.addf %141, %150 : vector<28x16xf32>
      %c2_i32_81 = arith.constant 2 : i32
      %152 = arith.addi %20, %c2_i32_81 : i32
      %153 = arith.index_cast %152 : i32 to index
      %c3_82 = arith.constant 3 : index
      %c0_83 = arith.constant 0 : index
      %154 = vector.load %arg5[%153, %c3_82, %c0_83] : memref<32x32x1xf32, #tpu.memory_space<vmem>>, vector<1x28x1xf32>
      %155 = vector.shape_cast %154 : vector<1x28x1xf32> to vector<28x1xf32>
      %c13 = arith.constant 13 : index
      %c0_84 = arith.constant 0 : index
      %c0_85 = arith.constant 0 : index
      %156 = vector.load %arg2[%c13, %c0_84, %c0_85] : memref<25x1x16xf32, #tpu.memory_space<vmem>>, vector<1x1x16xf32>
      %157 = vector.shape_cast %156 : vector<1x1x16xf32> to vector<1x16xf32>
      %158 = vector.broadcast %155 : vector<28x1xf32> to vector<28x16xf32>
      %159 = vector.broadcast %157 : vector<1x16xf32> to vector<28x16xf32>
      %160 = arith.mulf %158, %159 : vector<28x16xf32>
      %161 = arith.addf %151, %160 : vector<28x16xf32>
      %c2_i32_86 = arith.constant 2 : i32
      %162 = arith.addi %20, %c2_i32_86 : i32
      %163 = arith.index_cast %162 : i32 to index
      %c4_87 = arith.constant 4 : index
      %c0_88 = arith.constant 0 : index
      %164 = vector.load %arg5[%163, %c4_87, %c0_88] : memref<32x32x1xf32, #tpu.memory_space<vmem>>, vector<1x28x1xf32>
      %165 = vector.shape_cast %164 : vector<1x28x1xf32> to vector<28x1xf32>
      %c14 = arith.constant 14 : index
      %c0_89 = arith.constant 0 : index
      %c0_90 = arith.constant 0 : index
      %166 = vector.load %arg2[%c14, %c0_89, %c0_90] : memref<25x1x16xf32, #tpu.memory_space<vmem>>, vector<1x1x16xf32>
      %167 = vector.shape_cast %166 : vector<1x1x16xf32> to vector<1x16xf32>
      %168 = vector.broadcast %165 : vector<28x1xf32> to vector<28x16xf32>
      %169 = vector.broadcast %167 : vector<1x16xf32> to vector<28x16xf32>
      %170 = arith.mulf %168, %169 : vector<28x16xf32>
      %171 = arith.addf %161, %170 : vector<28x16xf32>
      %c3_i32 = arith.constant 3 : i32
      %172 = arith.addi %20, %c3_i32 : i32
      %173 = arith.index_cast %172 : i32 to index
      %c0_91 = arith.constant 0 : index
      %c0_92 = arith.constant 0 : index
      %174 = vector.load %arg5[%173, %c0_91, %c0_92] : memref<32x32x1xf32, #tpu.memory_space<vmem>>, vector<1x28x1xf32>
      %175 = vector.shape_cast %174 : vector<1x28x1xf32> to vector<28x1xf32>
      %c15 = arith.constant 15 : index
      %c0_93 = arith.constant 0 : index
      %c0_94 = arith.constant 0 : index
      %176 = vector.load %arg2[%c15, %c0_93, %c0_94] : memref<25x1x16xf32, #tpu.memory_space<vmem>>, vector<1x1x16xf32>
      %177 = vector.shape_cast %176 : vector<1x1x16xf32> to vector<1x16xf32>
      %178 = vector.broadcast %175 : vector<28x1xf32> to vector<28x16xf32>
      %179 = vector.broadcast %177 : vector<1x16xf32> to vector<28x16xf32>
      %180 = arith.mulf %178, %179 : vector<28x16xf32>
      %181 = arith.addf %171, %180 : vector<28x16xf32>
      %c3_i32_95 = arith.constant 3 : i32
      %182 = arith.addi %20, %c3_i32_95 : i32
      %183 = arith.index_cast %182 : i32 to index
      %c1_96 = arith.constant 1 : index
      %c0_97 = arith.constant 0 : index
      %184 = vector.load %arg5[%183, %c1_96, %c0_97] : memref<32x32x1xf32, #tpu.memory_space<vmem>>, vector<1x28x1xf32>
      %185 = vector.shape_cast %184 : vector<1x28x1xf32> to vector<28x1xf32>
      %c16 = arith.constant 16 : index
      %c0_98 = arith.constant 0 : index
      %c0_99 = arith.constant 0 : index
      %186 = vector.load %arg2[%c16, %c0_98, %c0_99] : memref<25x1x16xf32, #tpu.memory_space<vmem>>, vector<1x1x16xf32>
      %187 = vector.shape_cast %186 : vector<1x1x16xf32> to vector<1x16xf32>
      %188 = vector.broadcast %185 : vector<28x1xf32> to vector<28x16xf32>
      %189 = vector.broadcast %187 : vector<1x16xf32> to vector<28x16xf32>
      %190 = arith.mulf %188, %189 : vector<28x16xf32>
      %191 = arith.addf %181, %190 : vector<28x16xf32>
      %c3_i32_100 = arith.constant 3 : i32
      %192 = arith.addi %20, %c3_i32_100 : i32
      %193 = arith.index_cast %192 : i32 to index
      %c2_101 = arith.constant 2 : index
      %c0_102 = arith.constant 0 : index
      %194 = vector.load %arg5[%193, %c2_101, %c0_102] : memref<32x32x1xf32, #tpu.memory_space<vmem>>, vector<1x28x1xf32>
      %195 = vector.shape_cast %194 : vector<1x28x1xf32> to vector<28x1xf32>
      %c17 = arith.constant 17 : index
      %c0_103 = arith.constant 0 : index
      %c0_104 = arith.constant 0 : index
      %196 = vector.load %arg2[%c17, %c0_103, %c0_104] : memref<25x1x16xf32, #tpu.memory_space<vmem>>, vector<1x1x16xf32>
      %197 = vector.shape_cast %196 : vector<1x1x16xf32> to vector<1x16xf32>
      %198 = vector.broadcast %195 : vector<28x1xf32> to vector<28x16xf32>
      %199 = vector.broadcast %197 : vector<1x16xf32> to vector<28x16xf32>
      %200 = arith.mulf %198, %199 : vector<28x16xf32>
      %201 = arith.addf %191, %200 : vector<28x16xf32>
      %c3_i32_105 = arith.constant 3 : i32
      %202 = arith.addi %20, %c3_i32_105 : i32
      %203 = arith.index_cast %202 : i32 to index
      %c3_106 = arith.constant 3 : index
      %c0_107 = arith.constant 0 : index
      %204 = vector.load %arg5[%203, %c3_106, %c0_107] : memref<32x32x1xf32, #tpu.memory_space<vmem>>, vector<1x28x1xf32>
      %205 = vector.shape_cast %204 : vector<1x28x1xf32> to vector<28x1xf32>
      %c18 = arith.constant 18 : index
      %c0_108 = arith.constant 0 : index
      %c0_109 = arith.constant 0 : index
      %206 = vector.load %arg2[%c18, %c0_108, %c0_109] : memref<25x1x16xf32, #tpu.memory_space<vmem>>, vector<1x1x16xf32>
      %207 = vector.shape_cast %206 : vector<1x1x16xf32> to vector<1x16xf32>
      %208 = vector.broadcast %205 : vector<28x1xf32> to vector<28x16xf32>
      %209 = vector.broadcast %207 : vector<1x16xf32> to vector<28x16xf32>
      %210 = arith.mulf %208, %209 : vector<28x16xf32>
      %211 = arith.addf %201, %210 : vector<28x16xf32>
      %c3_i32_110 = arith.constant 3 : i32
      %212 = arith.addi %20, %c3_i32_110 : i32
      %213 = arith.index_cast %212 : i32 to index
      %c4_111 = arith.constant 4 : index
      %c0_112 = arith.constant 0 : index
      %214 = vector.load %arg5[%213, %c4_111, %c0_112] : memref<32x32x1xf32, #tpu.memory_space<vmem>>, vector<1x28x1xf32>
      %215 = vector.shape_cast %214 : vector<1x28x1xf32> to vector<28x1xf32>
      %c19 = arith.constant 19 : index
      %c0_113 = arith.constant 0 : index
      %c0_114 = arith.constant 0 : index
      %216 = vector.load %arg2[%c19, %c0_113, %c0_114] : memref<25x1x16xf32, #tpu.memory_space<vmem>>, vector<1x1x16xf32>
      %217 = vector.shape_cast %216 : vector<1x1x16xf32> to vector<1x16xf32>
      %218 = vector.broadcast %215 : vector<28x1xf32> to vector<28x16xf32>
      %219 = vector.broadcast %217 : vector<1x16xf32> to vector<28x16xf32>
      %220 = arith.mulf %218, %219 : vector<28x16xf32>
      %221 = arith.addf %211, %220 : vector<28x16xf32>
      %c4_i32 = arith.constant 4 : i32
      %222 = arith.addi %20, %c4_i32 : i32
      %223 = arith.index_cast %222 : i32 to index
      %c0_115 = arith.constant 0 : index
      %c0_116 = arith.constant 0 : index
      %224 = vector.load %arg5[%223, %c0_115, %c0_116] : memref<32x32x1xf32, #tpu.memory_space<vmem>>, vector<1x28x1xf32>
      %225 = vector.shape_cast %224 : vector<1x28x1xf32> to vector<28x1xf32>
      %c20 = arith.constant 20 : index
      %c0_117 = arith.constant 0 : index
      %c0_118 = arith.constant 0 : index
      %226 = vector.load %arg2[%c20, %c0_117, %c0_118] : memref<25x1x16xf32, #tpu.memory_space<vmem>>, vector<1x1x16xf32>
      %227 = vector.shape_cast %226 : vector<1x1x16xf32> to vector<1x16xf32>
      %228 = vector.broadcast %225 : vector<28x1xf32> to vector<28x16xf32>
      %229 = vector.broadcast %227 : vector<1x16xf32> to vector<28x16xf32>
      %230 = arith.mulf %228, %229 : vector<28x16xf32>
      %231 = arith.addf %221, %230 : vector<28x16xf32>
      %c4_i32_119 = arith.constant 4 : i32
      %232 = arith.addi %20, %c4_i32_119 : i32
      %233 = arith.index_cast %232 : i32 to index
      %c1_120 = arith.constant 1 : index
      %c0_121 = arith.constant 0 : index
      %234 = vector.load %arg5[%233, %c1_120, %c0_121] : memref<32x32x1xf32, #tpu.memory_space<vmem>>, vector<1x28x1xf32>
      %235 = vector.shape_cast %234 : vector<1x28x1xf32> to vector<28x1xf32>
      %c21 = arith.constant 21 : index
      %c0_122 = arith.constant 0 : index
      %c0_123 = arith.constant 0 : index
      %236 = vector.load %arg2[%c21, %c0_122, %c0_123] : memref<25x1x16xf32, #tpu.memory_space<vmem>>, vector<1x1x16xf32>
      %237 = vector.shape_cast %236 : vector<1x1x16xf32> to vector<1x16xf32>
      %238 = vector.broadcast %235 : vector<28x1xf32> to vector<28x16xf32>
      %239 = vector.broadcast %237 : vector<1x16xf32> to vector<28x16xf32>
      %240 = arith.mulf %238, %239 : vector<28x16xf32>
      %241 = arith.addf %231, %240 : vector<28x16xf32>
      %c4_i32_124 = arith.constant 4 : i32
      %242 = arith.addi %20, %c4_i32_124 : i32
      %243 = arith.index_cast %242 : i32 to index
      %c2_125 = arith.constant 2 : index
      %c0_126 = arith.constant 0 : index
      %244 = vector.load %arg5[%243, %c2_125, %c0_126] : memref<32x32x1xf32, #tpu.memory_space<vmem>>, vector<1x28x1xf32>
      %245 = vector.shape_cast %244 : vector<1x28x1xf32> to vector<28x1xf32>
      %c22 = arith.constant 22 : index
      %c0_127 = arith.constant 0 : index
      %c0_128 = arith.constant 0 : index
      %246 = vector.load %arg2[%c22, %c0_127, %c0_128] : memref<25x1x16xf32, #tpu.memory_space<vmem>>, vector<1x1x16xf32>
      %247 = vector.shape_cast %246 : vector<1x1x16xf32> to vector<1x16xf32>
      %248 = vector.broadcast %245 : vector<28x1xf32> to vector<28x16xf32>
      %249 = vector.broadcast %247 : vector<1x16xf32> to vector<28x16xf32>
      %250 = arith.mulf %248, %249 : vector<28x16xf32>
      %251 = arith.addf %241, %250 : vector<28x16xf32>
      %c4_i32_129 = arith.constant 4 : i32
      %252 = arith.addi %20, %c4_i32_129 : i32
      %253 = arith.index_cast %252 : i32 to index
      %c3_130 = arith.constant 3 : index
      %c0_131 = arith.constant 0 : index
      %254 = vector.load %arg5[%253, %c3_130, %c0_131] : memref<32x32x1xf32, #tpu.memory_space<vmem>>, vector<1x28x1xf32>
      %255 = vector.shape_cast %254 : vector<1x28x1xf32> to vector<28x1xf32>
      %c23 = arith.constant 23 : index
      %c0_132 = arith.constant 0 : index
      %c0_133 = arith.constant 0 : index
      %256 = vector.load %arg2[%c23, %c0_132, %c0_133] : memref<25x1x16xf32, #tpu.memory_space<vmem>>, vector<1x1x16xf32>
      %257 = vector.shape_cast %256 : vector<1x1x16xf32> to vector<1x16xf32>
      %258 = vector.broadcast %255 : vector<28x1xf32> to vector<28x16xf32>
      %259 = vector.broadcast %257 : vector<1x16xf32> to vector<28x16xf32>
      %260 = arith.mulf %258, %259 : vector<28x16xf32>
      %261 = arith.addf %251, %260 : vector<28x16xf32>
      %c4_i32_134 = arith.constant 4 : i32
      %262 = arith.addi %20, %c4_i32_134 : i32
      %263 = arith.index_cast %262 : i32 to index
      %c4_135 = arith.constant 4 : index
      %c0_136 = arith.constant 0 : index
      %264 = vector.load %arg5[%263, %c4_135, %c0_136] : memref<32x32x1xf32, #tpu.memory_space<vmem>>, vector<1x28x1xf32>
      %265 = vector.shape_cast %264 : vector<1x28x1xf32> to vector<28x1xf32>
      %c24 = arith.constant 24 : index
      %c0_137 = arith.constant 0 : index
      %c0_138 = arith.constant 0 : index
      %266 = vector.load %arg2[%c24, %c0_137, %c0_138] : memref<25x1x16xf32, #tpu.memory_space<vmem>>, vector<1x1x16xf32>
      %267 = vector.shape_cast %266 : vector<1x1x16xf32> to vector<1x16xf32>
      %268 = vector.broadcast %265 : vector<28x1xf32> to vector<28x16xf32>
      %269 = vector.broadcast %267 : vector<1x16xf32> to vector<28x16xf32>
      %270 = arith.mulf %268, %269 : vector<28x16xf32>
      %271 = arith.addf %261, %270 : vector<28x16xf32>
      %272 = vector.broadcast %4 : vector<1x16xf32> to vector<28x16xf32>
      %273 = arith.addf %271, %272 : vector<28x16xf32>
      %cst_139 = arith.constant 0.000000e+00 : f32
      %274 = vector.broadcast %cst_139 : f32 to vector<28x16xf32>
      %275 = arith.maximumf %273, %274 : vector<28x16xf32>
      %c2_i32_140 = arith.constant 2 : i32
      %276 = arith.muli %c2_i32_140, %arg6 : i32
      %c1_i32_141 = arith.constant 1 : i32
      %277 = arith.addi %276, %c1_i32_141 : i32
      %cst_142 = arith.constant 0.000000e+00 : f32
      %278 = vector.broadcast %cst_142 : f32 to vector<28x16xf32>
      %c0_i32_143 = arith.constant 0 : i32
      %279 = arith.addi %277, %c0_i32_143 : i32
      %280 = arith.index_cast %279 : i32 to index
      %c0_144 = arith.constant 0 : index
      %c0_145 = arith.constant 0 : index
      %281 = vector.load %arg5[%280, %c0_144, %c0_145] : memref<32x32x1xf32, #tpu.memory_space<vmem>>, vector<1x28x1xf32>
      %282 = vector.shape_cast %281 : vector<1x28x1xf32> to vector<28x1xf32>
      %c0_146 = arith.constant 0 : index
      %c0_147 = arith.constant 0 : index
      %c0_148 = arith.constant 0 : index
      %283 = vector.load %arg2[%c0_146, %c0_147, %c0_148] : memref<25x1x16xf32, #tpu.memory_space<vmem>>, vector<1x1x16xf32>
      %284 = vector.shape_cast %283 : vector<1x1x16xf32> to vector<1x16xf32>
      %285 = vector.broadcast %282 : vector<28x1xf32> to vector<28x16xf32>
      %286 = vector.broadcast %284 : vector<1x16xf32> to vector<28x16xf32>
      %287 = arith.mulf %285, %286 : vector<28x16xf32>
      %288 = arith.addf %278, %287 : vector<28x16xf32>
      %c0_i32_149 = arith.constant 0 : i32
      %289 = arith.addi %277, %c0_i32_149 : i32
      %290 = arith.index_cast %289 : i32 to index
      %c1_150 = arith.constant 1 : index
      %c0_151 = arith.constant 0 : index
      %291 = vector.load %arg5[%290, %c1_150, %c0_151] : memref<32x32x1xf32, #tpu.memory_space<vmem>>, vector<1x28x1xf32>
      %292 = vector.shape_cast %291 : vector<1x28x1xf32> to vector<28x1xf32>
      %c1_152 = arith.constant 1 : index
      %c0_153 = arith.constant 0 : index
      %c0_154 = arith.constant 0 : index
      %293 = vector.load %arg2[%c1_152, %c0_153, %c0_154] : memref<25x1x16xf32, #tpu.memory_space<vmem>>, vector<1x1x16xf32>
      %294 = vector.shape_cast %293 : vector<1x1x16xf32> to vector<1x16xf32>
      %295 = vector.broadcast %292 : vector<28x1xf32> to vector<28x16xf32>
      %296 = vector.broadcast %294 : vector<1x16xf32> to vector<28x16xf32>
      %297 = arith.mulf %295, %296 : vector<28x16xf32>
      %298 = arith.addf %288, %297 : vector<28x16xf32>
      %c0_i32_155 = arith.constant 0 : i32
      %299 = arith.addi %277, %c0_i32_155 : i32
      %300 = arith.index_cast %299 : i32 to index
      %c2_156 = arith.constant 2 : index
      %c0_157 = arith.constant 0 : index
      %301 = vector.load %arg5[%300, %c2_156, %c0_157] : memref<32x32x1xf32, #tpu.memory_space<vmem>>, vector<1x28x1xf32>
      %302 = vector.shape_cast %301 : vector<1x28x1xf32> to vector<28x1xf32>
      %c2_158 = arith.constant 2 : index
      %c0_159 = arith.constant 0 : index
      %c0_160 = arith.constant 0 : index
      %303 = vector.load %arg2[%c2_158, %c0_159, %c0_160] : memref<25x1x16xf32, #tpu.memory_space<vmem>>, vector<1x1x16xf32>
      %304 = vector.shape_cast %303 : vector<1x1x16xf32> to vector<1x16xf32>
      %305 = vector.broadcast %302 : vector<28x1xf32> to vector<28x16xf32>
      %306 = vector.broadcast %304 : vector<1x16xf32> to vector<28x16xf32>
      %307 = arith.mulf %305, %306 : vector<28x16xf32>
      %308 = arith.addf %298, %307 : vector<28x16xf32>
      %c0_i32_161 = arith.constant 0 : i32
      %309 = arith.addi %277, %c0_i32_161 : i32
      %310 = arith.index_cast %309 : i32 to index
      %c3_162 = arith.constant 3 : index
      %c0_163 = arith.constant 0 : index
      %311 = vector.load %arg5[%310, %c3_162, %c0_163] : memref<32x32x1xf32, #tpu.memory_space<vmem>>, vector<1x28x1xf32>
      %312 = vector.shape_cast %311 : vector<1x28x1xf32> to vector<28x1xf32>
      %c3_164 = arith.constant 3 : index
      %c0_165 = arith.constant 0 : index
      %c0_166 = arith.constant 0 : index
      %313 = vector.load %arg2[%c3_164, %c0_165, %c0_166] : memref<25x1x16xf32, #tpu.memory_space<vmem>>, vector<1x1x16xf32>
      %314 = vector.shape_cast %313 : vector<1x1x16xf32> to vector<1x16xf32>
      %315 = vector.broadcast %312 : vector<28x1xf32> to vector<28x16xf32>
      %316 = vector.broadcast %314 : vector<1x16xf32> to vector<28x16xf32>
      %317 = arith.mulf %315, %316 : vector<28x16xf32>
      %318 = arith.addf %308, %317 : vector<28x16xf32>
      %c0_i32_167 = arith.constant 0 : i32
      %319 = arith.addi %277, %c0_i32_167 : i32
      %320 = arith.index_cast %319 : i32 to index
      %c4_168 = arith.constant 4 : index
      %c0_169 = arith.constant 0 : index
      %321 = vector.load %arg5[%320, %c4_168, %c0_169] : memref<32x32x1xf32, #tpu.memory_space<vmem>>, vector<1x28x1xf32>
      %322 = vector.shape_cast %321 : vector<1x28x1xf32> to vector<28x1xf32>
      %c4_170 = arith.constant 4 : index
      %c0_171 = arith.constant 0 : index
      %c0_172 = arith.constant 0 : index
      %323 = vector.load %arg2[%c4_170, %c0_171, %c0_172] : memref<25x1x16xf32, #tpu.memory_space<vmem>>, vector<1x1x16xf32>
      %324 = vector.shape_cast %323 : vector<1x1x16xf32> to vector<1x16xf32>
      %325 = vector.broadcast %322 : vector<28x1xf32> to vector<28x16xf32>
      %326 = vector.broadcast %324 : vector<1x16xf32> to vector<28x16xf32>
      %327 = arith.mulf %325, %326 : vector<28x16xf32>
      %328 = arith.addf %318, %327 : vector<28x16xf32>
      %c1_i32_173 = arith.constant 1 : i32
      %329 = arith.addi %277, %c1_i32_173 : i32
      %330 = arith.index_cast %329 : i32 to index
      %c0_174 = arith.constant 0 : index
      %c0_175 = arith.constant 0 : index
      %331 = vector.load %arg5[%330, %c0_174, %c0_175] : memref<32x32x1xf32, #tpu.memory_space<vmem>>, vector<1x28x1xf32>
      %332 = vector.shape_cast %331 : vector<1x28x1xf32> to vector<28x1xf32>
      %c5_176 = arith.constant 5 : index
      %c0_177 = arith.constant 0 : index
      %c0_178 = arith.constant 0 : index
      %333 = vector.load %arg2[%c5_176, %c0_177, %c0_178] : memref<25x1x16xf32, #tpu.memory_space<vmem>>, vector<1x1x16xf32>
      %334 = vector.shape_cast %333 : vector<1x1x16xf32> to vector<1x16xf32>
      %335 = vector.broadcast %332 : vector<28x1xf32> to vector<28x16xf32>
      %336 = vector.broadcast %334 : vector<1x16xf32> to vector<28x16xf32>
      %337 = arith.mulf %335, %336 : vector<28x16xf32>
      %338 = arith.addf %328, %337 : vector<28x16xf32>
      %c1_i32_179 = arith.constant 1 : i32
      %339 = arith.addi %277, %c1_i32_179 : i32
      %340 = arith.index_cast %339 : i32 to index
      %c1_180 = arith.constant 1 : index
      %c0_181 = arith.constant 0 : index
      %341 = vector.load %arg5[%340, %c1_180, %c0_181] : memref<32x32x1xf32, #tpu.memory_space<vmem>>, vector<1x28x1xf32>
      %342 = vector.shape_cast %341 : vector<1x28x1xf32> to vector<28x1xf32>
      %c6_182 = arith.constant 6 : index
      %c0_183 = arith.constant 0 : index
      %c0_184 = arith.constant 0 : index
      %343 = vector.load %arg2[%c6_182, %c0_183, %c0_184] : memref<25x1x16xf32, #tpu.memory_space<vmem>>, vector<1x1x16xf32>
      %344 = vector.shape_cast %343 : vector<1x1x16xf32> to vector<1x16xf32>
      %345 = vector.broadcast %342 : vector<28x1xf32> to vector<28x16xf32>
      %346 = vector.broadcast %344 : vector<1x16xf32> to vector<28x16xf32>
      %347 = arith.mulf %345, %346 : vector<28x16xf32>
      %348 = arith.addf %338, %347 : vector<28x16xf32>
      %c1_i32_185 = arith.constant 1 : i32
      %349 = arith.addi %277, %c1_i32_185 : i32
      %350 = arith.index_cast %349 : i32 to index
      %c2_186 = arith.constant 2 : index
      %c0_187 = arith.constant 0 : index
      %351 = vector.load %arg5[%350, %c2_186, %c0_187] : memref<32x32x1xf32, #tpu.memory_space<vmem>>, vector<1x28x1xf32>
      %352 = vector.shape_cast %351 : vector<1x28x1xf32> to vector<28x1xf32>
      %c7_188 = arith.constant 7 : index
      %c0_189 = arith.constant 0 : index
      %c0_190 = arith.constant 0 : index
      %353 = vector.load %arg2[%c7_188, %c0_189, %c0_190] : memref<25x1x16xf32, #tpu.memory_space<vmem>>, vector<1x1x16xf32>
      %354 = vector.shape_cast %353 : vector<1x1x16xf32> to vector<1x16xf32>
      %355 = vector.broadcast %352 : vector<28x1xf32> to vector<28x16xf32>
      %356 = vector.broadcast %354 : vector<1x16xf32> to vector<28x16xf32>
      %357 = arith.mulf %355, %356 : vector<28x16xf32>
      %358 = arith.addf %348, %357 : vector<28x16xf32>
      %c1_i32_191 = arith.constant 1 : i32
      %359 = arith.addi %277, %c1_i32_191 : i32
      %360 = arith.index_cast %359 : i32 to index
      %c3_192 = arith.constant 3 : index
      %c0_193 = arith.constant 0 : index
      %361 = vector.load %arg5[%360, %c3_192, %c0_193] : memref<32x32x1xf32, #tpu.memory_space<vmem>>, vector<1x28x1xf32>
      %362 = vector.shape_cast %361 : vector<1x28x1xf32> to vector<28x1xf32>
      %c8_194 = arith.constant 8 : index
      %c0_195 = arith.constant 0 : index
      %c0_196 = arith.constant 0 : index
      %363 = vector.load %arg2[%c8_194, %c0_195, %c0_196] : memref<25x1x16xf32, #tpu.memory_space<vmem>>, vector<1x1x16xf32>
      %364 = vector.shape_cast %363 : vector<1x1x16xf32> to vector<1x16xf32>
      %365 = vector.broadcast %362 : vector<28x1xf32> to vector<28x16xf32>
      %366 = vector.broadcast %364 : vector<1x16xf32> to vector<28x16xf32>
      %367 = arith.mulf %365, %366 : vector<28x16xf32>
      %368 = arith.addf %358, %367 : vector<28x16xf32>
      %c1_i32_197 = arith.constant 1 : i32
      %369 = arith.addi %277, %c1_i32_197 : i32
      %370 = arith.index_cast %369 : i32 to index
      %c4_198 = arith.constant 4 : index
      %c0_199 = arith.constant 0 : index
      %371 = vector.load %arg5[%370, %c4_198, %c0_199] : memref<32x32x1xf32, #tpu.memory_space<vmem>>, vector<1x28x1xf32>
      %372 = vector.shape_cast %371 : vector<1x28x1xf32> to vector<28x1xf32>
      %c9_200 = arith.constant 9 : index
      %c0_201 = arith.constant 0 : index
      %c0_202 = arith.constant 0 : index
      %373 = vector.load %arg2[%c9_200, %c0_201, %c0_202] : memref<25x1x16xf32, #tpu.memory_space<vmem>>, vector<1x1x16xf32>
      %374 = vector.shape_cast %373 : vector<1x1x16xf32> to vector<1x16xf32>
      %375 = vector.broadcast %372 : vector<28x1xf32> to vector<28x16xf32>
      %376 = vector.broadcast %374 : vector<1x16xf32> to vector<28x16xf32>
      %377 = arith.mulf %375, %376 : vector<28x16xf32>
      %378 = arith.addf %368, %377 : vector<28x16xf32>
      %c2_i32_203 = arith.constant 2 : i32
      %379 = arith.addi %277, %c2_i32_203 : i32
      %380 = arith.index_cast %379 : i32 to index
      %c0_204 = arith.constant 0 : index
      %c0_205 = arith.constant 0 : index
      %381 = vector.load %arg5[%380, %c0_204, %c0_205] : memref<32x32x1xf32, #tpu.memory_space<vmem>>, vector<1x28x1xf32>
      %382 = vector.shape_cast %381 : vector<1x28x1xf32> to vector<28x1xf32>
      %c10_206 = arith.constant 10 : index
      %c0_207 = arith.constant 0 : index
      %c0_208 = arith.constant 0 : index
      %383 = vector.load %arg2[%c10_206, %c0_207, %c0_208] : memref<25x1x16xf32, #tpu.memory_space<vmem>>, vector<1x1x16xf32>
      %384 = vector.shape_cast %383 : vector<1x1x16xf32> to vector<1x16xf32>
      %385 = vector.broadcast %382 : vector<28x1xf32> to vector<28x16xf32>
      %386 = vector.broadcast %384 : vector<1x16xf32> to vector<28x16xf32>
      %387 = arith.mulf %385, %386 : vector<28x16xf32>
      %388 = arith.addf %378, %387 : vector<28x16xf32>
      %c2_i32_209 = arith.constant 2 : i32
      %389 = arith.addi %277, %c2_i32_209 : i32
      %390 = arith.index_cast %389 : i32 to index
      %c1_210 = arith.constant 1 : index
      %c0_211 = arith.constant 0 : index
      %391 = vector.load %arg5[%390, %c1_210, %c0_211] : memref<32x32x1xf32, #tpu.memory_space<vmem>>, vector<1x28x1xf32>
      %392 = vector.shape_cast %391 : vector<1x28x1xf32> to vector<28x1xf32>
      %c11_212 = arith.constant 11 : index
      %c0_213 = arith.constant 0 : index
      %c0_214 = arith.constant 0 : index
      %393 = vector.load %arg2[%c11_212, %c0_213, %c0_214] : memref<25x1x16xf32, #tpu.memory_space<vmem>>, vector<1x1x16xf32>
      %394 = vector.shape_cast %393 : vector<1x1x16xf32> to vector<1x16xf32>
      %395 = vector.broadcast %392 : vector<28x1xf32> to vector<28x16xf32>
      %396 = vector.broadcast %394 : vector<1x16xf32> to vector<28x16xf32>
      %397 = arith.mulf %395, %396 : vector<28x16xf32>
      %398 = arith.addf %388, %397 : vector<28x16xf32>
      %c2_i32_215 = arith.constant 2 : i32
      %399 = arith.addi %277, %c2_i32_215 : i32
      %400 = arith.index_cast %399 : i32 to index
      %c2_216 = arith.constant 2 : index
      %c0_217 = arith.constant 0 : index
      %401 = vector.load %arg5[%400, %c2_216, %c0_217] : memref<32x32x1xf32, #tpu.memory_space<vmem>>, vector<1x28x1xf32>
      %402 = vector.shape_cast %401 : vector<1x28x1xf32> to vector<28x1xf32>
      %c12_218 = arith.constant 12 : index
      %c0_219 = arith.constant 0 : index
      %c0_220 = arith.constant 0 : index
      %403 = vector.load %arg2[%c12_218, %c0_219, %c0_220] : memref<25x1x16xf32, #tpu.memory_space<vmem>>, vector<1x1x16xf32>
      %404 = vector.shape_cast %403 : vector<1x1x16xf32> to vector<1x16xf32>
      %405 = vector.broadcast %402 : vector<28x1xf32> to vector<28x16xf32>
      %406 = vector.broadcast %404 : vector<1x16xf32> to vector<28x16xf32>
      %407 = arith.mulf %405, %406 : vector<28x16xf32>
      %408 = arith.addf %398, %407 : vector<28x16xf32>
      %c2_i32_221 = arith.constant 2 : i32
      %409 = arith.addi %277, %c2_i32_221 : i32
      %410 = arith.index_cast %409 : i32 to index
      %c3_222 = arith.constant 3 : index
      %c0_223 = arith.constant 0 : index
      %411 = vector.load %arg5[%410, %c3_222, %c0_223] : memref<32x32x1xf32, #tpu.memory_space<vmem>>, vector<1x28x1xf32>
      %412 = vector.shape_cast %411 : vector<1x28x1xf32> to vector<28x1xf32>
      %c13_224 = arith.constant 13 : index
      %c0_225 = arith.constant 0 : index
      %c0_226 = arith.constant 0 : index
      %413 = vector.load %arg2[%c13_224, %c0_225, %c0_226] : memref<25x1x16xf32, #tpu.memory_space<vmem>>, vector<1x1x16xf32>
      %414 = vector.shape_cast %413 : vector<1x1x16xf32> to vector<1x16xf32>
      %415 = vector.broadcast %412 : vector<28x1xf32> to vector<28x16xf32>
      %416 = vector.broadcast %414 : vector<1x16xf32> to vector<28x16xf32>
      %417 = arith.mulf %415, %416 : vector<28x16xf32>
      %418 = arith.addf %408, %417 : vector<28x16xf32>
      %c2_i32_227 = arith.constant 2 : i32
      %419 = arith.addi %277, %c2_i32_227 : i32
      %420 = arith.index_cast %419 : i32 to index
      %c4_228 = arith.constant 4 : index
      %c0_229 = arith.constant 0 : index
      %421 = vector.load %arg5[%420, %c4_228, %c0_229] : memref<32x32x1xf32, #tpu.memory_space<vmem>>, vector<1x28x1xf32>
      %422 = vector.shape_cast %421 : vector<1x28x1xf32> to vector<28x1xf32>
      %c14_230 = arith.constant 14 : index
      %c0_231 = arith.constant 0 : index
      %c0_232 = arith.constant 0 : index
      %423 = vector.load %arg2[%c14_230, %c0_231, %c0_232] : memref<25x1x16xf32, #tpu.memory_space<vmem>>, vector<1x1x16xf32>
      %424 = vector.shape_cast %423 : vector<1x1x16xf32> to vector<1x16xf32>
      %425 = vector.broadcast %422 : vector<28x1xf32> to vector<28x16xf32>
      %426 = vector.broadcast %424 : vector<1x16xf32> to vector<28x16xf32>
      %427 = arith.mulf %425, %426 : vector<28x16xf32>
      %428 = arith.addf %418, %427 : vector<28x16xf32>
      %c3_i32_233 = arith.constant 3 : i32
      %429 = arith.addi %277, %c3_i32_233 : i32
      %430 = arith.index_cast %429 : i32 to index
      %c0_234 = arith.constant 0 : index
      %c0_235 = arith.constant 0 : index
      %431 = vector.load %arg5[%430, %c0_234, %c0_235] : memref<32x32x1xf32, #tpu.memory_space<vmem>>, vector<1x28x1xf32>
      %432 = vector.shape_cast %431 : vector<1x28x1xf32> to vector<28x1xf32>
      %c15_236 = arith.constant 15 : index
      %c0_237 = arith.constant 0 : index
      %c0_238 = arith.constant 0 : index
      %433 = vector.load %arg2[%c15_236, %c0_237, %c0_238] : memref<25x1x16xf32, #tpu.memory_space<vmem>>, vector<1x1x16xf32>
      %434 = vector.shape_cast %433 : vector<1x1x16xf32> to vector<1x16xf32>
      %435 = vector.broadcast %432 : vector<28x1xf32> to vector<28x16xf32>
      %436 = vector.broadcast %434 : vector<1x16xf32> to vector<28x16xf32>
      %437 = arith.mulf %435, %436 : vector<28x16xf32>
      %438 = arith.addf %428, %437 : vector<28x16xf32>
      %c3_i32_239 = arith.constant 3 : i32
      %439 = arith.addi %277, %c3_i32_239 : i32
      %440 = arith.index_cast %439 : i32 to index
      %c1_240 = arith.constant 1 : index
      %c0_241 = arith.constant 0 : index
      %441 = vector.load %arg5[%440, %c1_240, %c0_241] : memref<32x32x1xf32, #tpu.memory_space<vmem>>, vector<1x28x1xf32>
      %442 = vector.shape_cast %441 : vector<1x28x1xf32> to vector<28x1xf32>
      %c16_242 = arith.constant 16 : index
      %c0_243 = arith.constant 0 : index
      %c0_244 = arith.constant 0 : index
      %443 = vector.load %arg2[%c16_242, %c0_243, %c0_244] : memref<25x1x16xf32, #tpu.memory_space<vmem>>, vector<1x1x16xf32>
      %444 = vector.shape_cast %443 : vector<1x1x16xf32> to vector<1x16xf32>
      %445 = vector.broadcast %442 : vector<28x1xf32> to vector<28x16xf32>
      %446 = vector.broadcast %444 : vector<1x16xf32> to vector<28x16xf32>
      %447 = arith.mulf %445, %446 : vector<28x16xf32>
      %448 = arith.addf %438, %447 : vector<28x16xf32>
      %c3_i32_245 = arith.constant 3 : i32
      %449 = arith.addi %277, %c3_i32_245 : i32
      %450 = arith.index_cast %449 : i32 to index
      %c2_246 = arith.constant 2 : index
      %c0_247 = arith.constant 0 : index
      %451 = vector.load %arg5[%450, %c2_246, %c0_247] : memref<32x32x1xf32, #tpu.memory_space<vmem>>, vector<1x28x1xf32>
      %452 = vector.shape_cast %451 : vector<1x28x1xf32> to vector<28x1xf32>
      %c17_248 = arith.constant 17 : index
      %c0_249 = arith.constant 0 : index
      %c0_250 = arith.constant 0 : index
      %453 = vector.load %arg2[%c17_248, %c0_249, %c0_250] : memref<25x1x16xf32, #tpu.memory_space<vmem>>, vector<1x1x16xf32>
      %454 = vector.shape_cast %453 : vector<1x1x16xf32> to vector<1x16xf32>
      %455 = vector.broadcast %452 : vector<28x1xf32> to vector<28x16xf32>
      %456 = vector.broadcast %454 : vector<1x16xf32> to vector<28x16xf32>
      %457 = arith.mulf %455, %456 : vector<28x16xf32>
      %458 = arith.addf %448, %457 : vector<28x16xf32>
      %c3_i32_251 = arith.constant 3 : i32
      %459 = arith.addi %277, %c3_i32_251 : i32
      %460 = arith.index_cast %459 : i32 to index
      %c3_252 = arith.constant 3 : index
      %c0_253 = arith.constant 0 : index
      %461 = vector.load %arg5[%460, %c3_252, %c0_253] : memref<32x32x1xf32, #tpu.memory_space<vmem>>, vector<1x28x1xf32>
      %462 = vector.shape_cast %461 : vector<1x28x1xf32> to vector<28x1xf32>
      %c18_254 = arith.constant 18 : index
      %c0_255 = arith.constant 0 : index
      %c0_256 = arith.constant 0 : index
      %463 = vector.load %arg2[%c18_254, %c0_255, %c0_256] : memref<25x1x16xf32, #tpu.memory_space<vmem>>, vector<1x1x16xf32>
      %464 = vector.shape_cast %463 : vector<1x1x16xf32> to vector<1x16xf32>
      %465 = vector.broadcast %462 : vector<28x1xf32> to vector<28x16xf32>
      %466 = vector.broadcast %464 : vector<1x16xf32> to vector<28x16xf32>
      %467 = arith.mulf %465, %466 : vector<28x16xf32>
      %468 = arith.addf %458, %467 : vector<28x16xf32>
      %c3_i32_257 = arith.constant 3 : i32
      %469 = arith.addi %277, %c3_i32_257 : i32
      %470 = arith.index_cast %469 : i32 to index
      %c4_258 = arith.constant 4 : index
      %c0_259 = arith.constant 0 : index
      %471 = vector.load %arg5[%470, %c4_258, %c0_259] : memref<32x32x1xf32, #tpu.memory_space<vmem>>, vector<1x28x1xf32>
      %472 = vector.shape_cast %471 : vector<1x28x1xf32> to vector<28x1xf32>
      %c19_260 = arith.constant 19 : index
      %c0_261 = arith.constant 0 : index
      %c0_262 = arith.constant 0 : index
      %473 = vector.load %arg2[%c19_260, %c0_261, %c0_262] : memref<25x1x16xf32, #tpu.memory_space<vmem>>, vector<1x1x16xf32>
      %474 = vector.shape_cast %473 : vector<1x1x16xf32> to vector<1x16xf32>
      %475 = vector.broadcast %472 : vector<28x1xf32> to vector<28x16xf32>
      %476 = vector.broadcast %474 : vector<1x16xf32> to vector<28x16xf32>
      %477 = arith.mulf %475, %476 : vector<28x16xf32>
      %478 = arith.addf %468, %477 : vector<28x16xf32>
      %c4_i32_263 = arith.constant 4 : i32
      %479 = arith.addi %277, %c4_i32_263 : i32
      %480 = arith.index_cast %479 : i32 to index
      %c0_264 = arith.constant 0 : index
      %c0_265 = arith.constant 0 : index
      %481 = vector.load %arg5[%480, %c0_264, %c0_265] : memref<32x32x1xf32, #tpu.memory_space<vmem>>, vector<1x28x1xf32>
      %482 = vector.shape_cast %481 : vector<1x28x1xf32> to vector<28x1xf32>
      %c20_266 = arith.constant 20 : index
      %c0_267 = arith.constant 0 : index
      %c0_268 = arith.constant 0 : index
      %483 = vector.load %arg2[%c20_266, %c0_267, %c0_268] : memref<25x1x16xf32, #tpu.memory_space<vmem>>, vector<1x1x16xf32>
      %484 = vector.shape_cast %483 : vector<1x1x16xf32> to vector<1x16xf32>
      %485 = vector.broadcast %482 : vector<28x1xf32> to vector<28x16xf32>
      %486 = vector.broadcast %484 : vector<1x16xf32> to vector<28x16xf32>
      %487 = arith.mulf %485, %486 : vector<28x16xf32>
      %488 = arith.addf %478, %487 : vector<28x16xf32>
      %c4_i32_269 = arith.constant 4 : i32
      %489 = arith.addi %277, %c4_i32_269 : i32
      %490 = arith.index_cast %489 : i32 to index
      %c1_270 = arith.constant 1 : index
      %c0_271 = arith.constant 0 : index
      %491 = vector.load %arg5[%490, %c1_270, %c0_271] : memref<32x32x1xf32, #tpu.memory_space<vmem>>, vector<1x28x1xf32>
      %492 = vector.shape_cast %491 : vector<1x28x1xf32> to vector<28x1xf32>
      %c21_272 = arith.constant 21 : index
      %c0_273 = arith.constant 0 : index
      %c0_274 = arith.constant 0 : index
      %493 = vector.load %arg2[%c21_272, %c0_273, %c0_274] : memref<25x1x16xf32, #tpu.memory_space<vmem>>, vector<1x1x16xf32>
      %494 = vector.shape_cast %493 : vector<1x1x16xf32> to vector<1x16xf32>
      %495 = vector.broadcast %492 : vector<28x1xf32> to vector<28x16xf32>
      %496 = vector.broadcast %494 : vector<1x16xf32> to vector<28x16xf32>
      %497 = arith.mulf %495, %496 : vector<28x16xf32>
      %498 = arith.addf %488, %497 : vector<28x16xf32>
      %c4_i32_275 = arith.constant 4 : i32
      %499 = arith.addi %277, %c4_i32_275 : i32
      %500 = arith.index_cast %499 : i32 to index
      %c2_276 = arith.constant 2 : index
      %c0_277 = arith.constant 0 : index
      %501 = vector.load %arg5[%500, %c2_276, %c0_277] : memref<32x32x1xf32, #tpu.memory_space<vmem>>, vector<1x28x1xf32>
      %502 = vector.shape_cast %501 : vector<1x28x1xf32> to vector<28x1xf32>
      %c22_278 = arith.constant 22 : index
      %c0_279 = arith.constant 0 : index
      %c0_280 = arith.constant 0 : index
      %503 = vector.load %arg2[%c22_278, %c0_279, %c0_280] : memref<25x1x16xf32, #tpu.memory_space<vmem>>, vector<1x1x16xf32>
      %504 = vector.shape_cast %503 : vector<1x1x16xf32> to vector<1x16xf32>
      %505 = vector.broadcast %502 : vector<28x1xf32> to vector<28x16xf32>
      %506 = vector.broadcast %504 : vector<1x16xf32> to vector<28x16xf32>
      %507 = arith.mulf %505, %506 : vector<28x16xf32>
      %508 = arith.addf %498, %507 : vector<28x16xf32>
      %c4_i32_281 = arith.constant 4 : i32
      %509 = arith.addi %277, %c4_i32_281 : i32
      %510 = arith.index_cast %509 : i32 to index
      %c3_282 = arith.constant 3 : index
      %c0_283 = arith.constant 0 : index
      %511 = vector.load %arg5[%510, %c3_282, %c0_283] : memref<32x32x1xf32, #tpu.memory_space<vmem>>, vector<1x28x1xf32>
      %512 = vector.shape_cast %511 : vector<1x28x1xf32> to vector<28x1xf32>
      %c23_284 = arith.constant 23 : index
      %c0_285 = arith.constant 0 : index
      %c0_286 = arith.constant 0 : index
      %513 = vector.load %arg2[%c23_284, %c0_285, %c0_286] : memref<25x1x16xf32, #tpu.memory_space<vmem>>, vector<1x1x16xf32>
      %514 = vector.shape_cast %513 : vector<1x1x16xf32> to vector<1x16xf32>
      %515 = vector.broadcast %512 : vector<28x1xf32> to vector<28x16xf32>
      %516 = vector.broadcast %514 : vector<1x16xf32> to vector<28x16xf32>
      %517 = arith.mulf %515, %516 : vector<28x16xf32>
      %518 = arith.addf %508, %517 : vector<28x16xf32>
      %c4_i32_287 = arith.constant 4 : i32
      %519 = arith.addi %277, %c4_i32_287 : i32
      %520 = arith.index_cast %519 : i32 to index
      %c4_288 = arith.constant 4 : index
      %c0_289 = arith.constant 0 : index
      %521 = vector.load %arg5[%520, %c4_288, %c0_289] : memref<32x32x1xf32, #tpu.memory_space<vmem>>, vector<1x28x1xf32>
      %522 = vector.shape_cast %521 : vector<1x28x1xf32> to vector<28x1xf32>
      %c24_290 = arith.constant 24 : index
      %c0_291 = arith.constant 0 : index
      %c0_292 = arith.constant 0 : index
      %523 = vector.load %arg2[%c24_290, %c0_291, %c0_292] : memref<25x1x16xf32, #tpu.memory_space<vmem>>, vector<1x1x16xf32>
      %524 = vector.shape_cast %523 : vector<1x1x16xf32> to vector<1x16xf32>
      %525 = vector.broadcast %522 : vector<28x1xf32> to vector<28x16xf32>
      %526 = vector.broadcast %524 : vector<1x16xf32> to vector<28x16xf32>
      %527 = arith.mulf %525, %526 : vector<28x16xf32>
      %528 = arith.addf %518, %527 : vector<28x16xf32>
      %529 = vector.broadcast %4 : vector<1x16xf32> to vector<28x16xf32>
      %530 = arith.addf %528, %529 : vector<28x16xf32>
      %cst_293 = arith.constant 0.000000e+00 : f32
      %531 = vector.broadcast %cst_293 : f32 to vector<28x16xf32>
      %532 = arith.maximumf %530, %531 : vector<28x16xf32>
      %533 = arith.maximumf %275, %532 : vector<28x16xf32>
      %cst_294 = arith.constant dense<0.000000e+00> : vector<14x16xf32>
      %534 = tpu.matmul %11, %533, %cst_294 {dimension_numbers = #tpu.dot_dimension_numbers<[1], [0], [0], [1], [0, 0, 1, 1], [], []>} : vector<14x28xf32>, vector<28x16xf32>, vector<14x16xf32> -> vector<14x16xf32>
      %cst_295 = arith.constant dense<0.000000e+00> : vector<14x16xf32>
      %535 = tpu.matmul %18, %533, %cst_295 {dimension_numbers = #tpu.dot_dimension_numbers<[1], [0], [0], [1], [0, 0, 1, 1], [], []>} : vector<14x28xf32>, vector<28x16xf32>, vector<14x16xf32> -> vector<14x16xf32>
      %536 = arith.maximumf %534, %535 : vector<14x16xf32>
      %537 = arith.index_cast %arg6 : i32 to index
      %c0_296 = arith.constant 0 : index
      %c0_297 = arith.constant 0 : index
      %538 = vector.load %arg4[%537, %c0_296, %c0_297] : memref<14x14x16xf32, #tpu.memory_space<vmem>>, vector<1x14x16xf32>
      %539 = vector.shape_cast %538 : vector<1x14x16xf32> to vector<14x16xf32>
      %540 = vector.shape_cast %536 : vector<14x16xf32> to vector<1x14x16xf32>
      tpu.vector_store %arg4[%537, %c0_296, %c0_297], %540 {strides = array<i32>} : memref<14x14x16xf32, #tpu.memory_space<vmem>>, vector<1x14x16xf32>,
    }
    %c14_i32_11 = arith.constant 14 : i32
    return
  }
  func.func @transform_0(%arg0: i32) -> (i32, i32, i32) {
    %c0_i32 = arith.constant 0 : i32
    %c0_i32_0 = arith.constant 0 : i32
    %c0_i32_1 = arith.constant 0 : i32
    return %arg0, %c0_i32, %c0_i32_0 : i32, i32, i32
  }
  func.func @transform_1(%arg0: i32) -> (i32, i32, i32) {
    %c0_i32 = arith.constant 0 : i32
    %c0_i32_0 = arith.constant 0 : i32
    %c0_i32_1 = arith.constant 0 : i32
    %c0_i32_2 = arith.constant 0 : i32
    return %c0_i32, %c0_i32_0, %c0_i32_1 : i32, i32, i32
  }
  func.func @transform_2(%arg0: i32) -> (i32, i32) {
    %c0_i32 = arith.constant 0 : i32
    %c0_i32_0 = arith.constant 0 : i32
    %c0_i32_1 = arith.constant 0 : i32
    return %c0_i32, %c0_i32_0 : i32, i32
  }
  func.func @transform_3(%arg0: i32) -> (i32, i32, i32) {
    %c0_i32 = arith.constant 0 : i32
    %c0_i32_0 = arith.constant 0 : i32
    %c0_i32_1 = arith.constant 0 : i32
    return %arg0, %c0_i32, %c0_i32_0 : i32, i32, i32
  }
}

module attributes {stable_mosaic.version = 11 : i64} {
  func.func @kernel(%arg0: i32, %arg1: memref<14x14x16xf32, #tpu.memory_space<vmem>>, %arg2: memref<25x16x32xf32, #tpu.memory_space<vmem>>, %arg3: memref<1x32xf32, #tpu.memory_space<vmem>>, %arg4: memref<7x7x32xf32, #tpu.memory_space<vmem>>, %arg5: memref<18x18x16xf32, #tpu.memory_space<vmem>>) attributes {dimension_semantics = [#tpu.dimension_semantics<parallel>], iteration_bounds = array<i64: 2>, scalar_prefetch = 0 : i64, scratch_operands = 1 : i64, tpu.core_type = #tpu.core_type<tc>, window_params = [{transform_indices = @transform_0, window_bounds = array<i64: 14, 14, 16>}, {pipeline_mode = #tpu.pipeline_mode<synchronous>, transform_indices = @transform_1, window_bounds = array<i64: 25, 16, 32>}, {pipeline_mode = #tpu.pipeline_mode<synchronous>, transform_indices = @transform_2, window_bounds = array<i64: 1, 32>}, {transform_indices = @transform_3, window_bounds = array<i64: 7, 7, 32>}]} {
    %cst = arith.constant 0.000000e+00 : f32
    %0 = vector.broadcast %cst : f32 to vector<18x18x16xf32>
    %c0 = arith.constant 0 : index
    %c0_0 = arith.constant 0 : index
    %c0_1 = arith.constant 0 : index
    %1 = vector.load %arg5[%c0, %c0_0, %c0_1] : memref<18x18x16xf32, #tpu.memory_space<vmem>>, vector<18x18x16xf32>
    tpu.vector_store %arg5[%c0, %c0_0, %c0_1], %0 {strides = array<i32>} : memref<18x18x16xf32, #tpu.memory_space<vmem>>, vector<18x18x16xf32>,
    %c0_2 = arith.constant 0 : index
    %c0_3 = arith.constant 0 : index
    %c0_4 = arith.constant 0 : index
    %2 = vector.load %arg1[%c0_2, %c0_3, %c0_4] : memref<14x14x16xf32, #tpu.memory_space<vmem>>, vector<14x14x16xf32>
    %c2 = arith.constant 2 : index
    %c2_5 = arith.constant 2 : index
    %c0_6 = arith.constant 0 : index
    %3 = vector.load %arg5[%c2, %c2_5, %c0_6] : memref<18x18x16xf32, #tpu.memory_space<vmem>>, vector<14x14x16xf32>
    tpu.vector_store %arg5[%c2, %c2_5, %c0_6], %2 {strides = array<i32>} : memref<18x18x16xf32, #tpu.memory_space<vmem>>, vector<14x14x16xf32>,
    %c0_7 = arith.constant 0 : index
    %c0_8 = arith.constant 0 : index
    %4 = vector.load %arg3[%c0_7, %c0_8] : memref<1x32xf32, #tpu.memory_space<vmem>>, vector<1x32xf32>
    %5 = tpu.iota {dimensions = array<i32: 0>} : vector<7x14xi32>
    %6 = tpu.iota {dimensions = array<i32: 1>} : vector<7x14xi32>
    %c2_i32 = arith.constant 2 : i32
    %7 = vector.broadcast %c2_i32 : i32 to vector<7x14xi32>
    %8 = arith.muli %7, %5 : vector<7x14xi32>
    %9 = arith.cmpi eq, %6, %8 : vector<7x14xi32>
    %10 = arith.extui %9 : vector<7x14xi1> to vector<7x14xi32>
    %11 = arith.sitofp %10 : vector<7x14xi32> to vector<7x14xf32>
    %c2_i32_9 = arith.constant 2 : i32
    %12 = vector.broadcast %c2_i32_9 : i32 to vector<7x14xi32>
    %13 = arith.muli %12, %5 : vector<7x14xi32>
    %c1_i32 = arith.constant 1 : i32
    %14 = vector.broadcast %c1_i32 : i32 to vector<7x14xi32>
    %15 = arith.addi %13, %14 : vector<7x14xi32>
    %16 = arith.cmpi eq, %6, %15 : vector<7x14xi32>
    %17 = arith.extui %16 : vector<7x14xi1> to vector<7x14xi32>
    %18 = arith.sitofp %17 : vector<7x14xi32> to vector<7x14xf32>
    %c0_i32 = arith.constant 0 : i32
    %c7_i32 = arith.constant 7 : i32
    %19 = arith.addi %c0_i32, %c7_i32 : i32
    %c1_i32_10 = arith.constant 1 : i32
    scf.for %arg6 = %c0_i32 to %19 step %c1_i32_10  : i32 {
      %c2_i32_12 = arith.constant 2 : i32
      %20 = arith.muli %c2_i32_12, %arg6 : i32
      %cst_13 = arith.constant 0.000000e+00 : f32
      %21 = vector.broadcast %cst_13 : f32 to vector<14x32xf32>
      %c0_i32_14 = arith.constant 0 : i32
      %22 = arith.addi %20, %c0_i32_14 : i32
      %23 = arith.index_cast %22 : i32 to index
      %c0_15 = arith.constant 0 : index
      %c0_16 = arith.constant 0 : index
      %24 = vector.load %arg5[%23, %c0_15, %c0_16] : memref<18x18x16xf32, #tpu.memory_space<vmem>>, vector<1x14x16xf32>
      %25 = vector.shape_cast %24 : vector<1x14x16xf32> to vector<14x16xf32>
      %c0_17 = arith.constant 0 : index
      %c0_18 = arith.constant 0 : index
      %c0_19 = arith.constant 0 : index
      %26 = vector.load %arg2[%c0_17, %c0_18, %c0_19] : memref<25x16x32xf32, #tpu.memory_space<vmem>>, vector<1x16x32xf32>
      %27 = vector.shape_cast %26 : vector<1x16x32xf32> to vector<16x32xf32>
      %cst_20 = arith.constant dense<0.000000e+00> : vector<14x32xf32>
      %28 = tpu.matmul %25, %27, %cst_20 {dimension_numbers = #tpu.dot_dimension_numbers<[1], [0], [0], [1], [0, 0, 1, 1], [], []>} : vector<14x16xf32>, vector<16x32xf32>, vector<14x32xf32> -> vector<14x32xf32>
      %29 = arith.addf %21, %28 : vector<14x32xf32>
      %c0_i32_21 = arith.constant 0 : i32
      %30 = arith.addi %20, %c0_i32_21 : i32
      %31 = arith.index_cast %30 : i32 to index
      %c1 = arith.constant 1 : index
      %c0_22 = arith.constant 0 : index
      %32 = vector.load %arg5[%31, %c1, %c0_22] : memref<18x18x16xf32, #tpu.memory_space<vmem>>, vector<1x14x16xf32>
      %33 = vector.shape_cast %32 : vector<1x14x16xf32> to vector<14x16xf32>
      %c1_23 = arith.constant 1 : index
      %c0_24 = arith.constant 0 : index
      %c0_25 = arith.constant 0 : index
      %34 = vector.load %arg2[%c1_23, %c0_24, %c0_25] : memref<25x16x32xf32, #tpu.memory_space<vmem>>, vector<1x16x32xf32>
      %35 = vector.shape_cast %34 : vector<1x16x32xf32> to vector<16x32xf32>
      %cst_26 = arith.constant dense<0.000000e+00> : vector<14x32xf32>
      %36 = tpu.matmul %33, %35, %cst_26 {dimension_numbers = #tpu.dot_dimension_numbers<[1], [0], [0], [1], [0, 0, 1, 1], [], []>} : vector<14x16xf32>, vector<16x32xf32>, vector<14x32xf32> -> vector<14x32xf32>
      %37 = arith.addf %29, %36 : vector<14x32xf32>
      %c0_i32_27 = arith.constant 0 : i32
      %38 = arith.addi %20, %c0_i32_27 : i32
      %39 = arith.index_cast %38 : i32 to index
      %c2_28 = arith.constant 2 : index
      %c0_29 = arith.constant 0 : index
      %40 = vector.load %arg5[%39, %c2_28, %c0_29] : memref<18x18x16xf32, #tpu.memory_space<vmem>>, vector<1x14x16xf32>
      %41 = vector.shape_cast %40 : vector<1x14x16xf32> to vector<14x16xf32>
      %c2_30 = arith.constant 2 : index
      %c0_31 = arith.constant 0 : index
      %c0_32 = arith.constant 0 : index
      %42 = vector.load %arg2[%c2_30, %c0_31, %c0_32] : memref<25x16x32xf32, #tpu.memory_space<vmem>>, vector<1x16x32xf32>
      %43 = vector.shape_cast %42 : vector<1x16x32xf32> to vector<16x32xf32>
      %cst_33 = arith.constant dense<0.000000e+00> : vector<14x32xf32>
      %44 = tpu.matmul %41, %43, %cst_33 {dimension_numbers = #tpu.dot_dimension_numbers<[1], [0], [0], [1], [0, 0, 1, 1], [], []>} : vector<14x16xf32>, vector<16x32xf32>, vector<14x32xf32> -> vector<14x32xf32>
      %45 = arith.addf %37, %44 : vector<14x32xf32>
      %c0_i32_34 = arith.constant 0 : i32
      %46 = arith.addi %20, %c0_i32_34 : i32
      %47 = arith.index_cast %46 : i32 to index
      %c3 = arith.constant 3 : index
      %c0_35 = arith.constant 0 : index
      %48 = vector.load %arg5[%47, %c3, %c0_35] : memref<18x18x16xf32, #tpu.memory_space<vmem>>, vector<1x14x16xf32>
      %49 = vector.shape_cast %48 : vector<1x14x16xf32> to vector<14x16xf32>
      %c3_36 = arith.constant 3 : index
      %c0_37 = arith.constant 0 : index
      %c0_38 = arith.constant 0 : index
      %50 = vector.load %arg2[%c3_36, %c0_37, %c0_38] : memref<25x16x32xf32, #tpu.memory_space<vmem>>, vector<1x16x32xf32>
      %51 = vector.shape_cast %50 : vector<1x16x32xf32> to vector<16x32xf32>
      %cst_39 = arith.constant dense<0.000000e+00> : vector<14x32xf32>
      %52 = tpu.matmul %49, %51, %cst_39 {dimension_numbers = #tpu.dot_dimension_numbers<[1], [0], [0], [1], [0, 0, 1, 1], [], []>} : vector<14x16xf32>, vector<16x32xf32>, vector<14x32xf32> -> vector<14x32xf32>
      %53 = arith.addf %45, %52 : vector<14x32xf32>
      %c0_i32_40 = arith.constant 0 : i32
      %54 = arith.addi %20, %c0_i32_40 : i32
      %55 = arith.index_cast %54 : i32 to index
      %c4 = arith.constant 4 : index
      %c0_41 = arith.constant 0 : index
      %56 = vector.load %arg5[%55, %c4, %c0_41] : memref<18x18x16xf32, #tpu.memory_space<vmem>>, vector<1x14x16xf32>
      %57 = vector.shape_cast %56 : vector<1x14x16xf32> to vector<14x16xf32>
      %c4_42 = arith.constant 4 : index
      %c0_43 = arith.constant 0 : index
      %c0_44 = arith.constant 0 : index
      %58 = vector.load %arg2[%c4_42, %c0_43, %c0_44] : memref<25x16x32xf32, #tpu.memory_space<vmem>>, vector<1x16x32xf32>
      %59 = vector.shape_cast %58 : vector<1x16x32xf32> to vector<16x32xf32>
      %cst_45 = arith.constant dense<0.000000e+00> : vector<14x32xf32>
      %60 = tpu.matmul %57, %59, %cst_45 {dimension_numbers = #tpu.dot_dimension_numbers<[1], [0], [0], [1], [0, 0, 1, 1], [], []>} : vector<14x16xf32>, vector<16x32xf32>, vector<14x32xf32> -> vector<14x32xf32>
      %61 = arith.addf %53, %60 : vector<14x32xf32>
      %c1_i32_46 = arith.constant 1 : i32
      %62 = arith.addi %20, %c1_i32_46 : i32
      %63 = arith.index_cast %62 : i32 to index
      %c0_47 = arith.constant 0 : index
      %c0_48 = arith.constant 0 : index
      %64 = vector.load %arg5[%63, %c0_47, %c0_48] : memref<18x18x16xf32, #tpu.memory_space<vmem>>, vector<1x14x16xf32>
      %65 = vector.shape_cast %64 : vector<1x14x16xf32> to vector<14x16xf32>
      %c5 = arith.constant 5 : index
      %c0_49 = arith.constant 0 : index
      %c0_50 = arith.constant 0 : index
      %66 = vector.load %arg2[%c5, %c0_49, %c0_50] : memref<25x16x32xf32, #tpu.memory_space<vmem>>, vector<1x16x32xf32>
      %67 = vector.shape_cast %66 : vector<1x16x32xf32> to vector<16x32xf32>
      %cst_51 = arith.constant dense<0.000000e+00> : vector<14x32xf32>
      %68 = tpu.matmul %65, %67, %cst_51 {dimension_numbers = #tpu.dot_dimension_numbers<[1], [0], [0], [1], [0, 0, 1, 1], [], []>} : vector<14x16xf32>, vector<16x32xf32>, vector<14x32xf32> -> vector<14x32xf32>
      %69 = arith.addf %61, %68 : vector<14x32xf32>
      %c1_i32_52 = arith.constant 1 : i32
      %70 = arith.addi %20, %c1_i32_52 : i32
      %71 = arith.index_cast %70 : i32 to index
      %c1_53 = arith.constant 1 : index
      %c0_54 = arith.constant 0 : index
      %72 = vector.load %arg5[%71, %c1_53, %c0_54] : memref<18x18x16xf32, #tpu.memory_space<vmem>>, vector<1x14x16xf32>
      %73 = vector.shape_cast %72 : vector<1x14x16xf32> to vector<14x16xf32>
      %c6 = arith.constant 6 : index
      %c0_55 = arith.constant 0 : index
      %c0_56 = arith.constant 0 : index
      %74 = vector.load %arg2[%c6, %c0_55, %c0_56] : memref<25x16x32xf32, #tpu.memory_space<vmem>>, vector<1x16x32xf32>
      %75 = vector.shape_cast %74 : vector<1x16x32xf32> to vector<16x32xf32>
      %cst_57 = arith.constant dense<0.000000e+00> : vector<14x32xf32>
      %76 = tpu.matmul %73, %75, %cst_57 {dimension_numbers = #tpu.dot_dimension_numbers<[1], [0], [0], [1], [0, 0, 1, 1], [], []>} : vector<14x16xf32>, vector<16x32xf32>, vector<14x32xf32> -> vector<14x32xf32>
      %77 = arith.addf %69, %76 : vector<14x32xf32>
      %c1_i32_58 = arith.constant 1 : i32
      %78 = arith.addi %20, %c1_i32_58 : i32
      %79 = arith.index_cast %78 : i32 to index
      %c2_59 = arith.constant 2 : index
      %c0_60 = arith.constant 0 : index
      %80 = vector.load %arg5[%79, %c2_59, %c0_60] : memref<18x18x16xf32, #tpu.memory_space<vmem>>, vector<1x14x16xf32>
      %81 = vector.shape_cast %80 : vector<1x14x16xf32> to vector<14x16xf32>
      %c7 = arith.constant 7 : index
      %c0_61 = arith.constant 0 : index
      %c0_62 = arith.constant 0 : index
      %82 = vector.load %arg2[%c7, %c0_61, %c0_62] : memref<25x16x32xf32, #tpu.memory_space<vmem>>, vector<1x16x32xf32>
      %83 = vector.shape_cast %82 : vector<1x16x32xf32> to vector<16x32xf32>
      %cst_63 = arith.constant dense<0.000000e+00> : vector<14x32xf32>
      %84 = tpu.matmul %81, %83, %cst_63 {dimension_numbers = #tpu.dot_dimension_numbers<[1], [0], [0], [1], [0, 0, 1, 1], [], []>} : vector<14x16xf32>, vector<16x32xf32>, vector<14x32xf32> -> vector<14x32xf32>
      %85 = arith.addf %77, %84 : vector<14x32xf32>
      %c1_i32_64 = arith.constant 1 : i32
      %86 = arith.addi %20, %c1_i32_64 : i32
      %87 = arith.index_cast %86 : i32 to index
      %c3_65 = arith.constant 3 : index
      %c0_66 = arith.constant 0 : index
      %88 = vector.load %arg5[%87, %c3_65, %c0_66] : memref<18x18x16xf32, #tpu.memory_space<vmem>>, vector<1x14x16xf32>
      %89 = vector.shape_cast %88 : vector<1x14x16xf32> to vector<14x16xf32>
      %c8 = arith.constant 8 : index
      %c0_67 = arith.constant 0 : index
      %c0_68 = arith.constant 0 : index
      %90 = vector.load %arg2[%c8, %c0_67, %c0_68] : memref<25x16x32xf32, #tpu.memory_space<vmem>>, vector<1x16x32xf32>
      %91 = vector.shape_cast %90 : vector<1x16x32xf32> to vector<16x32xf32>
      %cst_69 = arith.constant dense<0.000000e+00> : vector<14x32xf32>
      %92 = tpu.matmul %89, %91, %cst_69 {dimension_numbers = #tpu.dot_dimension_numbers<[1], [0], [0], [1], [0, 0, 1, 1], [], []>} : vector<14x16xf32>, vector<16x32xf32>, vector<14x32xf32> -> vector<14x32xf32>
      %93 = arith.addf %85, %92 : vector<14x32xf32>
      %c1_i32_70 = arith.constant 1 : i32
      %94 = arith.addi %20, %c1_i32_70 : i32
      %95 = arith.index_cast %94 : i32 to index
      %c4_71 = arith.constant 4 : index
      %c0_72 = arith.constant 0 : index
      %96 = vector.load %arg5[%95, %c4_71, %c0_72] : memref<18x18x16xf32, #tpu.memory_space<vmem>>, vector<1x14x16xf32>
      %97 = vector.shape_cast %96 : vector<1x14x16xf32> to vector<14x16xf32>
      %c9 = arith.constant 9 : index
      %c0_73 = arith.constant 0 : index
      %c0_74 = arith.constant 0 : index
      %98 = vector.load %arg2[%c9, %c0_73, %c0_74] : memref<25x16x32xf32, #tpu.memory_space<vmem>>, vector<1x16x32xf32>
      %99 = vector.shape_cast %98 : vector<1x16x32xf32> to vector<16x32xf32>
      %cst_75 = arith.constant dense<0.000000e+00> : vector<14x32xf32>
      %100 = tpu.matmul %97, %99, %cst_75 {dimension_numbers = #tpu.dot_dimension_numbers<[1], [0], [0], [1], [0, 0, 1, 1], [], []>} : vector<14x16xf32>, vector<16x32xf32>, vector<14x32xf32> -> vector<14x32xf32>
      %101 = arith.addf %93, %100 : vector<14x32xf32>
      %c2_i32_76 = arith.constant 2 : i32
      %102 = arith.addi %20, %c2_i32_76 : i32
      %103 = arith.index_cast %102 : i32 to index
      %c0_77 = arith.constant 0 : index
      %c0_78 = arith.constant 0 : index
      %104 = vector.load %arg5[%103, %c0_77, %c0_78] : memref<18x18x16xf32, #tpu.memory_space<vmem>>, vector<1x14x16xf32>
      %105 = vector.shape_cast %104 : vector<1x14x16xf32> to vector<14x16xf32>
      %c10 = arith.constant 10 : index
      %c0_79 = arith.constant 0 : index
      %c0_80 = arith.constant 0 : index
      %106 = vector.load %arg2[%c10, %c0_79, %c0_80] : memref<25x16x32xf32, #tpu.memory_space<vmem>>, vector<1x16x32xf32>
      %107 = vector.shape_cast %106 : vector<1x16x32xf32> to vector<16x32xf32>
      %cst_81 = arith.constant dense<0.000000e+00> : vector<14x32xf32>
      %108 = tpu.matmul %105, %107, %cst_81 {dimension_numbers = #tpu.dot_dimension_numbers<[1], [0], [0], [1], [0, 0, 1, 1], [], []>} : vector<14x16xf32>, vector<16x32xf32>, vector<14x32xf32> -> vector<14x32xf32>
      %109 = arith.addf %101, %108 : vector<14x32xf32>
      %c2_i32_82 = arith.constant 2 : i32
      %110 = arith.addi %20, %c2_i32_82 : i32
      %111 = arith.index_cast %110 : i32 to index
      %c1_83 = arith.constant 1 : index
      %c0_84 = arith.constant 0 : index
      %112 = vector.load %arg5[%111, %c1_83, %c0_84] : memref<18x18x16xf32, #tpu.memory_space<vmem>>, vector<1x14x16xf32>
      %113 = vector.shape_cast %112 : vector<1x14x16xf32> to vector<14x16xf32>
      %c11 = arith.constant 11 : index
      %c0_85 = arith.constant 0 : index
      %c0_86 = arith.constant 0 : index
      %114 = vector.load %arg2[%c11, %c0_85, %c0_86] : memref<25x16x32xf32, #tpu.memory_space<vmem>>, vector<1x16x32xf32>
      %115 = vector.shape_cast %114 : vector<1x16x32xf32> to vector<16x32xf32>
      %cst_87 = arith.constant dense<0.000000e+00> : vector<14x32xf32>
      %116 = tpu.matmul %113, %115, %cst_87 {dimension_numbers = #tpu.dot_dimension_numbers<[1], [0], [0], [1], [0, 0, 1, 1], [], []>} : vector<14x16xf32>, vector<16x32xf32>, vector<14x32xf32> -> vector<14x32xf32>
      %117 = arith.addf %109, %116 : vector<14x32xf32>
      %c2_i32_88 = arith.constant 2 : i32
      %118 = arith.addi %20, %c2_i32_88 : i32
      %119 = arith.index_cast %118 : i32 to index
      %c2_89 = arith.constant 2 : index
      %c0_90 = arith.constant 0 : index
      %120 = vector.load %arg5[%119, %c2_89, %c0_90] : memref<18x18x16xf32, #tpu.memory_space<vmem>>, vector<1x14x16xf32>
      %121 = vector.shape_cast %120 : vector<1x14x16xf32> to vector<14x16xf32>
      %c12 = arith.constant 12 : index
      %c0_91 = arith.constant 0 : index
      %c0_92 = arith.constant 0 : index
      %122 = vector.load %arg2[%c12, %c0_91, %c0_92] : memref<25x16x32xf32, #tpu.memory_space<vmem>>, vector<1x16x32xf32>
      %123 = vector.shape_cast %122 : vector<1x16x32xf32> to vector<16x32xf32>
      %cst_93 = arith.constant dense<0.000000e+00> : vector<14x32xf32>
      %124 = tpu.matmul %121, %123, %cst_93 {dimension_numbers = #tpu.dot_dimension_numbers<[1], [0], [0], [1], [0, 0, 1, 1], [], []>} : vector<14x16xf32>, vector<16x32xf32>, vector<14x32xf32> -> vector<14x32xf32>
      %125 = arith.addf %117, %124 : vector<14x32xf32>
      %c2_i32_94 = arith.constant 2 : i32
      %126 = arith.addi %20, %c2_i32_94 : i32
      %127 = arith.index_cast %126 : i32 to index
      %c3_95 = arith.constant 3 : index
      %c0_96 = arith.constant 0 : index
      %128 = vector.load %arg5[%127, %c3_95, %c0_96] : memref<18x18x16xf32, #tpu.memory_space<vmem>>, vector<1x14x16xf32>
      %129 = vector.shape_cast %128 : vector<1x14x16xf32> to vector<14x16xf32>
      %c13 = arith.constant 13 : index
      %c0_97 = arith.constant 0 : index
      %c0_98 = arith.constant 0 : index
      %130 = vector.load %arg2[%c13, %c0_97, %c0_98] : memref<25x16x32xf32, #tpu.memory_space<vmem>>, vector<1x16x32xf32>
      %131 = vector.shape_cast %130 : vector<1x16x32xf32> to vector<16x32xf32>
      %cst_99 = arith.constant dense<0.000000e+00> : vector<14x32xf32>
      %132 = tpu.matmul %129, %131, %cst_99 {dimension_numbers = #tpu.dot_dimension_numbers<[1], [0], [0], [1], [0, 0, 1, 1], [], []>} : vector<14x16xf32>, vector<16x32xf32>, vector<14x32xf32> -> vector<14x32xf32>
      %133 = arith.addf %125, %132 : vector<14x32xf32>
      %c2_i32_100 = arith.constant 2 : i32
      %134 = arith.addi %20, %c2_i32_100 : i32
      %135 = arith.index_cast %134 : i32 to index
      %c4_101 = arith.constant 4 : index
      %c0_102 = arith.constant 0 : index
      %136 = vector.load %arg5[%135, %c4_101, %c0_102] : memref<18x18x16xf32, #tpu.memory_space<vmem>>, vector<1x14x16xf32>
      %137 = vector.shape_cast %136 : vector<1x14x16xf32> to vector<14x16xf32>
      %c14 = arith.constant 14 : index
      %c0_103 = arith.constant 0 : index
      %c0_104 = arith.constant 0 : index
      %138 = vector.load %arg2[%c14, %c0_103, %c0_104] : memref<25x16x32xf32, #tpu.memory_space<vmem>>, vector<1x16x32xf32>
      %139 = vector.shape_cast %138 : vector<1x16x32xf32> to vector<16x32xf32>
      %cst_105 = arith.constant dense<0.000000e+00> : vector<14x32xf32>
      %140 = tpu.matmul %137, %139, %cst_105 {dimension_numbers = #tpu.dot_dimension_numbers<[1], [0], [0], [1], [0, 0, 1, 1], [], []>} : vector<14x16xf32>, vector<16x32xf32>, vector<14x32xf32> -> vector<14x32xf32>
      %141 = arith.addf %133, %140 : vector<14x32xf32>
      %c3_i32 = arith.constant 3 : i32
      %142 = arith.addi %20, %c3_i32 : i32
      %143 = arith.index_cast %142 : i32 to index
      %c0_106 = arith.constant 0 : index
      %c0_107 = arith.constant 0 : index
      %144 = vector.load %arg5[%143, %c0_106, %c0_107] : memref<18x18x16xf32, #tpu.memory_space<vmem>>, vector<1x14x16xf32>
      %145 = vector.shape_cast %144 : vector<1x14x16xf32> to vector<14x16xf32>
      %c15 = arith.constant 15 : index
      %c0_108 = arith.constant 0 : index
      %c0_109 = arith.constant 0 : index
      %146 = vector.load %arg2[%c15, %c0_108, %c0_109] : memref<25x16x32xf32, #tpu.memory_space<vmem>>, vector<1x16x32xf32>
      %147 = vector.shape_cast %146 : vector<1x16x32xf32> to vector<16x32xf32>
      %cst_110 = arith.constant dense<0.000000e+00> : vector<14x32xf32>
      %148 = tpu.matmul %145, %147, %cst_110 {dimension_numbers = #tpu.dot_dimension_numbers<[1], [0], [0], [1], [0, 0, 1, 1], [], []>} : vector<14x16xf32>, vector<16x32xf32>, vector<14x32xf32> -> vector<14x32xf32>
      %149 = arith.addf %141, %148 : vector<14x32xf32>
      %c3_i32_111 = arith.constant 3 : i32
      %150 = arith.addi %20, %c3_i32_111 : i32
      %151 = arith.index_cast %150 : i32 to index
      %c1_112 = arith.constant 1 : index
      %c0_113 = arith.constant 0 : index
      %152 = vector.load %arg5[%151, %c1_112, %c0_113] : memref<18x18x16xf32, #tpu.memory_space<vmem>>, vector<1x14x16xf32>
      %153 = vector.shape_cast %152 : vector<1x14x16xf32> to vector<14x16xf32>
      %c16 = arith.constant 16 : index
      %c0_114 = arith.constant 0 : index
      %c0_115 = arith.constant 0 : index
      %154 = vector.load %arg2[%c16, %c0_114, %c0_115] : memref<25x16x32xf32, #tpu.memory_space<vmem>>, vector<1x16x32xf32>
      %155 = vector.shape_cast %154 : vector<1x16x32xf32> to vector<16x32xf32>
      %cst_116 = arith.constant dense<0.000000e+00> : vector<14x32xf32>
      %156 = tpu.matmul %153, %155, %cst_116 {dimension_numbers = #tpu.dot_dimension_numbers<[1], [0], [0], [1], [0, 0, 1, 1], [], []>} : vector<14x16xf32>, vector<16x32xf32>, vector<14x32xf32> -> vector<14x32xf32>
      %157 = arith.addf %149, %156 : vector<14x32xf32>
      %c3_i32_117 = arith.constant 3 : i32
      %158 = arith.addi %20, %c3_i32_117 : i32
      %159 = arith.index_cast %158 : i32 to index
      %c2_118 = arith.constant 2 : index
      %c0_119 = arith.constant 0 : index
      %160 = vector.load %arg5[%159, %c2_118, %c0_119] : memref<18x18x16xf32, #tpu.memory_space<vmem>>, vector<1x14x16xf32>
      %161 = vector.shape_cast %160 : vector<1x14x16xf32> to vector<14x16xf32>
      %c17 = arith.constant 17 : index
      %c0_120 = arith.constant 0 : index
      %c0_121 = arith.constant 0 : index
      %162 = vector.load %arg2[%c17, %c0_120, %c0_121] : memref<25x16x32xf32, #tpu.memory_space<vmem>>, vector<1x16x32xf32>
      %163 = vector.shape_cast %162 : vector<1x16x32xf32> to vector<16x32xf32>
      %cst_122 = arith.constant dense<0.000000e+00> : vector<14x32xf32>
      %164 = tpu.matmul %161, %163, %cst_122 {dimension_numbers = #tpu.dot_dimension_numbers<[1], [0], [0], [1], [0, 0, 1, 1], [], []>} : vector<14x16xf32>, vector<16x32xf32>, vector<14x32xf32> -> vector<14x32xf32>
      %165 = arith.addf %157, %164 : vector<14x32xf32>
      %c3_i32_123 = arith.constant 3 : i32
      %166 = arith.addi %20, %c3_i32_123 : i32
      %167 = arith.index_cast %166 : i32 to index
      %c3_124 = arith.constant 3 : index
      %c0_125 = arith.constant 0 : index
      %168 = vector.load %arg5[%167, %c3_124, %c0_125] : memref<18x18x16xf32, #tpu.memory_space<vmem>>, vector<1x14x16xf32>
      %169 = vector.shape_cast %168 : vector<1x14x16xf32> to vector<14x16xf32>
      %c18 = arith.constant 18 : index
      %c0_126 = arith.constant 0 : index
      %c0_127 = arith.constant 0 : index
      %170 = vector.load %arg2[%c18, %c0_126, %c0_127] : memref<25x16x32xf32, #tpu.memory_space<vmem>>, vector<1x16x32xf32>
      %171 = vector.shape_cast %170 : vector<1x16x32xf32> to vector<16x32xf32>
      %cst_128 = arith.constant dense<0.000000e+00> : vector<14x32xf32>
      %172 = tpu.matmul %169, %171, %cst_128 {dimension_numbers = #tpu.dot_dimension_numbers<[1], [0], [0], [1], [0, 0, 1, 1], [], []>} : vector<14x16xf32>, vector<16x32xf32>, vector<14x32xf32> -> vector<14x32xf32>
      %173 = arith.addf %165, %172 : vector<14x32xf32>
      %c3_i32_129 = arith.constant 3 : i32
      %174 = arith.addi %20, %c3_i32_129 : i32
      %175 = arith.index_cast %174 : i32 to index
      %c4_130 = arith.constant 4 : index
      %c0_131 = arith.constant 0 : index
      %176 = vector.load %arg5[%175, %c4_130, %c0_131] : memref<18x18x16xf32, #tpu.memory_space<vmem>>, vector<1x14x16xf32>
      %177 = vector.shape_cast %176 : vector<1x14x16xf32> to vector<14x16xf32>
      %c19 = arith.constant 19 : index
      %c0_132 = arith.constant 0 : index
      %c0_133 = arith.constant 0 : index
      %178 = vector.load %arg2[%c19, %c0_132, %c0_133] : memref<25x16x32xf32, #tpu.memory_space<vmem>>, vector<1x16x32xf32>
      %179 = vector.shape_cast %178 : vector<1x16x32xf32> to vector<16x32xf32>
      %cst_134 = arith.constant dense<0.000000e+00> : vector<14x32xf32>
      %180 = tpu.matmul %177, %179, %cst_134 {dimension_numbers = #tpu.dot_dimension_numbers<[1], [0], [0], [1], [0, 0, 1, 1], [], []>} : vector<14x16xf32>, vector<16x32xf32>, vector<14x32xf32> -> vector<14x32xf32>
      %181 = arith.addf %173, %180 : vector<14x32xf32>
      %c4_i32 = arith.constant 4 : i32
      %182 = arith.addi %20, %c4_i32 : i32
      %183 = arith.index_cast %182 : i32 to index
      %c0_135 = arith.constant 0 : index
      %c0_136 = arith.constant 0 : index
      %184 = vector.load %arg5[%183, %c0_135, %c0_136] : memref<18x18x16xf32, #tpu.memory_space<vmem>>, vector<1x14x16xf32>
      %185 = vector.shape_cast %184 : vector<1x14x16xf32> to vector<14x16xf32>
      %c20 = arith.constant 20 : index
      %c0_137 = arith.constant 0 : index
      %c0_138 = arith.constant 0 : index
      %186 = vector.load %arg2[%c20, %c0_137, %c0_138] : memref<25x16x32xf32, #tpu.memory_space<vmem>>, vector<1x16x32xf32>
      %187 = vector.shape_cast %186 : vector<1x16x32xf32> to vector<16x32xf32>
      %cst_139 = arith.constant dense<0.000000e+00> : vector<14x32xf32>
      %188 = tpu.matmul %185, %187, %cst_139 {dimension_numbers = #tpu.dot_dimension_numbers<[1], [0], [0], [1], [0, 0, 1, 1], [], []>} : vector<14x16xf32>, vector<16x32xf32>, vector<14x32xf32> -> vector<14x32xf32>
      %189 = arith.addf %181, %188 : vector<14x32xf32>
      %c4_i32_140 = arith.constant 4 : i32
      %190 = arith.addi %20, %c4_i32_140 : i32
      %191 = arith.index_cast %190 : i32 to index
      %c1_141 = arith.constant 1 : index
      %c0_142 = arith.constant 0 : index
      %192 = vector.load %arg5[%191, %c1_141, %c0_142] : memref<18x18x16xf32, #tpu.memory_space<vmem>>, vector<1x14x16xf32>
      %193 = vector.shape_cast %192 : vector<1x14x16xf32> to vector<14x16xf32>
      %c21 = arith.constant 21 : index
      %c0_143 = arith.constant 0 : index
      %c0_144 = arith.constant 0 : index
      %194 = vector.load %arg2[%c21, %c0_143, %c0_144] : memref<25x16x32xf32, #tpu.memory_space<vmem>>, vector<1x16x32xf32>
      %195 = vector.shape_cast %194 : vector<1x16x32xf32> to vector<16x32xf32>
      %cst_145 = arith.constant dense<0.000000e+00> : vector<14x32xf32>
      %196 = tpu.matmul %193, %195, %cst_145 {dimension_numbers = #tpu.dot_dimension_numbers<[1], [0], [0], [1], [0, 0, 1, 1], [], []>} : vector<14x16xf32>, vector<16x32xf32>, vector<14x32xf32> -> vector<14x32xf32>
      %197 = arith.addf %189, %196 : vector<14x32xf32>
      %c4_i32_146 = arith.constant 4 : i32
      %198 = arith.addi %20, %c4_i32_146 : i32
      %199 = arith.index_cast %198 : i32 to index
      %c2_147 = arith.constant 2 : index
      %c0_148 = arith.constant 0 : index
      %200 = vector.load %arg5[%199, %c2_147, %c0_148] : memref<18x18x16xf32, #tpu.memory_space<vmem>>, vector<1x14x16xf32>
      %201 = vector.shape_cast %200 : vector<1x14x16xf32> to vector<14x16xf32>
      %c22 = arith.constant 22 : index
      %c0_149 = arith.constant 0 : index
      %c0_150 = arith.constant 0 : index
      %202 = vector.load %arg2[%c22, %c0_149, %c0_150] : memref<25x16x32xf32, #tpu.memory_space<vmem>>, vector<1x16x32xf32>
      %203 = vector.shape_cast %202 : vector<1x16x32xf32> to vector<16x32xf32>
      %cst_151 = arith.constant dense<0.000000e+00> : vector<14x32xf32>
      %204 = tpu.matmul %201, %203, %cst_151 {dimension_numbers = #tpu.dot_dimension_numbers<[1], [0], [0], [1], [0, 0, 1, 1], [], []>} : vector<14x16xf32>, vector<16x32xf32>, vector<14x32xf32> -> vector<14x32xf32>
      %205 = arith.addf %197, %204 : vector<14x32xf32>
      %c4_i32_152 = arith.constant 4 : i32
      %206 = arith.addi %20, %c4_i32_152 : i32
      %207 = arith.index_cast %206 : i32 to index
      %c3_153 = arith.constant 3 : index
      %c0_154 = arith.constant 0 : index
      %208 = vector.load %arg5[%207, %c3_153, %c0_154] : memref<18x18x16xf32, #tpu.memory_space<vmem>>, vector<1x14x16xf32>
      %209 = vector.shape_cast %208 : vector<1x14x16xf32> to vector<14x16xf32>
      %c23 = arith.constant 23 : index
      %c0_155 = arith.constant 0 : index
      %c0_156 = arith.constant 0 : index
      %210 = vector.load %arg2[%c23, %c0_155, %c0_156] : memref<25x16x32xf32, #tpu.memory_space<vmem>>, vector<1x16x32xf32>
      %211 = vector.shape_cast %210 : vector<1x16x32xf32> to vector<16x32xf32>
      %cst_157 = arith.constant dense<0.000000e+00> : vector<14x32xf32>
      %212 = tpu.matmul %209, %211, %cst_157 {dimension_numbers = #tpu.dot_dimension_numbers<[1], [0], [0], [1], [0, 0, 1, 1], [], []>} : vector<14x16xf32>, vector<16x32xf32>, vector<14x32xf32> -> vector<14x32xf32>
      %213 = arith.addf %205, %212 : vector<14x32xf32>
      %c4_i32_158 = arith.constant 4 : i32
      %214 = arith.addi %20, %c4_i32_158 : i32
      %215 = arith.index_cast %214 : i32 to index
      %c4_159 = arith.constant 4 : index
      %c0_160 = arith.constant 0 : index
      %216 = vector.load %arg5[%215, %c4_159, %c0_160] : memref<18x18x16xf32, #tpu.memory_space<vmem>>, vector<1x14x16xf32>
      %217 = vector.shape_cast %216 : vector<1x14x16xf32> to vector<14x16xf32>
      %c24 = arith.constant 24 : index
      %c0_161 = arith.constant 0 : index
      %c0_162 = arith.constant 0 : index
      %218 = vector.load %arg2[%c24, %c0_161, %c0_162] : memref<25x16x32xf32, #tpu.memory_space<vmem>>, vector<1x16x32xf32>
      %219 = vector.shape_cast %218 : vector<1x16x32xf32> to vector<16x32xf32>
      %cst_163 = arith.constant dense<0.000000e+00> : vector<14x32xf32>
      %220 = tpu.matmul %217, %219, %cst_163 {dimension_numbers = #tpu.dot_dimension_numbers<[1], [0], [0], [1], [0, 0, 1, 1], [], []>} : vector<14x16xf32>, vector<16x32xf32>, vector<14x32xf32> -> vector<14x32xf32>
      %221 = arith.addf %213, %220 : vector<14x32xf32>
      %222 = vector.broadcast %4 : vector<1x32xf32> to vector<14x32xf32>
      %223 = arith.addf %221, %222 : vector<14x32xf32>
      %cst_164 = arith.constant 0.000000e+00 : f32
      %224 = vector.broadcast %cst_164 : f32 to vector<14x32xf32>
      %225 = arith.maximumf %223, %224 : vector<14x32xf32>
      %c2_i32_165 = arith.constant 2 : i32
      %226 = arith.muli %c2_i32_165, %arg6 : i32
      %c1_i32_166 = arith.constant 1 : i32
      %227 = arith.addi %226, %c1_i32_166 : i32
      %cst_167 = arith.constant 0.000000e+00 : f32
      %228 = vector.broadcast %cst_167 : f32 to vector<14x32xf32>
      %c0_i32_168 = arith.constant 0 : i32
      %229 = arith.addi %227, %c0_i32_168 : i32
      %230 = arith.index_cast %229 : i32 to index
      %c0_169 = arith.constant 0 : index
      %c0_170 = arith.constant 0 : index
      %231 = vector.load %arg5[%230, %c0_169, %c0_170] : memref<18x18x16xf32, #tpu.memory_space<vmem>>, vector<1x14x16xf32>
      %232 = vector.shape_cast %231 : vector<1x14x16xf32> to vector<14x16xf32>
      %c0_171 = arith.constant 0 : index
      %c0_172 = arith.constant 0 : index
      %c0_173 = arith.constant 0 : index
      %233 = vector.load %arg2[%c0_171, %c0_172, %c0_173] : memref<25x16x32xf32, #tpu.memory_space<vmem>>, vector<1x16x32xf32>
      %234 = vector.shape_cast %233 : vector<1x16x32xf32> to vector<16x32xf32>
      %cst_174 = arith.constant dense<0.000000e+00> : vector<14x32xf32>
      %235 = tpu.matmul %232, %234, %cst_174 {dimension_numbers = #tpu.dot_dimension_numbers<[1], [0], [0], [1], [0, 0, 1, 1], [], []>} : vector<14x16xf32>, vector<16x32xf32>, vector<14x32xf32> -> vector<14x32xf32>
      %236 = arith.addf %228, %235 : vector<14x32xf32>
      %c0_i32_175 = arith.constant 0 : i32
      %237 = arith.addi %227, %c0_i32_175 : i32
      %238 = arith.index_cast %237 : i32 to index
      %c1_176 = arith.constant 1 : index
      %c0_177 = arith.constant 0 : index
      %239 = vector.load %arg5[%238, %c1_176, %c0_177] : memref<18x18x16xf32, #tpu.memory_space<vmem>>, vector<1x14x16xf32>
      %240 = vector.shape_cast %239 : vector<1x14x16xf32> to vector<14x16xf32>
      %c1_178 = arith.constant 1 : index
      %c0_179 = arith.constant 0 : index
      %c0_180 = arith.constant 0 : index
      %241 = vector.load %arg2[%c1_178, %c0_179, %c0_180] : memref<25x16x32xf32, #tpu.memory_space<vmem>>, vector<1x16x32xf32>
      %242 = vector.shape_cast %241 : vector<1x16x32xf32> to vector<16x32xf32>
      %cst_181 = arith.constant dense<0.000000e+00> : vector<14x32xf32>
      %243 = tpu.matmul %240, %242, %cst_181 {dimension_numbers = #tpu.dot_dimension_numbers<[1], [0], [0], [1], [0, 0, 1, 1], [], []>} : vector<14x16xf32>, vector<16x32xf32>, vector<14x32xf32> -> vector<14x32xf32>
      %244 = arith.addf %236, %243 : vector<14x32xf32>
      %c0_i32_182 = arith.constant 0 : i32
      %245 = arith.addi %227, %c0_i32_182 : i32
      %246 = arith.index_cast %245 : i32 to index
      %c2_183 = arith.constant 2 : index
      %c0_184 = arith.constant 0 : index
      %247 = vector.load %arg5[%246, %c2_183, %c0_184] : memref<18x18x16xf32, #tpu.memory_space<vmem>>, vector<1x14x16xf32>
      %248 = vector.shape_cast %247 : vector<1x14x16xf32> to vector<14x16xf32>
      %c2_185 = arith.constant 2 : index
      %c0_186 = arith.constant 0 : index
      %c0_187 = arith.constant 0 : index
      %249 = vector.load %arg2[%c2_185, %c0_186, %c0_187] : memref<25x16x32xf32, #tpu.memory_space<vmem>>, vector<1x16x32xf32>
      %250 = vector.shape_cast %249 : vector<1x16x32xf32> to vector<16x32xf32>
      %cst_188 = arith.constant dense<0.000000e+00> : vector<14x32xf32>
      %251 = tpu.matmul %248, %250, %cst_188 {dimension_numbers = #tpu.dot_dimension_numbers<[1], [0], [0], [1], [0, 0, 1, 1], [], []>} : vector<14x16xf32>, vector<16x32xf32>, vector<14x32xf32> -> vector<14x32xf32>
      %252 = arith.addf %244, %251 : vector<14x32xf32>
      %c0_i32_189 = arith.constant 0 : i32
      %253 = arith.addi %227, %c0_i32_189 : i32
      %254 = arith.index_cast %253 : i32 to index
      %c3_190 = arith.constant 3 : index
      %c0_191 = arith.constant 0 : index
      %255 = vector.load %arg5[%254, %c3_190, %c0_191] : memref<18x18x16xf32, #tpu.memory_space<vmem>>, vector<1x14x16xf32>
      %256 = vector.shape_cast %255 : vector<1x14x16xf32> to vector<14x16xf32>
      %c3_192 = arith.constant 3 : index
      %c0_193 = arith.constant 0 : index
      %c0_194 = arith.constant 0 : index
      %257 = vector.load %arg2[%c3_192, %c0_193, %c0_194] : memref<25x16x32xf32, #tpu.memory_space<vmem>>, vector<1x16x32xf32>
      %258 = vector.shape_cast %257 : vector<1x16x32xf32> to vector<16x32xf32>
      %cst_195 = arith.constant dense<0.000000e+00> : vector<14x32xf32>
      %259 = tpu.matmul %256, %258, %cst_195 {dimension_numbers = #tpu.dot_dimension_numbers<[1], [0], [0], [1], [0, 0, 1, 1], [], []>} : vector<14x16xf32>, vector<16x32xf32>, vector<14x32xf32> -> vector<14x32xf32>
      %260 = arith.addf %252, %259 : vector<14x32xf32>
      %c0_i32_196 = arith.constant 0 : i32
      %261 = arith.addi %227, %c0_i32_196 : i32
      %262 = arith.index_cast %261 : i32 to index
      %c4_197 = arith.constant 4 : index
      %c0_198 = arith.constant 0 : index
      %263 = vector.load %arg5[%262, %c4_197, %c0_198] : memref<18x18x16xf32, #tpu.memory_space<vmem>>, vector<1x14x16xf32>
      %264 = vector.shape_cast %263 : vector<1x14x16xf32> to vector<14x16xf32>
      %c4_199 = arith.constant 4 : index
      %c0_200 = arith.constant 0 : index
      %c0_201 = arith.constant 0 : index
      %265 = vector.load %arg2[%c4_199, %c0_200, %c0_201] : memref<25x16x32xf32, #tpu.memory_space<vmem>>, vector<1x16x32xf32>
      %266 = vector.shape_cast %265 : vector<1x16x32xf32> to vector<16x32xf32>
      %cst_202 = arith.constant dense<0.000000e+00> : vector<14x32xf32>
      %267 = tpu.matmul %264, %266, %cst_202 {dimension_numbers = #tpu.dot_dimension_numbers<[1], [0], [0], [1], [0, 0, 1, 1], [], []>} : vector<14x16xf32>, vector<16x32xf32>, vector<14x32xf32> -> vector<14x32xf32>
      %268 = arith.addf %260, %267 : vector<14x32xf32>
      %c1_i32_203 = arith.constant 1 : i32
      %269 = arith.addi %227, %c1_i32_203 : i32
      %270 = arith.index_cast %269 : i32 to index
      %c0_204 = arith.constant 0 : index
      %c0_205 = arith.constant 0 : index
      %271 = vector.load %arg5[%270, %c0_204, %c0_205] : memref<18x18x16xf32, #tpu.memory_space<vmem>>, vector<1x14x16xf32>
      %272 = vector.shape_cast %271 : vector<1x14x16xf32> to vector<14x16xf32>
      %c5_206 = arith.constant 5 : index
      %c0_207 = arith.constant 0 : index
      %c0_208 = arith.constant 0 : index
      %273 = vector.load %arg2[%c5_206, %c0_207, %c0_208] : memref<25x16x32xf32, #tpu.memory_space<vmem>>, vector<1x16x32xf32>
      %274 = vector.shape_cast %273 : vector<1x16x32xf32> to vector<16x32xf32>
      %cst_209 = arith.constant dense<0.000000e+00> : vector<14x32xf32>
      %275 = tpu.matmul %272, %274, %cst_209 {dimension_numbers = #tpu.dot_dimension_numbers<[1], [0], [0], [1], [0, 0, 1, 1], [], []>} : vector<14x16xf32>, vector<16x32xf32>, vector<14x32xf32> -> vector<14x32xf32>
      %276 = arith.addf %268, %275 : vector<14x32xf32>
      %c1_i32_210 = arith.constant 1 : i32
      %277 = arith.addi %227, %c1_i32_210 : i32
      %278 = arith.index_cast %277 : i32 to index
      %c1_211 = arith.constant 1 : index
      %c0_212 = arith.constant 0 : index
      %279 = vector.load %arg5[%278, %c1_211, %c0_212] : memref<18x18x16xf32, #tpu.memory_space<vmem>>, vector<1x14x16xf32>
      %280 = vector.shape_cast %279 : vector<1x14x16xf32> to vector<14x16xf32>
      %c6_213 = arith.constant 6 : index
      %c0_214 = arith.constant 0 : index
      %c0_215 = arith.constant 0 : index
      %281 = vector.load %arg2[%c6_213, %c0_214, %c0_215] : memref<25x16x32xf32, #tpu.memory_space<vmem>>, vector<1x16x32xf32>
      %282 = vector.shape_cast %281 : vector<1x16x32xf32> to vector<16x32xf32>
      %cst_216 = arith.constant dense<0.000000e+00> : vector<14x32xf32>
      %283 = tpu.matmul %280, %282, %cst_216 {dimension_numbers = #tpu.dot_dimension_numbers<[1], [0], [0], [1], [0, 0, 1, 1], [], []>} : vector<14x16xf32>, vector<16x32xf32>, vector<14x32xf32> -> vector<14x32xf32>
      %284 = arith.addf %276, %283 : vector<14x32xf32>
      %c1_i32_217 = arith.constant 1 : i32
      %285 = arith.addi %227, %c1_i32_217 : i32
      %286 = arith.index_cast %285 : i32 to index
      %c2_218 = arith.constant 2 : index
      %c0_219 = arith.constant 0 : index
      %287 = vector.load %arg5[%286, %c2_218, %c0_219] : memref<18x18x16xf32, #tpu.memory_space<vmem>>, vector<1x14x16xf32>
      %288 = vector.shape_cast %287 : vector<1x14x16xf32> to vector<14x16xf32>
      %c7_220 = arith.constant 7 : index
      %c0_221 = arith.constant 0 : index
      %c0_222 = arith.constant 0 : index
      %289 = vector.load %arg2[%c7_220, %c0_221, %c0_222] : memref<25x16x32xf32, #tpu.memory_space<vmem>>, vector<1x16x32xf32>
      %290 = vector.shape_cast %289 : vector<1x16x32xf32> to vector<16x32xf32>
      %cst_223 = arith.constant dense<0.000000e+00> : vector<14x32xf32>
      %291 = tpu.matmul %288, %290, %cst_223 {dimension_numbers = #tpu.dot_dimension_numbers<[1], [0], [0], [1], [0, 0, 1, 1], [], []>} : vector<14x16xf32>, vector<16x32xf32>, vector<14x32xf32> -> vector<14x32xf32>
      %292 = arith.addf %284, %291 : vector<14x32xf32>
      %c1_i32_224 = arith.constant 1 : i32
      %293 = arith.addi %227, %c1_i32_224 : i32
      %294 = arith.index_cast %293 : i32 to index
      %c3_225 = arith.constant 3 : index
      %c0_226 = arith.constant 0 : index
      %295 = vector.load %arg5[%294, %c3_225, %c0_226] : memref<18x18x16xf32, #tpu.memory_space<vmem>>, vector<1x14x16xf32>
      %296 = vector.shape_cast %295 : vector<1x14x16xf32> to vector<14x16xf32>
      %c8_227 = arith.constant 8 : index
      %c0_228 = arith.constant 0 : index
      %c0_229 = arith.constant 0 : index
      %297 = vector.load %arg2[%c8_227, %c0_228, %c0_229] : memref<25x16x32xf32, #tpu.memory_space<vmem>>, vector<1x16x32xf32>
      %298 = vector.shape_cast %297 : vector<1x16x32xf32> to vector<16x32xf32>
      %cst_230 = arith.constant dense<0.000000e+00> : vector<14x32xf32>
      %299 = tpu.matmul %296, %298, %cst_230 {dimension_numbers = #tpu.dot_dimension_numbers<[1], [0], [0], [1], [0, 0, 1, 1], [], []>} : vector<14x16xf32>, vector<16x32xf32>, vector<14x32xf32> -> vector<14x32xf32>
      %300 = arith.addf %292, %299 : vector<14x32xf32>
      %c1_i32_231 = arith.constant 1 : i32
      %301 = arith.addi %227, %c1_i32_231 : i32
      %302 = arith.index_cast %301 : i32 to index
      %c4_232 = arith.constant 4 : index
      %c0_233 = arith.constant 0 : index
      %303 = vector.load %arg5[%302, %c4_232, %c0_233] : memref<18x18x16xf32, #tpu.memory_space<vmem>>, vector<1x14x16xf32>
      %304 = vector.shape_cast %303 : vector<1x14x16xf32> to vector<14x16xf32>
      %c9_234 = arith.constant 9 : index
      %c0_235 = arith.constant 0 : index
      %c0_236 = arith.constant 0 : index
      %305 = vector.load %arg2[%c9_234, %c0_235, %c0_236] : memref<25x16x32xf32, #tpu.memory_space<vmem>>, vector<1x16x32xf32>
      %306 = vector.shape_cast %305 : vector<1x16x32xf32> to vector<16x32xf32>
      %cst_237 = arith.constant dense<0.000000e+00> : vector<14x32xf32>
      %307 = tpu.matmul %304, %306, %cst_237 {dimension_numbers = #tpu.dot_dimension_numbers<[1], [0], [0], [1], [0, 0, 1, 1], [], []>} : vector<14x16xf32>, vector<16x32xf32>, vector<14x32xf32> -> vector<14x32xf32>
      %308 = arith.addf %300, %307 : vector<14x32xf32>
      %c2_i32_238 = arith.constant 2 : i32
      %309 = arith.addi %227, %c2_i32_238 : i32
      %310 = arith.index_cast %309 : i32 to index
      %c0_239 = arith.constant 0 : index
      %c0_240 = arith.constant 0 : index
      %311 = vector.load %arg5[%310, %c0_239, %c0_240] : memref<18x18x16xf32, #tpu.memory_space<vmem>>, vector<1x14x16xf32>
      %312 = vector.shape_cast %311 : vector<1x14x16xf32> to vector<14x16xf32>
      %c10_241 = arith.constant 10 : index
      %c0_242 = arith.constant 0 : index
      %c0_243 = arith.constant 0 : index
      %313 = vector.load %arg2[%c10_241, %c0_242, %c0_243] : memref<25x16x32xf32, #tpu.memory_space<vmem>>, vector<1x16x32xf32>
      %314 = vector.shape_cast %313 : vector<1x16x32xf32> to vector<16x32xf32>
      %cst_244 = arith.constant dense<0.000000e+00> : vector<14x32xf32>
      %315 = tpu.matmul %312, %314, %cst_244 {dimension_numbers = #tpu.dot_dimension_numbers<[1], [0], [0], [1], [0, 0, 1, 1], [], []>} : vector<14x16xf32>, vector<16x32xf32>, vector<14x32xf32> -> vector<14x32xf32>
      %316 = arith.addf %308, %315 : vector<14x32xf32>
      %c2_i32_245 = arith.constant 2 : i32
      %317 = arith.addi %227, %c2_i32_245 : i32
      %318 = arith.index_cast %317 : i32 to index
      %c1_246 = arith.constant 1 : index
      %c0_247 = arith.constant 0 : index
      %319 = vector.load %arg5[%318, %c1_246, %c0_247] : memref<18x18x16xf32, #tpu.memory_space<vmem>>, vector<1x14x16xf32>
      %320 = vector.shape_cast %319 : vector<1x14x16xf32> to vector<14x16xf32>
      %c11_248 = arith.constant 11 : index
      %c0_249 = arith.constant 0 : index
      %c0_250 = arith.constant 0 : index
      %321 = vector.load %arg2[%c11_248, %c0_249, %c0_250] : memref<25x16x32xf32, #tpu.memory_space<vmem>>, vector<1x16x32xf32>
      %322 = vector.shape_cast %321 : vector<1x16x32xf32> to vector<16x32xf32>
      %cst_251 = arith.constant dense<0.000000e+00> : vector<14x32xf32>
      %323 = tpu.matmul %320, %322, %cst_251 {dimension_numbers = #tpu.dot_dimension_numbers<[1], [0], [0], [1], [0, 0, 1, 1], [], []>} : vector<14x16xf32>, vector<16x32xf32>, vector<14x32xf32> -> vector<14x32xf32>
      %324 = arith.addf %316, %323 : vector<14x32xf32>
      %c2_i32_252 = arith.constant 2 : i32
      %325 = arith.addi %227, %c2_i32_252 : i32
      %326 = arith.index_cast %325 : i32 to index
      %c2_253 = arith.constant 2 : index
      %c0_254 = arith.constant 0 : index
      %327 = vector.load %arg5[%326, %c2_253, %c0_254] : memref<18x18x16xf32, #tpu.memory_space<vmem>>, vector<1x14x16xf32>
      %328 = vector.shape_cast %327 : vector<1x14x16xf32> to vector<14x16xf32>
      %c12_255 = arith.constant 12 : index
      %c0_256 = arith.constant 0 : index
      %c0_257 = arith.constant 0 : index
      %329 = vector.load %arg2[%c12_255, %c0_256, %c0_257] : memref<25x16x32xf32, #tpu.memory_space<vmem>>, vector<1x16x32xf32>
      %330 = vector.shape_cast %329 : vector<1x16x32xf32> to vector<16x32xf32>
      %cst_258 = arith.constant dense<0.000000e+00> : vector<14x32xf32>
      %331 = tpu.matmul %328, %330, %cst_258 {dimension_numbers = #tpu.dot_dimension_numbers<[1], [0], [0], [1], [0, 0, 1, 1], [], []>} : vector<14x16xf32>, vector<16x32xf32>, vector<14x32xf32> -> vector<14x32xf32>
      %332 = arith.addf %324, %331 : vector<14x32xf32>
      %c2_i32_259 = arith.constant 2 : i32
      %333 = arith.addi %227, %c2_i32_259 : i32
      %334 = arith.index_cast %333 : i32 to index
      %c3_260 = arith.constant 3 : index
      %c0_261 = arith.constant 0 : index
      %335 = vector.load %arg5[%334, %c3_260, %c0_261] : memref<18x18x16xf32, #tpu.memory_space<vmem>>, vector<1x14x16xf32>
      %336 = vector.shape_cast %335 : vector<1x14x16xf32> to vector<14x16xf32>
      %c13_262 = arith.constant 13 : index
      %c0_263 = arith.constant 0 : index
      %c0_264 = arith.constant 0 : index
      %337 = vector.load %arg2[%c13_262, %c0_263, %c0_264] : memref<25x16x32xf32, #tpu.memory_space<vmem>>, vector<1x16x32xf32>
      %338 = vector.shape_cast %337 : vector<1x16x32xf32> to vector<16x32xf32>
      %cst_265 = arith.constant dense<0.000000e+00> : vector<14x32xf32>
      %339 = tpu.matmul %336, %338, %cst_265 {dimension_numbers = #tpu.dot_dimension_numbers<[1], [0], [0], [1], [0, 0, 1, 1], [], []>} : vector<14x16xf32>, vector<16x32xf32>, vector<14x32xf32> -> vector<14x32xf32>
      %340 = arith.addf %332, %339 : vector<14x32xf32>
      %c2_i32_266 = arith.constant 2 : i32
      %341 = arith.addi %227, %c2_i32_266 : i32
      %342 = arith.index_cast %341 : i32 to index
      %c4_267 = arith.constant 4 : index
      %c0_268 = arith.constant 0 : index
      %343 = vector.load %arg5[%342, %c4_267, %c0_268] : memref<18x18x16xf32, #tpu.memory_space<vmem>>, vector<1x14x16xf32>
      %344 = vector.shape_cast %343 : vector<1x14x16xf32> to vector<14x16xf32>
      %c14_269 = arith.constant 14 : index
      %c0_270 = arith.constant 0 : index
      %c0_271 = arith.constant 0 : index
      %345 = vector.load %arg2[%c14_269, %c0_270, %c0_271] : memref<25x16x32xf32, #tpu.memory_space<vmem>>, vector<1x16x32xf32>
      %346 = vector.shape_cast %345 : vector<1x16x32xf32> to vector<16x32xf32>
      %cst_272 = arith.constant dense<0.000000e+00> : vector<14x32xf32>
      %347 = tpu.matmul %344, %346, %cst_272 {dimension_numbers = #tpu.dot_dimension_numbers<[1], [0], [0], [1], [0, 0, 1, 1], [], []>} : vector<14x16xf32>, vector<16x32xf32>, vector<14x32xf32> -> vector<14x32xf32>
      %348 = arith.addf %340, %347 : vector<14x32xf32>
      %c3_i32_273 = arith.constant 3 : i32
      %349 = arith.addi %227, %c3_i32_273 : i32
      %350 = arith.index_cast %349 : i32 to index
      %c0_274 = arith.constant 0 : index
      %c0_275 = arith.constant 0 : index
      %351 = vector.load %arg5[%350, %c0_274, %c0_275] : memref<18x18x16xf32, #tpu.memory_space<vmem>>, vector<1x14x16xf32>
      %352 = vector.shape_cast %351 : vector<1x14x16xf32> to vector<14x16xf32>
      %c15_276 = arith.constant 15 : index
      %c0_277 = arith.constant 0 : index
      %c0_278 = arith.constant 0 : index
      %353 = vector.load %arg2[%c15_276, %c0_277, %c0_278] : memref<25x16x32xf32, #tpu.memory_space<vmem>>, vector<1x16x32xf32>
      %354 = vector.shape_cast %353 : vector<1x16x32xf32> to vector<16x32xf32>
      %cst_279 = arith.constant dense<0.000000e+00> : vector<14x32xf32>
      %355 = tpu.matmul %352, %354, %cst_279 {dimension_numbers = #tpu.dot_dimension_numbers<[1], [0], [0], [1], [0, 0, 1, 1], [], []>} : vector<14x16xf32>, vector<16x32xf32>, vector<14x32xf32> -> vector<14x32xf32>
      %356 = arith.addf %348, %355 : vector<14x32xf32>
      %c3_i32_280 = arith.constant 3 : i32
      %357 = arith.addi %227, %c3_i32_280 : i32
      %358 = arith.index_cast %357 : i32 to index
      %c1_281 = arith.constant 1 : index
      %c0_282 = arith.constant 0 : index
      %359 = vector.load %arg5[%358, %c1_281, %c0_282] : memref<18x18x16xf32, #tpu.memory_space<vmem>>, vector<1x14x16xf32>
      %360 = vector.shape_cast %359 : vector<1x14x16xf32> to vector<14x16xf32>
      %c16_283 = arith.constant 16 : index
      %c0_284 = arith.constant 0 : index
      %c0_285 = arith.constant 0 : index
      %361 = vector.load %arg2[%c16_283, %c0_284, %c0_285] : memref<25x16x32xf32, #tpu.memory_space<vmem>>, vector<1x16x32xf32>
      %362 = vector.shape_cast %361 : vector<1x16x32xf32> to vector<16x32xf32>
      %cst_286 = arith.constant dense<0.000000e+00> : vector<14x32xf32>
      %363 = tpu.matmul %360, %362, %cst_286 {dimension_numbers = #tpu.dot_dimension_numbers<[1], [0], [0], [1], [0, 0, 1, 1], [], []>} : vector<14x16xf32>, vector<16x32xf32>, vector<14x32xf32> -> vector<14x32xf32>
      %364 = arith.addf %356, %363 : vector<14x32xf32>
      %c3_i32_287 = arith.constant 3 : i32
      %365 = arith.addi %227, %c3_i32_287 : i32
      %366 = arith.index_cast %365 : i32 to index
      %c2_288 = arith.constant 2 : index
      %c0_289 = arith.constant 0 : index
      %367 = vector.load %arg5[%366, %c2_288, %c0_289] : memref<18x18x16xf32, #tpu.memory_space<vmem>>, vector<1x14x16xf32>
      %368 = vector.shape_cast %367 : vector<1x14x16xf32> to vector<14x16xf32>
      %c17_290 = arith.constant 17 : index
      %c0_291 = arith.constant 0 : index
      %c0_292 = arith.constant 0 : index
      %369 = vector.load %arg2[%c17_290, %c0_291, %c0_292] : memref<25x16x32xf32, #tpu.memory_space<vmem>>, vector<1x16x32xf32>
      %370 = vector.shape_cast %369 : vector<1x16x32xf32> to vector<16x32xf32>
      %cst_293 = arith.constant dense<0.000000e+00> : vector<14x32xf32>
      %371 = tpu.matmul %368, %370, %cst_293 {dimension_numbers = #tpu.dot_dimension_numbers<[1], [0], [0], [1], [0, 0, 1, 1], [], []>} : vector<14x16xf32>, vector<16x32xf32>, vector<14x32xf32> -> vector<14x32xf32>
      %372 = arith.addf %364, %371 : vector<14x32xf32>
      %c3_i32_294 = arith.constant 3 : i32
      %373 = arith.addi %227, %c3_i32_294 : i32
      %374 = arith.index_cast %373 : i32 to index
      %c3_295 = arith.constant 3 : index
      %c0_296 = arith.constant 0 : index
      %375 = vector.load %arg5[%374, %c3_295, %c0_296] : memref<18x18x16xf32, #tpu.memory_space<vmem>>, vector<1x14x16xf32>
      %376 = vector.shape_cast %375 : vector<1x14x16xf32> to vector<14x16xf32>
      %c18_297 = arith.constant 18 : index
      %c0_298 = arith.constant 0 : index
      %c0_299 = arith.constant 0 : index
      %377 = vector.load %arg2[%c18_297, %c0_298, %c0_299] : memref<25x16x32xf32, #tpu.memory_space<vmem>>, vector<1x16x32xf32>
      %378 = vector.shape_cast %377 : vector<1x16x32xf32> to vector<16x32xf32>
      %cst_300 = arith.constant dense<0.000000e+00> : vector<14x32xf32>
      %379 = tpu.matmul %376, %378, %cst_300 {dimension_numbers = #tpu.dot_dimension_numbers<[1], [0], [0], [1], [0, 0, 1, 1], [], []>} : vector<14x16xf32>, vector<16x32xf32>, vector<14x32xf32> -> vector<14x32xf32>
      %380 = arith.addf %372, %379 : vector<14x32xf32>
      %c3_i32_301 = arith.constant 3 : i32
      %381 = arith.addi %227, %c3_i32_301 : i32
      %382 = arith.index_cast %381 : i32 to index
      %c4_302 = arith.constant 4 : index
      %c0_303 = arith.constant 0 : index
      %383 = vector.load %arg5[%382, %c4_302, %c0_303] : memref<18x18x16xf32, #tpu.memory_space<vmem>>, vector<1x14x16xf32>
      %384 = vector.shape_cast %383 : vector<1x14x16xf32> to vector<14x16xf32>
      %c19_304 = arith.constant 19 : index
      %c0_305 = arith.constant 0 : index
      %c0_306 = arith.constant 0 : index
      %385 = vector.load %arg2[%c19_304, %c0_305, %c0_306] : memref<25x16x32xf32, #tpu.memory_space<vmem>>, vector<1x16x32xf32>
      %386 = vector.shape_cast %385 : vector<1x16x32xf32> to vector<16x32xf32>
      %cst_307 = arith.constant dense<0.000000e+00> : vector<14x32xf32>
      %387 = tpu.matmul %384, %386, %cst_307 {dimension_numbers = #tpu.dot_dimension_numbers<[1], [0], [0], [1], [0, 0, 1, 1], [], []>} : vector<14x16xf32>, vector<16x32xf32>, vector<14x32xf32> -> vector<14x32xf32>
      %388 = arith.addf %380, %387 : vector<14x32xf32>
      %c4_i32_308 = arith.constant 4 : i32
      %389 = arith.addi %227, %c4_i32_308 : i32
      %390 = arith.index_cast %389 : i32 to index
      %c0_309 = arith.constant 0 : index
      %c0_310 = arith.constant 0 : index
      %391 = vector.load %arg5[%390, %c0_309, %c0_310] : memref<18x18x16xf32, #tpu.memory_space<vmem>>, vector<1x14x16xf32>
      %392 = vector.shape_cast %391 : vector<1x14x16xf32> to vector<14x16xf32>
      %c20_311 = arith.constant 20 : index
      %c0_312 = arith.constant 0 : index
      %c0_313 = arith.constant 0 : index
      %393 = vector.load %arg2[%c20_311, %c0_312, %c0_313] : memref<25x16x32xf32, #tpu.memory_space<vmem>>, vector<1x16x32xf32>
      %394 = vector.shape_cast %393 : vector<1x16x32xf32> to vector<16x32xf32>
      %cst_314 = arith.constant dense<0.000000e+00> : vector<14x32xf32>
      %395 = tpu.matmul %392, %394, %cst_314 {dimension_numbers = #tpu.dot_dimension_numbers<[1], [0], [0], [1], [0, 0, 1, 1], [], []>} : vector<14x16xf32>, vector<16x32xf32>, vector<14x32xf32> -> vector<14x32xf32>
      %396 = arith.addf %388, %395 : vector<14x32xf32>
      %c4_i32_315 = arith.constant 4 : i32
      %397 = arith.addi %227, %c4_i32_315 : i32
      %398 = arith.index_cast %397 : i32 to index
      %c1_316 = arith.constant 1 : index
      %c0_317 = arith.constant 0 : index
      %399 = vector.load %arg5[%398, %c1_316, %c0_317] : memref<18x18x16xf32, #tpu.memory_space<vmem>>, vector<1x14x16xf32>
      %400 = vector.shape_cast %399 : vector<1x14x16xf32> to vector<14x16xf32>
      %c21_318 = arith.constant 21 : index
      %c0_319 = arith.constant 0 : index
      %c0_320 = arith.constant 0 : index
      %401 = vector.load %arg2[%c21_318, %c0_319, %c0_320] : memref<25x16x32xf32, #tpu.memory_space<vmem>>, vector<1x16x32xf32>
      %402 = vector.shape_cast %401 : vector<1x16x32xf32> to vector<16x32xf32>
      %cst_321 = arith.constant dense<0.000000e+00> : vector<14x32xf32>
      %403 = tpu.matmul %400, %402, %cst_321 {dimension_numbers = #tpu.dot_dimension_numbers<[1], [0], [0], [1], [0, 0, 1, 1], [], []>} : vector<14x16xf32>, vector<16x32xf32>, vector<14x32xf32> -> vector<14x32xf32>
      %404 = arith.addf %396, %403 : vector<14x32xf32>
      %c4_i32_322 = arith.constant 4 : i32
      %405 = arith.addi %227, %c4_i32_322 : i32
      %406 = arith.index_cast %405 : i32 to index
      %c2_323 = arith.constant 2 : index
      %c0_324 = arith.constant 0 : index
      %407 = vector.load %arg5[%406, %c2_323, %c0_324] : memref<18x18x16xf32, #tpu.memory_space<vmem>>, vector<1x14x16xf32>
      %408 = vector.shape_cast %407 : vector<1x14x16xf32> to vector<14x16xf32>
      %c22_325 = arith.constant 22 : index
      %c0_326 = arith.constant 0 : index
      %c0_327 = arith.constant 0 : index
      %409 = vector.load %arg2[%c22_325, %c0_326, %c0_327] : memref<25x16x32xf32, #tpu.memory_space<vmem>>, vector<1x16x32xf32>
      %410 = vector.shape_cast %409 : vector<1x16x32xf32> to vector<16x32xf32>
      %cst_328 = arith.constant dense<0.000000e+00> : vector<14x32xf32>
      %411 = tpu.matmul %408, %410, %cst_328 {dimension_numbers = #tpu.dot_dimension_numbers<[1], [0], [0], [1], [0, 0, 1, 1], [], []>} : vector<14x16xf32>, vector<16x32xf32>, vector<14x32xf32> -> vector<14x32xf32>
      %412 = arith.addf %404, %411 : vector<14x32xf32>
      %c4_i32_329 = arith.constant 4 : i32
      %413 = arith.addi %227, %c4_i32_329 : i32
      %414 = arith.index_cast %413 : i32 to index
      %c3_330 = arith.constant 3 : index
      %c0_331 = arith.constant 0 : index
      %415 = vector.load %arg5[%414, %c3_330, %c0_331] : memref<18x18x16xf32, #tpu.memory_space<vmem>>, vector<1x14x16xf32>
      %416 = vector.shape_cast %415 : vector<1x14x16xf32> to vector<14x16xf32>
      %c23_332 = arith.constant 23 : index
      %c0_333 = arith.constant 0 : index
      %c0_334 = arith.constant 0 : index
      %417 = vector.load %arg2[%c23_332, %c0_333, %c0_334] : memref<25x16x32xf32, #tpu.memory_space<vmem>>, vector<1x16x32xf32>
      %418 = vector.shape_cast %417 : vector<1x16x32xf32> to vector<16x32xf32>
      %cst_335 = arith.constant dense<0.000000e+00> : vector<14x32xf32>
      %419 = tpu.matmul %416, %418, %cst_335 {dimension_numbers = #tpu.dot_dimension_numbers<[1], [0], [0], [1], [0, 0, 1, 1], [], []>} : vector<14x16xf32>, vector<16x32xf32>, vector<14x32xf32> -> vector<14x32xf32>
      %420 = arith.addf %412, %419 : vector<14x32xf32>
      %c4_i32_336 = arith.constant 4 : i32
      %421 = arith.addi %227, %c4_i32_336 : i32
      %422 = arith.index_cast %421 : i32 to index
      %c4_337 = arith.constant 4 : index
      %c0_338 = arith.constant 0 : index
      %423 = vector.load %arg5[%422, %c4_337, %c0_338] : memref<18x18x16xf32, #tpu.memory_space<vmem>>, vector<1x14x16xf32>
      %424 = vector.shape_cast %423 : vector<1x14x16xf32> to vector<14x16xf32>
      %c24_339 = arith.constant 24 : index
      %c0_340 = arith.constant 0 : index
      %c0_341 = arith.constant 0 : index
      %425 = vector.load %arg2[%c24_339, %c0_340, %c0_341] : memref<25x16x32xf32, #tpu.memory_space<vmem>>, vector<1x16x32xf32>
      %426 = vector.shape_cast %425 : vector<1x16x32xf32> to vector<16x32xf32>
      %cst_342 = arith.constant dense<0.000000e+00> : vector<14x32xf32>
      %427 = tpu.matmul %424, %426, %cst_342 {dimension_numbers = #tpu.dot_dimension_numbers<[1], [0], [0], [1], [0, 0, 1, 1], [], []>} : vector<14x16xf32>, vector<16x32xf32>, vector<14x32xf32> -> vector<14x32xf32>
      %428 = arith.addf %420, %427 : vector<14x32xf32>
      %429 = vector.broadcast %4 : vector<1x32xf32> to vector<14x32xf32>
      %430 = arith.addf %428, %429 : vector<14x32xf32>
      %cst_343 = arith.constant 0.000000e+00 : f32
      %431 = vector.broadcast %cst_343 : f32 to vector<14x32xf32>
      %432 = arith.maximumf %430, %431 : vector<14x32xf32>
      %433 = arith.maximumf %225, %432 : vector<14x32xf32>
      %cst_344 = arith.constant dense<0.000000e+00> : vector<7x32xf32>
      %434 = tpu.matmul %11, %433, %cst_344 {dimension_numbers = #tpu.dot_dimension_numbers<[1], [0], [0], [1], [0, 0, 1, 1], [], []>} : vector<7x14xf32>, vector<14x32xf32>, vector<7x32xf32> -> vector<7x32xf32>
      %cst_345 = arith.constant dense<0.000000e+00> : vector<7x32xf32>
      %435 = tpu.matmul %18, %433, %cst_345 {dimension_numbers = #tpu.dot_dimension_numbers<[1], [0], [0], [1], [0, 0, 1, 1], [], []>} : vector<7x14xf32>, vector<14x32xf32>, vector<7x32xf32> -> vector<7x32xf32>
      %436 = arith.maximumf %434, %435 : vector<7x32xf32>
      %437 = arith.index_cast %arg6 : i32 to index
      %c0_346 = arith.constant 0 : index
      %c0_347 = arith.constant 0 : index
      %438 = vector.load %arg4[%437, %c0_346, %c0_347] : memref<7x7x32xf32, #tpu.memory_space<vmem>>, vector<1x7x32xf32>
      %439 = vector.shape_cast %438 : vector<1x7x32xf32> to vector<7x32xf32>
      %440 = vector.shape_cast %436 : vector<7x32xf32> to vector<1x7x32xf32>
      tpu.vector_store %arg4[%437, %c0_346, %c0_347], %440 {strides = array<i32>} : memref<7x7x32xf32, #tpu.memory_space<vmem>>, vector<1x7x32xf32>,
    }
    %c7_i32_11 = arith.constant 7 : i32
    return
  }
  func.func @transform_0(%arg0: i32) -> (i32, i32, i32) {
    %c0_i32 = arith.constant 0 : i32
    %c0_i32_0 = arith.constant 0 : i32
    %c0_i32_1 = arith.constant 0 : i32
    return %arg0, %c0_i32, %c0_i32_0 : i32, i32, i32
  }
  func.func @transform_1(%arg0: i32) -> (i32, i32, i32) {
    %c0_i32 = arith.constant 0 : i32
    %c0_i32_0 = arith.constant 0 : i32
    %c0_i32_1 = arith.constant 0 : i32
    %c0_i32_2 = arith.constant 0 : i32
    return %c0_i32, %c0_i32_0, %c0_i32_1 : i32, i32, i32
  }
  func.func @transform_2(%arg0: i32) -> (i32, i32) {
    %c0_i32 = arith.constant 0 : i32
    %c0_i32_0 = arith.constant 0 : i32
    %c0_i32_1 = arith.constant 0 : i32
    return %c0_i32, %c0_i32_0 : i32, i32
  }
  func.func @transform_3(%arg0: i32) -> (i32, i32, i32) {
    %c0_i32 = arith.constant 0 : i32
    %c0_i32_0 = arith.constant 0 : i32
    %c0_i32_1 = arith.constant 0 : i32
    return %arg0, %c0_i32, %c0_i32_0 : i32, i32, i32
  }
}

module attributes {stable_mosaic.version = 11 : i64} {
  func.func @_linear_kernel(%arg0: i32, %arg1: memref<2x1568xf32, #tpu.memory_space<vmem>>, %arg2: memref<1568x128xf32, #tpu.memory_space<vmem>>, %arg3: memref<1x128xf32, #tpu.memory_space<vmem>>, %arg4: memref<2x128xf32, #tpu.memory_space<vmem>>) attributes {dimension_semantics = [#tpu.dimension_semantics<parallel>], iteration_bounds = array<i64: 1>, scalar_prefetch = 0 : i64, scratch_operands = 0 : i64, tpu.core_type = #tpu.core_type<tc>, window_params = [{transform_indices = @transform_0, window_bounds = array<i64: 2, 1568>}, {pipeline_mode = #tpu.pipeline_mode<synchronous>, transform_indices = @transform_1, window_bounds = array<i64: 1568, 128>}, {pipeline_mode = #tpu.pipeline_mode<synchronous>, transform_indices = @transform_2, window_bounds = array<i64: 1, 128>}, {transform_indices = @transform_3, window_bounds = array<i64: 2, 128>}]} {
    %c0 = arith.constant 0 : index
    %c0_0 = arith.constant 0 : index
    %0 = vector.load %arg1[%c0, %c0_0] : memref<2x1568xf32, #tpu.memory_space<vmem>>, vector<2x1568xf32>
    %c0_1 = arith.constant 0 : index
    %c0_2 = arith.constant 0 : index
    %1 = vector.load %arg2[%c0_1, %c0_2] : memref<1568x128xf32, #tpu.memory_space<vmem>>, vector<1568x128xf32>
    %cst = arith.constant dense<0.000000e+00> : vector<2x128xf32>
    %2 = tpu.matmul %0, %1, %cst {dimension_numbers = #tpu.dot_dimension_numbers<[1], [0], [0], [1], [0, 0, 1, 1], [], []>} : vector<2x1568xf32>, vector<1568x128xf32>, vector<2x128xf32> -> vector<2x128xf32>
    %c0_3 = arith.constant 0 : index
    %c0_4 = arith.constant 0 : index
    %3 = vector.load %arg3[%c0_3, %c0_4] : memref<1x128xf32, #tpu.memory_space<vmem>>, vector<1x128xf32>
    %4 = vector.broadcast %3 : vector<1x128xf32> to vector<2x128xf32>
    %5 = arith.addf %2, %4 : vector<2x128xf32>
    %c0_5 = arith.constant 0 : index
    %c0_6 = arith.constant 0 : index
    %6 = vector.load %arg4[%c0_5, %c0_6] : memref<2x128xf32, #tpu.memory_space<vmem>>, vector<2x128xf32>
    tpu.vector_store %arg4[%c0_5, %c0_6], %5 {strides = array<i32>} : memref<2x128xf32, #tpu.memory_space<vmem>>, vector<2x128xf32>,
    return
  }
  func.func @transform_0(%arg0: i32) -> (i32, i32) {
    %c0_i32 = arith.constant 0 : i32
    %c0_i32_0 = arith.constant 0 : i32
    return %arg0, %c0_i32 : i32, i32
  }
  func.func @transform_1(%arg0: i32) -> (i32, i32) {
    %c0_i32 = arith.constant 0 : i32
    %c0_i32_0 = arith.constant 0 : i32
    %c0_i32_1 = arith.constant 0 : i32
    return %c0_i32, %c0_i32_0 : i32, i32
  }
  func.func @transform_2(%arg0: i32) -> (i32, i32) {
    %c0_i32 = arith.constant 0 : i32
    %c0_i32_0 = arith.constant 0 : i32
    %c0_i32_1 = arith.constant 0 : i32
    return %c0_i32, %c0_i32_0 : i32, i32
  }
  func.func @transform_3(%arg0: i32) -> (i32, i32) {
    %c0_i32 = arith.constant 0 : i32
    %c0_i32_0 = arith.constant 0 : i32
    return %arg0, %c0_i32 : i32, i32
  }
}

</mosaic_0001>

<bundles_post_ra>
// kernel: cnn_forward.5
= control target key start
LH: loop header
LB: loop body
LE: loop exit
PB: predicated region body
PF: predicated region fallthrough
CT: control target
= control target key end

     0   :  { %v1263_v43 = vmov 1983009808   ;;  %v230_v45 = vlaneseq  ;;  %s1931_s0 = inlined_call_operand.vmem [shape: f32[2,1568], index: 0, kind: input, shape index: {}]   ;;  %s1932_s1 = inlined_call_operand.vmem [shape: f32[1568,128], index: 1, kind: input, shape index: {}]   ;;  %s1933_s2 = inlined_call_operand.vmem [shape: f32[1,128], index: 2, kind: input, shape index: {}]   ;;  %s1934_s3 = inlined_call_operand.hbm [shape: f32[2,128], index: 3, kind: output, shape index: {}]  }
   0x1   :  { %v35_v0 = vld [vmem:[%s1932_s1 + $0x80] sm:$0xff]  ;;  %v36_v1 = vld [vmem:[%s1932_s1 + $0x88] sm:$0xff]  ;;  %v37_v11 = vld [vmem:[%s1932_s1 + $0x90] sm:$0xff]  ;;  %v228_v44 = vunpack.c.l.s4 %v1263_v43 }
   0x2   :  { %v19_v2 = vld [vmem:[%s1932_s1] sm:$0xff]  ;;  %v1033_v3 = vpack.c.bf16 %v36_v1, %v35_v0  ;;  %v20_v4 = vld [vmem:[%s1932_s1 + $0x8] sm:$0xff]  ;;  %v38_v13 = vld [vmem:[%s1932_s1 + $0x98] sm:$0xff]  ;;  %v231_v60 = vshrl.u32 %v230_v45, 7 }
   0x3   :  { %v67_v5 = vld [vmem:[%s1932_s1 + $0x180] sm:$0xff]  ;;  %v68_v6 = vld [vmem:[%s1932_s1 + $0x188] sm:$0xff]  ;;  %v1035_v7 = vpack.c.bf16 %v20_v4, %v19_v2  ;;  %v21_v14 = vld [vmem:[%s1932_s1 + $0x10] sm:$0xff]  ;;  %v1037_v16 = vpack.c.bf16 %v38_v13, %v37_v11  ;;  %v229_v59 = vunpack.c.0.s8 %v228_v44 }
   0x4   :  { %v1065_v8 = vpack.c.bf16 %v68_v6, %v67_v5  ;;  %v51_v9 = vld [vmem:[%s1932_s1 + $0x100] sm:$0xff]  ;;  %v52_v10 = vld [vmem:[%s1932_s1 + $0x108] sm:$0xff]  ;;  %1034 = vmatprep.subr.bf16.mxu0 %v1033_v3  ;;  %v22_v15 = vld [vmem:[%s1932_s1 + $0x18] sm:$0xff] }
   0x5   :  { %v1067_v12 = vpack.c.bf16 %v52_v10, %v51_v9  ;;  %1036 = vmatpush3.bf16.msra.mxu0 %v1035_v7  ;;  %v1039_v17 = vpack.c.bf16 %v22_v15, %v21_v14  ;;  %v69_v18 = vld [vmem:[%s1932_s1 + $0x190] sm:$0xff]  ;;  %v70_v19 = vld [vmem:[%s1932_s1 + $0x198] sm:$0xff]  ;;  %v39_v23 = vld [vmem:[%s1932_s1 + $0xa0] sm:$0xff]  ;;  %v1432_v10 = vsub.s32 %v229_v59, %v231_v60 }
   0x6   :  { %1066 = vmatprep.subr.bf16.mxu1 %v1065_v8  ;;  %v53_v20 = vld [vmem:[%s1932_s1 + $0x110] sm:$0xff]  ;;  %v1069_v21 = vpack.c.bf16 %v70_v19, %v69_v18  ;;  %v54_v22 = vld [vmem:[%s1932_s1 + $0x118] sm:$0xff]  ;;  %v40_v24 = vld [vmem:[%s1932_s1 + $0xa8] sm:$0xff]  ;;  %1038 = vmatprep.subr.bf16.mxu0 %v1037_v16 }
   0x7   :  { %1068 = vmatpush3.bf16.msra.mxu1 %v1067_v12  ;;  %v1071_v25 = vpack.c.bf16 %v54_v22, %v53_v20  ;;  %v1041_v26 = vpack.c.bf16 %v40_v24, %v39_v23  ;;  %v23_v27 = vld [vmem:[%s1932_s1 + $0x20] sm:$0xff]  ;;  %v24_v28 = vld [vmem:[%s1932_s1 + $0x28] sm:$0xff]  ;;  %v41_v35 = vld [vmem:[%s1932_s1 + $0xb0] sm:$0xff] }
   0x8   :  { %v71_v29 = vld [vmem:[%s1932_s1 + $0x1a0] sm:$0xff]  ;;  %1070 = vmatprep.subr.bf16.mxu1 %v1069_v21  ;;  %v72_v30 = vld [vmem:[%s1932_s1 + $0x1a8] sm:$0xff]  ;;  %v1043_v33 = vpack.c.bf16 %v24_v28, %v23_v27  ;;  %v42_v36 = vld [vmem:[%s1932_s1 + $0xb8] sm:$0xff] }
   0x9   :  { %v55_v31 = vld [vmem:[%s1932_s1 + $0x120] sm:$0xff]  ;;  %v56_v32 = vld [vmem:[%s1932_s1 + $0x128] sm:$0xff]  ;;  %1040 = vmatpush3.bf16.msra.mxu0 %v1039_v17  ;;  %v1073_v34 = vpack.c.bf16 %v72_v30, %v71_v29  ;;  %v25_v37 = vld [vmem:[%s1932_s1 + $0x30] sm:$0xff]  ;;  %v1045_v39 = vpack.c.bf16 %v42_v36, %v41_v35 }
   0xa   :  { %1042 = vmatprep.subr.bf16.mxu0 %v1041_v26  ;;  %v1075_v38 = vpack.c.bf16 %v56_v32, %v55_v31  ;;  %v26_v40 = vld [vmem:[%s1932_s1 + $0x38] sm:$0xff]  ;;  %v73_v41 = vld [vmem:[%s1932_s1 + $0x1b0] sm:$0xff]  ;;  %v43_v49 = vld [vmem:[%s1932_s1 + $0xc0] sm:$0xff] }
   0xb   :  { %1072 = vmatpush3.bf16.msra.mxu1 %v1071_v25  ;;  %v74_v42 = vld [vmem:[%s1932_s1 + $0x1b8] sm:$0xff]  ;;  %v57_v47 = vld [vmem:[%s1932_s1 + $0x130] sm:$0xff]  ;;  %v44_v50 = vld [vmem:[%s1932_s1 + $0xc8] sm:$0xff]  ;;  %v1047_v51 = vpack.c.bf16 %v26_v40, %v25_v37 }
   0xc   :  { %1074 = vmatprep.subr.bf16.mxu1 %v1073_v34  ;;  %v1077_v46 = vpack.c.bf16 %v74_v42, %v73_v41  ;;  %v58_v48 = vld [vmem:[%s1932_s1 + $0x138] sm:$0xff]  ;;  %v75_v52 = vld [vmem:[%s1932_s1 + $0x1c0] sm:$0xff]  ;;  %v76_v53 = vld [vmem:[%s1932_s1 + $0x1c8] sm:$0xff]  ;;  %v1049_v55 = vpack.c.bf16 %v44_v50, %v43_v49 }
   0xd   :  { %1044 = vmatpush3.bf16.msra.mxu0 %v1043_v33  ;;  %v1079_v54 = vpack.c.bf16 %v58_v48, %v57_v47  ;;  %v27_v56 = vld [vmem:[%s1932_s1 + $0x40] sm:$0xff]  ;;  %v28_v57 = vld [vmem:[%s1932_s1 + $0x48] sm:$0xff]  ;;  %v1081_v61 = vpack.c.bf16 %v76_v53, %v75_v52  ;;  %v45_v63 = vld [vmem:[%s1932_s1 + $0xd0] sm:$0xff] }
   0xe   :  { %1046 = vmatprep.subr.bf16.mxu0 %v1045_v39  ;;  %v59_v58 = vld [vmem:[%s1932_s1 + $0x140] sm:$0xff]  ;;  %v60_v62 = vld [vmem:[%s1932_s1 + $0x148] sm:$0xff]  ;;  %v46_v0 = vld [vmem:[%s1932_s1 + $0xd8] sm:$0xff]  ;;  %v1051_v3 = vpack.c.bf16 %v28_v57, %v27_v56 }
   0xf   :  { %1076 = vmatpush3.bf16.msra.mxu1 %v1075_v38  ;;  %v77_v1 = vld [vmem:[%s1932_s1 + $0x1d0] sm:$0xff]  ;;  %v78_v2 = vld [vmem:[%s1932_s1 + $0x1d8] sm:$0xff]  ;;  %v1083_v5 = vpack.c.bf16 %v60_v62, %v59_v58  ;;  %v1053_v6 = vpack.c.bf16 %v46_v0, %v45_v63  ;;  %v47_v12 = vld [vmem:[%s1932_s1 + $0xe0] sm:$0xff] }
  0x10   :  { %1078 = vmatprep.subr.bf16.mxu1 %v1077_v46  ;;  %v29_v4 = vld [vmem:[%s1932_s1 + $0x50] sm:$0xff]  ;;  %v30_v7 = vld [vmem:[%s1932_s1 + $0x58] sm:$0xff]  ;;  %v1085_v11 = vpack.c.bf16 %v78_v2, %v77_v1  ;;  %v48_v13 = vld [vmem:[%s1932_s1 + $0xe8] sm:$0xff] }
  0x11   :  { %1048 = vmatpush3.bf16.msra.mxu0 %v1047_v51  ;;  %v61_v8 = vld [vmem:[%s1932_s1 + $0x150] sm:$0xff]  ;;  %v62_v9 = vld [vmem:[%s1932_s1 + $0x158] sm:$0xff]  ;;  %v79_v14 = vld [vmem:[%s1932_s1 + $0x1e0] sm:$0xff]  ;;  %v1055_v16 = vpack.c.bf16 %v30_v7, %v29_v4  ;;  %v1057_v19 = vpack.c.bf16 %v48_v13, %v47_v12 }
  0x12   :  { %1050 = vmatprep.subr.bf16.mxu0 %v1049_v55  ;;  %v80_v15 = vld [vmem:[%s1932_s1 + $0x1e8] sm:$0xff]  ;;  %v1087_v17 = vpack.c.bf16 %v62_v9, %v61_v8  ;;  %v15_v18 = vld [vmem:[%s1931_s0] sm:$0xff]  ;;  %v49_v27 = vld [vmem:[%s1932_s1 + $0xf0] sm:$0xff] }
  0x13   :  { %1080 = vmatpush3.bf16.msra.mxu1 %v1079_v54  ;;  %v31_v20 = vld [vmem:[%s1932_s1 + $0x60] sm:$0xff]  ;;  %v32_v21 = vld [vmem:[%s1932_s1 + $0x68] sm:$0xff]  ;;  %v233_v23 = vrot.slane %v15_v18, %v1432_v10  ;;  %v226_v24 = vcombine.high %v15_v18, %v15_v18  ;;  %v1089_v25 = vpack.c.bf16 %v80_v15, %v79_v14  ;;  %v50_v28 = vld [vmem:[%s1932_s1 + $0xf8] sm:$0xff] }
  0x14   :  { %1082 = vmatprep.subr.bf16.mxu1 %v1081_v61  ;;  %v63_v22 = vld [vmem:[%s1932_s1 + $0x160] sm:$0xff]  ;;  %v64_v26 = vld [vmem:[%s1932_s1 + $0x168] sm:$0xff]  ;;  %v81_v29 = vld [vmem:[%s1932_s1 + $0x1f0] sm:$0xff]  ;;  %v1059_v33 = vpack.c.bf16 %v32_v21, %v31_v20  ;;  %v1061_v35 = vpack.c.bf16 %v50_v28, %v49_v27 }
  0x15   :  { %1052 = vmatpush3.bf16.msra.mxu0 %v1051_v3  ;;  %v82_v30 = vld [vmem:[%s1932_s1 + $0x1f8] sm:$0xff]  ;;  %v241_v31 = vcombine.high %v233_v23, %v233_v23  ;;  %v240_v32 = vrot.slane %v226_v24, %v1432_v10  ;;  %v1091_v34 = vpack.c.bf16 %v64_v26, %v63_v22  ;;  %v33_v36 = vld [vmem:[%s1932_s1 + $0x70] sm:$0xff]  ;;  %v99_v42 = vld [vmem:[%s1932_s1 + $0x280] sm:$0xff] }
  0x16   :  { %1054 = vmatprep.subr.bf16.mxu0 %v1053_v6  ;;  %v34_v37 = vld [vmem:[%s1932_s1 + $0x78] sm:$0xff]  ;;  %v65_v38 = vld [vmem:[%s1932_s1 + $0x170] sm:$0xff]  ;;  %v1093_v40 = vpack.c.bf16 %v82_v30, %v81_v29  ;;  %v100_v43 = vld [vmem:[%s1932_s1 + $0x288] sm:$0xff] }
  0x17   :  { %1084 = vmatpush3.bf16.msra.mxu1 %v1083_v5  ;;  %v242_v39 = vcombine.high %v240_v32, %v240_v32  ;;  %363 = vmatprep.mubr.f32.mxu0 %v241_v31  ;;  %v66_v41 = vld [vmem:[%s1932_s1 + $0x178] sm:$0xff]  ;;  %v131_v44 = vld [vmem:[%s1932_s1 + $0x380] sm:$0xff]  ;;  %v132_v45 = vld [vmem:[%s1932_s1 + $0x388] sm:$0xff]  ;;  %v1063_v46 = vpack.c.bf16 %v34_v37, %v33_v36  ;;  %v1097_v48 = vpack.c.bf16 %v100_v43, %v99_v42 }
  0x18   :  { %1086 = vmatprep.subr.bf16.mxu1 %v1085_v11  ;;  %v1095_v47 = vpack.c.bf16 %v66_v41, %v65_v38  ;;  %v83_v49 = vld [vmem:[%s1932_s1 + $0x200] sm:$0xff]  ;;  %v84_v50 = vld [vmem:[%s1932_s1 + $0x208] sm:$0xff]  ;;  %v1129_v52 = vpack.c.bf16 %v132_v45, %v131_v44  ;;  %v101_v54 = vld [vmem:[%s1932_s1 + $0x290] sm:$0xff] }
  0x19   :  { %1056 = vmatpush3.bf16.msra.mxu0 %v1055_v16  ;;  %433 = vmatprep.mubr.f32.mxu1 %v242_v39  ;;  %v115_v51 = vld [vmem:[%s1932_s1 + $0x300] sm:$0xff]  ;;  %v116_v53 = vld [vmem:[%s1932_s1 + $0x308] sm:$0xff]  ;;  %v102_v55 = vld [vmem:[%s1932_s1 + $0x298] sm:$0xff]  ;;  %v1099_v58 = vpack.c.bf16 %v84_v50, %v83_v49 }
  0x1a   :  { %1058 = vmatprep.subr.bf16.mxu0 %v1057_v19  ;;  %v133_v56 = vld [vmem:[%s1932_s1 + $0x390] sm:$0xff]  ;;  %v134_v57 = vld [vmem:[%s1932_s1 + $0x398] sm:$0xff]  ;;  %v1131_v59 = vpack.c.bf16 %v116_v53, %v115_v51  ;;  %v1101_v60 = vpack.c.bf16 %v102_v55, %v101_v54  ;;  %v103_v2 = vld [vmem:[%s1932_s1 + $0x2a0] sm:$0xff] }
  0x1b   :  { %1088 = vmatpush3.bf16.msra.mxu1 %v1087_v17  ;;  %v85_v61 = vld [vmem:[%s1932_s1 + $0x210] sm:$0xff]  ;;  %v86_v62 = vld [vmem:[%s1932_s1 + $0x218] sm:$0xff]  ;;  %v1133_v0 = vpack.c.bf16 %v134_v57, %v133_v56  ;;  %v104_v3 = vld [vmem:[%s1932_s1 + $0x2a8] sm:$0xff] }
  0x1c   :  { %1090 = vmatprep.subr.bf16.mxu1 %v1089_v25  ;;  %v117_v63 = vld [vmem:[%s1932_s1 + $0x310] sm:$0xff]  ;;  %v118_v1 = vld [vmem:[%s1932_s1 + $0x318] sm:$0xff]  ;;  %v135_v4 = vld [vmem:[%s1932_s1 + $0x3a0] sm:$0xff]  ;;  %v1103_v6 = vpack.c.bf16 %v86_v62, %v85_v61  ;;  %v1105_v8 = vpack.c.bf16 %v104_v3, %v103_v2 }
  0x1d   :  { %1060 = vmatpush3.bf16.msra.mxu0 %v1059_v33  ;;  %v136_v5 = vld [vmem:[%s1932_s1 + $0x3a8] sm:$0xff]  ;;  %v1135_v7 = vpack.c.bf16 %v118_v1, %v117_v63  ;;  %v87_v9 = vld [vmem:[%s1932_s1 + $0x220] sm:$0xff]  ;;  %v105_v15 = vld [vmem:[%s1932_s1 + $0x2b0] sm:$0xff] }
  0x1e   :  { %1062 = vmatprep.subr.bf16.mxu0 %v1061_v35  ;;  %v88_v11 = vld [vmem:[%s1932_s1 + $0x228] sm:$0xff]  ;;  %v119_v12 = vld [vmem:[%s1932_s1 + $0x320] sm:$0xff]  ;;  %v1137_v13 = vpack.c.bf16 %v136_v5, %v135_v4  ;;  %v106_v16 = vld [vmem:[%s1932_s1 + $0x2b8] sm:$0xff] }
  0x1f   :  { %1092 = vmatpush3.bf16.msra.mxu1 %v1091_v34  ;;  %v120_v14 = vld [vmem:[%s1932_s1 + $0x328] sm:$0xff]  ;;  %v137_v17 = vld [vmem:[%s1932_s1 + $0x3b0] sm:$0xff]  ;;  %v138_v18 = vld [vmem:[%s1932_s1 + $0x3b8] sm:$0xff]  ;;  %v1107_v19 = vpack.c.bf16 %v88_v11, %v87_v9  ;;  %v1109_v22 = vpack.c.bf16 %v106_v16, %v105_v15 }
  0x20   :  { %1094 = vmatprep.subr.bf16.mxu1 %v1093_v40  ;;  %v89_v20 = vld [vmem:[%s1932_s1 + $0x230] sm:$0xff]  ;;  %v1139_v21 = vpack.c.bf16 %v120_v14, %v119_v12  ;;  %v122_v25 = vld [vmem:[%s1932_s1 + $0x338] sm:$0xff]  ;;  %v1141_v26 = vpack.c.bf16 %v138_v18, %v137_v17  ;;  %v107_v27 = vld [vmem:[%s1932_s1 + $0x2c0] sm:$0xff] }
  0x21   :  { %1064 = vmatpush3.bf16.msra.mxu0 %v1063_v46  ;;  %v121_v24 = vld [vmem:[%s1932_s1 + $0x330] sm:$0xff]  ;;  %v108_v28 = vld [vmem:[%s1932_s1 + $0x2c8] sm:$0xff]  ;;  %v139_v30 = vld [vmem:[%s1932_s1 + $0x3c0] sm:$0xff] }
  0x22   :  { %1098 = vmatprep.subr.bf16.mxu0 %v1097_v48  ;;  %v16_v29 = vld [vmem:[%s1931_s0 + $0x8] sm:$0xff]  ;;  %v1143_v35 = vpack.c.bf16 %v122_v25, %v121_v24  ;;  %v1113_v36 = vpack.c.bf16 %v108_v28, %v107_v27  ;;  %v91_v37 = vld [vmem:[%s1932_s1 + $0x240] sm:$0xff]  ;;  %v109_v44 = vld [vmem:[%s1932_s1 + $0x2d0] sm:$0xff] }
  0x23   :  { %1096 = vmatpush3.bf16.msra.mxu1 %v1095_v47  ;;  %v140_v31 = vld [vmem:[%s1932_s1 + $0x3c8] sm:$0xff]  ;;  %v243_v33 = vcombine.high %v16_v29, %v16_v29  ;;  %v123_v39 = vld [vmem:[%s1932_s1 + $0x340] sm:$0xff]  ;;  %v110_v45 = vld [vmem:[%s1932_s1 + $0x2d8] sm:$0xff] }
  0x24   :  { %1130 = vmatprep.subr.bf16.mxu1 %v1129_v52  ;;  %364 = vmatmul.mubr.f32.vlgmr.msra.gmra.mrb[0].mxu0 %v233_v23  ;;  %v90_v23 = vld [vmem:[%s1932_s1 + $0x238] sm:$0xff]  ;;  %v92_v38 = vld [vmem:[%s1932_s1 + $0x248] sm:$0xff]  ;;  %v1145_v42 = vpack.c.bf16 %v140_v31, %v139_v30  ;;  %v141_v46 = vld [vmem:[%s1932_s1 + $0x3d0] sm:$0xff]  ;;  %v1117_v51 = vpack.c.bf16 %v110_v45, %v109_v44 }
  0x25   :  { %1100 = vmatpush3.bf16.msra.mxu0 %v1099_v58  ;;  %v1111_v34 = vpack.c.bf16 %v90_v23, %v89_v20  ;;  %v1613_v41 = vrot.slane %v243_v33, %v1432_v10  ;;  %v124_v43 = vld [vmem:[%s1932_s1 + $0x348] sm:$0xff]  ;;  %v142_v47 = vld [vmem:[%s1932_s1 + $0x3d8] sm:$0xff]  ;;  %v1115_v49 = vpack.c.bf16 %v92_v38, %v91_v37  ;;  %v93_v52 = vld [vmem:[%s1932_s1 + $0x250] sm:$0xff] }
  0x26   :  { %434 = vmatmul.mubr.f32.vlgmr.msra.gmra.mrb[0].mxu1 %v240_v32  ;;  %1102 = vmatprep.subr.bf16.mxu0 %v1101_v60  ;;  %v1599_v32 = vrot.slane %v16_v29, %v1432_v10  ;;  %v1147_v50 = vpack.c.bf16 %v124_v43, %v123_v39  ;;  %v94_v53 = vld [vmem:[%s1932_s1 + $0x258] sm:$0xff]  ;;  %v125_v54 = vld [vmem:[%s1932_s1 + $0x350] sm:$0xff]  ;;  %v1149_v55 = vpack.c.bf16 %v142_v47, %v141_v46  ;;  %v111_v57 = vld [vmem:[%s1932_s1 + $0x2e0] sm:$0xff] }
  0x27   :  { %1132 = vmatpush3.bf16.msra.mxu1 %v1131_v59  ;;  %v259_v48 = vcombine.high %v1613_v41, %v1613_v41  ;;  %v126_v56 = vld [vmem:[%s1932_s1 + $0x358] sm:$0xff]  ;;  %v112_v58 = vld [vmem:[%s1932_s1 + $0x2e8] sm:$0xff]  ;;  %v143_v59 = vld [vmem:[%s1932_s1 + $0x3e0] sm:$0xff]  ;;  %v1119_v61 = vpack.c.bf16 %v94_v53, %v93_v52 }
  0x28   :  { %1134 = vmatprep.subr.bf16.mxu1 %v1133_v0  ;;  %v258_v40 = vcombine.high %v1599_v32, %v1599_v32  ;;  %v144_v60 = vld [vmem:[%s1932_s1 + $0x3e8] sm:$0xff]  ;;  %v1151_v62 = vpack.c.bf16 %v126_v56, %v125_v54  ;;  %v1121_v63 = vpack.c.bf16 %v112_v58, %v111_v57  ;;  %v95_v0 = vld [vmem:[%s1932_s1 + $0x260] sm:$0xff]  ;;  %v113_v5 = vld [vmem:[%s1932_s1 + $0x2f0] sm:$0xff] }
  0x29   :  { %1104 = vmatpush3.bf16.msra.mxu0 %v1103_v6  ;;  %573 = vmatprep.mubr.f32.mxu1 %v259_v48  ;;  %v96_v1 = vld [vmem:[%s1932_s1 + $0x268] sm:$0xff]  ;;  %v127_v2 = vld [vmem:[%s1932_s1 + $0x360] sm:$0xff]  ;;  %v1153_v3 = vpack.c.bf16 %v144_v60, %v143_v59  ;;  %v114_v6 = vld [vmem:[%s1932_s1 + $0x2f8] sm:$0xff] }
  0x2a   :  { %1106 = vmatprep.subr.bf16.mxu0 %v1105_v8  ;;  %503 = vmatprep.mubr.f32.mxu0 %v258_v40  ;;  %v128_v4 = vld [vmem:[%s1932_s1 + $0x368] sm:$0xff]  ;;  %v146_v8 = vld [vmem:[%s1932_s1 + $0x3f8] sm:$0xff]  ;;  %v1123_v9 = vpack.c.bf16 %v96_v1, %v95_v0  ;;  %v1125_v12 = vpack.c.bf16 %v114_v6, %v113_v5  ;;  %v129_v15 = vld [vmem:[%s1932_s1 + $0x370] sm:$0xff] }
  0x2b   :  { %1136 = vmatpush3.bf16.msra.mxu1 %v1135_v7  ;;  %v145_v7 = vld [vmem:[%s1932_s1 + $0x3f0] sm:$0xff]  ;;  %v1155_v11 = vpack.c.bf16 %v128_v4, %v127_v2  ;;  %v98_v14 = vld [vmem:[%s1932_s1 + $0x278] sm:$0xff]  ;;  %v163_v18 = vld [vmem:[%s1932_s1 + $0x480] sm:$0xff] }
  0x2c   :  { %1138 = vmatprep.subr.bf16.mxu1 %v1137_v13  ;;  %v97_v13 = vld [vmem:[%s1932_s1 + $0x270] sm:$0xff]  ;;  %v1157_v16 = vpack.c.bf16 %v146_v8, %v145_v7  ;;  %v130_v17 = vld [vmem:[%s1932_s1 + $0x378] sm:$0xff]  ;;  %v195_v20 = vld [vmem:[%s1932_s1 + $0x580] sm:$0xff] }
  0x2d   :  { %1108 = vmatpush3.bf16.msra.mxu0 %v1107_v19  ;;  %v164_v19 = vld [vmem:[%s1932_s1 + $0x488] sm:$0xff]  ;;  %v147_v23 = vld [vmem:[%s1932_s1 + $0x400] sm:$0xff]  ;;  %v1159_v24 = vpack.c.bf16 %v130_v17, %v129_v15  ;;  %v165_v30 = vld [vmem:[%s1932_s1 + $0x490] sm:$0xff] }
  0x2e   :  { %1110 = vmatprep.subr.bf16.mxu0 %v1109_v22  ;;  %v1127_v22 = vpack.c.bf16 %v98_v14, %v97_v13  ;;  %v1161_v25 = vpack.c.bf16 %v164_v19, %v163_v18  ;;  %v179_v27 = vld [vmem:[%s1932_s1 + $0x500] sm:$0xff]  ;;  %v180_v28 = vld [vmem:[%s1932_s1 + $0x508] sm:$0xff]  ;;  %v166_v31 = vld [vmem:[%s1932_s1 + $0x498] sm:$0xff] }
  0x2f   :  { %1140 = vmatpush3.bf16.msra.mxu1 %v1139_v21  ;;  %v196_v21 = vld [vmem:[%s1932_s1 + $0x588] sm:$0xff]  ;;  %v197_v33 = vld [vmem:[%s1932_s1 + $0x590] sm:$0xff]  ;;  %v1165_v38 = vpack.c.bf16 %v166_v31, %v165_v30  ;;  %v150_v40 = vld [vmem:[%s1932_s1 + $0x418] sm:$0xff] }
  0x30   :  { %1142 = vmatprep.subr.bf16.mxu1 %v1141_v26  ;;  %v148_v26 = vld [vmem:[%s1932_s1 + $0x408] sm:$0xff]  ;;  %v1193_v29 = vpack.c.bf16 %v196_v21, %v195_v20  ;;  %v17_v37 = vld [vmem:[%s1931_s0 + $0x10] sm:$0xff]  ;;  %v182_v46 = vld [vmem:[%s1932_s1 + $0x518] sm:$0xff] }
  0x31   :  { %1112 = vmatpush3.bf16.msra.mxu0 %v1111_v34  ;;  %v198_v34 = vld [vmem:[%s1932_s1 + $0x598] sm:$0xff]  ;;  %v149_v39 = vld [vmem:[%s1932_s1 + $0x410] sm:$0xff]  ;;  %v1741_v43 = vrot.slane %v17_v37, %v1432_v10  ;;  %v260_v44 = vcombine.high %v17_v37, %v17_v37  ;;  %v167_v47 = vld [vmem:[%s1932_s1 + $0x4a0] sm:$0xff] }
  0x32   :  { %1114 = vmatprep.subr.bf16.mxu0 %v1113_v36  ;;  %v1195_v36 = vpack.c.bf16 %v180_v28, %v179_v27  ;;  %v1197_v45 = vpack.c.bf16 %v198_v34, %v197_v33  ;;  %v168_v48 = vld [vmem:[%s1932_s1 + $0x4a8] sm:$0xff] }
  0x33   :  { %1144 = vmatpush3.bf16.msra.mxu1 %v1143_v35  ;;  %v1163_v35 = vpack.c.bf16 %v148_v26, %v147_v23  ;;  %v1762_v52 = vrot.slane %v260_v44, %v1432_v10 }
  0x34   :  { %1146 = vmatprep.subr.bf16.mxu1 %v1145_v42  ;;  %v181_v42 = vld [vmem:[%s1932_s1 + $0x510] sm:$0xff] }
  0x35   :  { %1116 = vmatpush3.bf16.msra.mxu0 %v1115_v49  ;;  %v199_v49 = vld [vmem:[%s1932_s1 + $0x5a0] sm:$0xff] }
  0x36   :  { %1118 = vmatprep.subr.bf16.mxu0 %v1117_v51  ;;  %v275_v51 = vcombine.high %v1741_v43, %v1741_v43 }
  0x37   :  { %1148 = vmatpush3.bf16.msra.mxu1 %v1147_v50  ;;  %v200_v50 = vld [vmem:[%s1932_s1 + $0x5a8] sm:$0xff] }
  0x38   :  { %1150 = vmatprep.subr.bf16.mxu1 %v1149_v55 }
  0x39   :  { %1120 = vmatpush3.bf16.msra.mxu0 %v1119_v61 }
  0x3a   :  { %1122 = vmatprep.subr.bf16.mxu0 %v1121_v63 }
  0x3b   :  { %1152 = vmatpush3.bf16.msra.mxu1 %v1151_v62 }
  0x3c   :  { %1154 = vmatprep.subr.bf16.mxu1 %v1153_v3 }
  0x3d   :  { %1124 = vmatpush3.bf16.msra.mxu0 %v1123_v9 }
  0x3e   :  { %1126 = vmatprep.subr.bf16.mxu0 %v1125_v12 }
  0x3f   :  { %1156 = vmatpush3.bf16.msra.mxu1 %v1155_v11 }
  0x40   :  { %1158 = vmatprep.subr.bf16.mxu1 %v1157_v16 }
  0x41   :  { %1128 = vmatpush3.bf16.msra.mxu0 %v1127_v22 }
  0x42   :  { %1162 = vmatprep.subr.bf16.mxu0 %v1161_v25 }
  0x43   :  { %1160 = vmatpush3.bf16.msra.mxu1 %v1159_v24 }
  0x44   :  { %1194 = vmatprep.subr.bf16.mxu1 %v1193_v29  ;;  %504 = vmatmul.mubr.f32.vlgmr.msra.gmra.mrb[2].mxu0 %v1599_v32 }
  0x45   :  { %8 = vsyncpa [#allocation3], 0  ;;  %1164 = vmatpush3.bf16.msra.mxu0 %v1163_v35  ;;  %v1167_v53 = vpack.c.bf16 %v150_v40, %v149_v39  ;;  %v1199_v32 = vpack.c.bf16 %v182_v46, %v181_v42  ;;  %v1169_v54 = vpack.c.bf16 %v168_v48, %v167_v47  ;;  %v151_v55 = vld [vmem:[%s1932_s1 + $0x420] sm:$0xff]  ;;  %v152_v56 = vld [vmem:[%s1932_s1 + $0x428] sm:$0xff]  ;;  %v1201_v57 = vpack.c.bf16 %v200_v50, %v199_v49 }
  0x46   :  { %574 = vmatmul.mubr.f32.vlgmr.msra.gmra.mrb[2].mxu1 %v1613_v41  ;;  %1166 = vmatprep.subr.bf16.mxu0 %v1165_v38  ;;  %v183_v10 = vld [vmem:[%s1932_s1 + $0x520] sm:$0xff]  ;;  %v276_v41 = vcombine.high %v1762_v52, %v1762_v52  ;;  %v184_v58 = vld [vmem:[%s1932_s1 + $0x528] sm:$0xff]  ;;  %v169_v59 = vld [vmem:[%s1932_s1 + $0x4b0] sm:$0xff]  ;;  %v1171_v63 = vpack.c.bf16 %v152_v56, %v151_v55  ;;  %vm1265_vm0 = vmmov 0   ;;  %vm296_vm1 = vcmask 261120  }
  0x47   :  { %1196 = vmatpush3.bf16.msra.mxu1 %v1195_v36  ;;  %v170_v60 = vld [vmem:[%s1932_s1 + $0x4b8] sm:$0xff]  ;;  %643 = vmatprep.mubr.f32.mxu0 %v275_v51  ;;  %v201_v61 = vld [vmem:[%s1932_s1 + $0x5b0] sm:$0xff]  ;;  %v1203_v0 = vpack.c.bf16 %v184_v58, %v183_v10  ;;  %v171_v7 = vld [vmem:[%s1932_s1 + $0x4c0] sm:$0xff] }
  0x48   :  { %1198 = vmatprep.subr.bf16.mxu1 %v1197_v45  ;;  %v202_v62 = vld [vmem:[%s1932_s1 + $0x5b8] sm:$0xff]  ;;  %713 = vmatprep.mubr.f32.mxu1 %v276_v41  ;;  %v1173_v1 = vpack.c.bf16 %v170_v60, %v169_v59  ;;  %v153_v2 = vld [vmem:[%s1932_s1 + $0x430] sm:$0xff]  ;;  %v172_v8 = vld [vmem:[%s1932_s1 + $0x4c8] sm:$0xff] }
  0x49   :  { %1168 = vmatpush3.bf16.msra.mxu0 %v1167_v53  ;;  %v154_v3 = vld [vmem:[%s1932_s1 + $0x438] sm:$0xff]  ;;  %v185_v4 = vld [vmem:[%s1932_s1 + $0x530] sm:$0xff]  ;;  %v1205_v5 = vpack.c.bf16 %v202_v62, %v201_v61  ;;  %v203_v9 = vld [vmem:[%s1932_s1 + $0x5c0] sm:$0xff]  ;;  %v1177_v14 = vpack.c.bf16 %v172_v8, %v171_v7  ;;  %v1264_v62 = vmov 0.0|0.0  }
  0x4a   :  { %1170 = vmatprep.subr.bf16.mxu0 %v1169_v54  ;;  %v186_v6 = vld [vmem:[%s1932_s1 + $0x538] sm:$0xff]  ;;  %v204_v11 = vld [vmem:[%s1932_s1 + $0x5c8] sm:$0xff]  ;;  %v1175_v12 = vpack.c.bf16 %v154_v3, %v153_v2  ;;  %v155_v15 = vld [vmem:[%s1932_s1 + $0x440] sm:$0xff]  ;;  %v1266_v2 = vmov 0.0  }
  0x4b   :  { %1200 = vmatpush3.bf16.msra.mxu1 %v1199_v32  ;;  %v1207_v13 = vpack.c.bf16 %v186_v6, %v185_v4  ;;  %v156_v16 = vld [vmem:[%s1932_s1 + $0x448] sm:$0xff]  ;;  %v187_v17 = vld [vmem:[%s1932_s1 + $0x540] sm:$0xff]  ;;  %v1209_v18 = vpack.c.bf16 %v204_v11, %v203_v9  ;;  %v173_v20 = vld [vmem:[%s1932_s1 + $0x4d0] sm:$0xff] }
  0x4c   :  { %1202 = vmatprep.subr.bf16.mxu1 %v1201_v57  ;;  %v188_v19 = vld [vmem:[%s1932_s1 + $0x548] sm:$0xff]  ;;  %v174_v21 = vld [vmem:[%s1932_s1 + $0x4d8] sm:$0xff]  ;;  %v205_v22 = vld [vmem:[%s1932_s1 + $0x5d0] sm:$0xff]  ;;  %v1179_v24 = vpack.c.bf16 %v156_v16, %v155_v15 }
  0x4d   :  { %1172 = vmatpush3.bf16.msra.mxu0 %v1171_v63  ;;  %v206_v23 = vld [vmem:[%s1932_s1 + $0x5d8] sm:$0xff]  ;;  %v1211_v25 = vpack.c.bf16 %v188_v19, %v187_v17  ;;  %v1181_v26 = vpack.c.bf16 %v174_v21, %v173_v20  ;;  %v157_v27 = vld [vmem:[%s1932_s1 + $0x450] sm:$0xff]  ;;  %v175_v33 = vld [vmem:[%s1932_s1 + $0x4e0] sm:$0xff] }
  0x4e   :  { %1174 = vmatprep.subr.bf16.mxu0 %v1173_v1  ;;  %v158_v28 = vld [vmem:[%s1932_s1 + $0x458] sm:$0xff]  ;;  %v189_v29 = vld [vmem:[%s1932_s1 + $0x550] sm:$0xff]  ;;  %v1213_v30 = vpack.c.bf16 %v206_v23, %v205_v22  ;;  %v176_v34 = vld [vmem:[%s1932_s1 + $0x4e8] sm:$0xff] }
  0x4f   :  { %1204 = vmatpush3.bf16.msra.mxu1 %v1203_v0  ;;  %v190_v31 = vld [vmem:[%s1932_s1 + $0x558] sm:$0xff]  ;;  %v207_v35 = vld [vmem:[%s1932_s1 + $0x5e0] sm:$0xff]  ;;  %v208_v36 = vld [vmem:[%s1932_s1 + $0x5e8] sm:$0xff]  ;;  %v1183_v37 = vpack.c.bf16 %v158_v28, %v157_v27  ;;  %v1185_v39 = vpack.c.bf16 %v176_v34, %v175_v33 }
  0x50   :  { %1206 = vmatprep.subr.bf16.mxu1 %v1205_v5  ;;  %v1215_v38 = vpack.c.bf16 %v190_v31, %v189_v29  ;;  %v159_v40 = vld [vmem:[%s1932_s1 + $0x460] sm:$0xff]  ;;  %v160_v42 = vld [vmem:[%s1932_s1 + $0x468] sm:$0xff]  ;;  %v1217_v45 = vpack.c.bf16 %v208_v36, %v207_v35  ;;  %v177_v47 = vld [vmem:[%s1932_s1 + $0x4f0] sm:$0xff] }
  0x51   :  { %1176 = vmatpush3.bf16.msra.mxu0 %v1175_v12  ;;  %v191_v44 = vld [vmem:[%s1932_s1 + $0x560] sm:$0xff]  ;;  %v192_v46 = vld [vmem:[%s1932_s1 + $0x568] sm:$0xff]  ;;  %v178_v48 = vld [vmem:[%s1932_s1 + $0x4f8] sm:$0xff]  ;;  %v1187_v51 = vpack.c.bf16 %v160_v42, %v159_v40 }
  0x52   :  { %1178 = vmatprep.subr.bf16.mxu0 %v1177_v14  ;;  %v209_v49 = vld [vmem:[%s1932_s1 + $0x5f0] sm:$0xff]  ;;  %v210_v50 = vld [vmem:[%s1932_s1 + $0x5f8] sm:$0xff]  ;;  %v1219_v53 = vpack.c.bf16 %v192_v46, %v191_v44  ;;  %v1189_v32 = vpack.c.bf16 %v178_v48, %v177_v47  ;;  %v211_v59 = vld [vmem:[%s1932_s1 + $0x600] sm:$0xff] }
  0x53   :  { %1208 = vmatpush3.bf16.msra.mxu1 %v1207_v13  ;;  %v161_v54 = vld [vmem:[%s1932_s1 + $0x470] sm:$0xff]  ;;  %v162_v55 = vld [vmem:[%s1932_s1 + $0x478] sm:$0xff]  ;;  %v1221_v56 = vpack.c.bf16 %v210_v50, %v209_v49  ;;  %v212_v60 = vld [vmem:[%s1932_s1 + $0x608] sm:$0xff] }
  0x54   :  { %1210 = vmatprep.subr.bf16.mxu1 %v1209_v18  ;;  %v193_v10 = vld [vmem:[%s1932_s1 + $0x570] sm:$0xff]  ;;  %v194_v41 = vld [vmem:[%s1932_s1 + $0x578] sm:$0xff]  ;;  %v1191_v57 = vpack.c.bf16 %v162_v55, %v161_v54  ;;  %v1226_v61 = vpack.c.bf16 %v212_v60, %v211_v59 }
  0x55   :  { %1180 = vmatpush3.bf16.msra.mxu0 %v1179_v24  ;;  %v1223_v58 = vpack.c.bf16 %v194_v41, %v193_v10  ;;  %v213_v63 = vld [vmem:[%s1932_s1 + $0x610] sm:$0xff]  ;;  %v214_v0 = vld [vmem:[%s1932_s1 + $0x618] sm:$0xff] }
  0x56   :  { %1182 = vmatprep.subr.bf16.mxu0 %v1181_v26  ;;  %v1229_v1 = vpack.c.bf16 %v214_v0, %v213_v63  ;;  %v805_v3 = vld.sshfl [vmem:[%s1931_s0 + $0x18] sm:$0x3 pattern:$0x76325410]  ;;  %s1267_s0 = smov [#allocation2]  }
  0x57   :  { %1212 = vmatpush3.bf16.msra.mxu1 %v1211_v25 }
  0x58   :  { %1214 = vmatprep.subr.bf16.mxu1 %v1213_v30 }
  0x59   :  { %1184 = vmatpush3.bf16.msra.mxu0 %v1183_v37 }
  0x5a   :  { %1186 = vmatprep.subr.bf16.mxu0 %v1185_v39 }
  0x5b   :  { %1216 = vmatpush3.bf16.msra.mxu1 %v1215_v38 }
  0x5c   :  { %1218 = vmatprep.subr.bf16.mxu1 %v1217_v45 }
  0x5d   :  { %1188 = vmatpush3.bf16.msra.mxu0 %v1187_v51 }
  0x5e   :  { %1190 = vmatprep.subr.bf16.mxu0 %v1189_v32 }
  0x5f   :  { %1220 = vmatpush3.bf16.msra.mxu1 %v1219_v53 }
  0x60   :  { %1222 = vmatprep.subr.bf16.mxu1 %v1221_v56 }
  0x61   :  { %1192 = vmatpush3.bf16.msra.mxu0 %v1191_v57 }
  0x62   :  { %1225 = vmatprep.subr.bf16.mxu0 %v1264_v62 }
  0x63   :  { %1224 = vmatpush3.bf16.msra.mxu1 %v1223_v58 }
  0x64   :  { %644 = vmatmul.mubr.f32.vlgmr.msra.gmra.mrb[4].mxu0 %v1741_v43  ;;  %v804_v43 = vld [vmem:[%s1933_s2] ss:$0 sm:$0xff]  ;;  %s796_s2 = sshll.u32 %s1267_s0, 4  ;;  %s797_s2 = int_to_ptr.vmem [resolvable:$true] %s796_s2 }
  0x65   :  { %1227 = vmatpush3.bf16.msra.mxu0 %v1226_v61  ;;  %1030 = vmatprep.mubr.msk.f32.mxu0 %vm1265_vm0, %v1266_v2  ;;  %s1239_s8 = scalar_lea.vmem %s797_s2, 32  ;;  %p1244_p1 = scmp.lt.s32.totalorder %s797_s2, %s797_s2 }
  0x66   :  { %714 = vmatmul.mubr.f32.vlgmr.msra.gmra.mrb[4].mxu1 %v1762_v52  ;;  %1228 = vmatprep.subr.bf16.mxu0 %v1264_v62  ;;  %p1240_p0 = scmp.ne.s32.totalorder %s797_s2, %s1239_s8  ;;  %p1245_p2 = scmp.lt.s32.totalorder %s1239_s8, %s1239_s8 }
  0x68   :  { %p1246_p3 = por %p1245_p2, %p1244_p1 }
  0x69   :  { %1230 = vmatpush3.bf16.msra.mxu0 %v1229_v1 }
  0x6a   :  { %p1247_p4 = pnand %p1246_p3, %p1240_p0 }
  0x6c   :  { %1031 = vmatmul.mubr.msk.f32.vlgmr.msra.gmra.mrb[6].mxu0 %vm296_vm1, %v805_v3 }
  0xf7   :  { %v839_v4 = vpop.f32.mrb[0].mxu0 }
  0xf8   :  { %v840_v5 = vpop.f32.mrb[1].mxu0 }
  0xf9   :  { %v874_v6 = vpop.f32.mrb[0].mxu1  ;;  %v841_v52 = vadd.f32 %v840_v5, %v839_v4 }
  0xfa   :  { %v875_v7 = vpop.f32.mrb[1].mxu1 }
  0xfb   :  { %v876_v8 = vadd.f32 %v875_v7, %v874_v6  ;;  %v366_v9 = vadd.f32 %v841_v52, %v804_v43 }
  0xfd   :  { %v436_v11 = vadd.f32 %v876_v8, %v366_v9 }
 0x117   :  { %v909_v12 = vpop.f32.mrb[2].mxu0 }
 0x118   :  { %v910_v13 = vpop.f32.mrb[3].mxu0 }
 0x119   :  { %v944_v14 = vpop.f32.mrb[2].mxu1  ;;  %v911_v15 = vadd.f32 %v910_v13, %v909_v12 }
 0x11a   :  { %v945_v16 = vpop.f32.mrb[3].mxu1 }
 0x11b   :  { %v946_v17 = vadd.f32 %v945_v16, %v944_v14  ;;  %v506_v18 = vadd.f32 %v911_v15, %v436_v11 }
 0x11d   :  { %v576_v19 = vadd.f32 %v946_v17, %v506_v18 }
 0x137   :  { %v979_v20 = vpop.f32.mrb[4].mxu0 }
 0x138   :  { %v980_v21 = vpop.f32.mrb[5].mxu0 }
 0x139   :  { %v1014_v22 = vpop.f32.mrb[4].mxu1  ;;  %v981_v23 = vadd.f32 %v980_v21, %v979_v20 }
 0x13a   :  { %v1015_v24 = vpop.f32.mrb[5].mxu1 }
 0x13b   :  { %v1016_v25 = vadd.f32 %v1015_v24, %v1014_v22  ;;  %v646_v26 = vadd.f32 %v981_v23, %v576_v19 }
 0x13d   :  { %v716_v27 = vadd.f32 %v1016_v25, %v646_v26 }
 0x13f   :  { %v785_v28 = vpop.f32.mrb[6].mxu0 }
 0x140   :  { %v786_v29 = vadd.f32 %v785_v28, %v716_v27  ;;  %v1032_v30 = vpop.f32.mrb[7].mxu0 }
 0x142   :  { %789 = vst [vmem:[#allocation2] sm:$0x3] %v786_v29 }
 0x143   :  { %1250 = shalt.err (!%p1247_p4)
}
 0x144   :  { %s1251_s11 = scalar_lea.hbm %s1934_s3, 32 }
 0x145   :  { %p1252_p5 = scmp.ne.s32.totalorder %s1934_s3, %s1251_s11  ;;  %p1255_p6 = scmp.lt.u32.totalorder %s1251_s11, %s1934_s3 }
 0x147   :  { %p1257_p7 = pnand %p1255_p6, %p1252_p5 }
 0x149   :  { %1260 = shalt.err (!%p1257_p7)
}
 0x14a   :  { %799 = dma.vmem_to_hbm [thread:$0]  %s797_s2, 32, %s1934_s3, [#allocation3]  }
 0x14b   :  { %1261 = dma.done.wait [#allocation3], 32  }
 0x14c   :  { %1262 = vsyncadd [#allocation3], 4294967264 }
 0x14d   :  { %803 = vsyncpa [#allocation3], 1 }

// kernel: cnn_forward.3
= control target key start
LH: loop header
LB: loop body
LE: loop exit
PB: predicated region body
PF: predicated region fallthrough
CT: control target
= control target key end

     0   :  { %s2493_s12 = smov 0   ;;  %s3592_s0 = inlined_call_operand.vmem [shape: f32[56,28,1], index: 0, kind: input, shape index: {}]   ;;  %s3593_s1 = inlined_call_operand.vmem [shape: f32[25,1,16], index: 1, kind: input, shape index: {}]   ;;  %s3594_s2 = inlined_call_operand.vmem [shape: f32[1,16], index: 2, kind: input, shape index: {}]   ;;  %s3595_s3 = inlined_call_operand.vmem [shape: f32[28,14,16], index: 3, kind: output, shape index: {}]  }
   0x1 LB: > { %s2187_s13 = sadd.s32 4294967295, %s2464_s12   ;;  %p2191_p0 = scmp.ge.s32.totalorder %s2464_s12, 1  ;;  %s2464_s12 = sphi %s2493_s12, %s13_s12  }
   0x2   : > { %p139_p1 = scmp.lt.s32.totalorder %s2464_s12, 3 }
   0x4   : > { %p140_p2 = pnand %p2191_p0, %p139_p1 }
   0x5   : > { %vm179_vm0 = vcmask (!%p140_p2), 7168   ;;  %v2504_v0 = vld [vmem:[%s3594_s2] ss:$0 sm:$0xff] (!%p140_p2)  ;;  %v535_v1 = vlaneseq (!%p140_p2)  ;;  %s2508_s16 = smul.u32 (!%p140_p2), 14, %s2187_s13  ;;  %v2470_v2 = vmov (!%p140_p2), 0.0   ;;  %vm424_vm4 = vcmask (!%p140_p2), 3072  }
   0x6   : > { %143 = sbr.rel (%p140_p2) target bundleno = 730 (0x2da), region = 32  ;;  %188 = vst.msk [vmem:[#allocation2 + $0x40] sm:$0xff] (!%p140_p2), %vm179_vm0, %v2470_v2  ;;  %180 = vst.msk [vmem:[#allocation2] sm:$0xff] (!%p140_p2), %vm179_vm0, %v2470_v2  ;;  %s3018_s26 = smov (!%p140_p2), 0  }
   0x7   : > { %181 = vst.msk [vmem:[#allocation2 + $0x8] sm:$0xff] (!%p140_p2), %vm179_vm0, %v2470_v2  ;;  %182 = vst.msk [vmem:[#allocation2 + $0x10] sm:$0xff] (!%p140_p2), %vm179_vm0, %v2470_v2  ;;  %s165_s17 = smul.u32 (!%p140_p2), 28, %s2187_s13  ;;  %v536_v3 = vshrl.u32 (!%p140_p2), %v535_v1, 7  ;;  %v539_v4 = vand.u32 (!%p140_p2), 127, %v535_v1  ;;  %p173_p3 = scmp.lt.s32.totalorder (!%p140_p2), %s2508_s16, 27 }
   0x8   : > { %183 = vst.msk [vmem:[#allocation2 + $0x18] sm:$0xff] (!%p140_p2), %vm179_vm0, %v2470_v2  ;;  %184 = vst.msk [vmem:[#allocation2 + $0x20] sm:$0xff] (!%p140_p2), %vm179_vm0, %v2470_v2 }
   0x9   : > { %185 = vst.msk [vmem:[#allocation2 + $0x28] sm:$0xff] (!%p140_p2), %vm179_vm0, %v2470_v2  ;;  %186 = vst.msk [vmem:[#allocation2 + $0x30] sm:$0xff] (!%p140_p2), %vm179_vm0, %v2470_v2  ;;  %p166_p4 = scmp.lt.s32.totalorder (!%p140_p2), %s165_s17, 55  ;;  %v537_v5 = vadd.s32 (!%p140_p2), 8, %v536_v3  ;;  %v540_v6 = vmul.u32 (!%p140_p2), 2, %v536_v3 }
   0xa   : > { %187 = vst.msk [vmem:[#allocation2 + $0x38] sm:$0xff] (!%p140_p2), %vm179_vm0, %v2470_v2  ;;  %189 = vst.msk [vmem:[#allocation2 + $0x48] sm:$0xff] (!%p140_p2), %vm179_vm0, %v2470_v2 }
   0xb   : > { %190 = vst.msk [vmem:[#allocation2 + $0x50] sm:$0xff] (!%p140_p2), %vm179_vm0, %v2470_v2  ;;  %191 = vst.msk [vmem:[#allocation2 + $0x58] sm:$0xff] (!%p140_p2), %vm179_vm0, %v2470_v2  ;;  %v541_v7 = vmul.u32 (!%p140_p2), 2, %v537_v5  ;;  %vm542_vm1 = vcmp.eq.s32.totalorder (!%p140_p2), %v539_v4, %v540_v6  ;;  %v548_v8 = vadd.s32 (!%p140_p2), 1, %v540_v6 }
   0xc   : > { %192 = vst.msk [vmem:[#allocation2 + $0x60] sm:$0xff] (!%p140_p2), %vm179_vm0, %v2470_v2  ;;  %193 = vst.msk [vmem:[#allocation2 + $0x68] sm:$0xff] (!%p140_p2), %vm179_vm0, %v2470_v2  ;;  %v2773_v9 = vsel (!%p140_p2), %vm542_vm1, 1.0, %v2470_v2 }
   0xd   : > { %194 = vst.msk [vmem:[#allocation2 + $0x70] sm:$0xff] %vm179_vm0, %v2470_v2  ;;  %195 = vst.msk [vmem:[#allocation2 + $0x78] sm:$0xff] %vm179_vm0, %v2470_v2  ;;  %s3597_s16 = smov (!%p173_p3, %s2508_s16), 27  ;;  %s3599_s17 = smov (!%p166_p4, %s165_s17), 55  ;;  %vm543_vm2 = vcmp.eq.s32.totalorder %v539_v4, %v541_v7  ;;  %v549_v10 = vadd.s32 1, %v541_v7  ;;  %vm550_vm3 = vcmp.eq.s32.totalorder %v539_v4, %v548_v8 }
   0xe   : > { %196 = vst.msk [vmem:[#allocation2 + $0x80] sm:$0xff] %vm179_vm0, %v2470_v2  ;;  %197 = vst.msk [vmem:[#allocation2 + $0x88] sm:$0xff] %vm179_vm0, %v2470_v2  ;;  %s2372_s18 = sshll.u32 %s3597_s16, 4  ;;  %s2371_s22 = sshll.u32 %s3599_s17, 5  ;;  %v2786_v11 = vsel %vm543_vm2, 1.0, %v2470_v2  ;;  %v2789_v12 = vsel %vm550_vm3, 1.0, %v2470_v2 }
   0xf   : > { %198 = vst.msk [vmem:[#allocation2 + $0x90] sm:$0xff] %vm179_vm0, %v2470_v2  ;;  %199 = vst.msk [vmem:[#allocation2 + $0x98] sm:$0xff] %vm179_vm0, %v2470_v2  ;;  %s2778_s21 = scalar_lea.vmem %s3595_s3, %s2372_s18  ;;  %s2783_s25 = scalar_lea.vmem %s3592_s0, %s2371_s22  ;;  %vm551_vm5 = vcmp.eq.s32.totalorder %v539_v4, %v549_v10 }
  0x10   : > { %200 = vst.msk [vmem:[#allocation2 + $0xa0] sm:$0xff] %vm179_vm0, %v2470_v2  ;;  %201 = vst.msk [vmem:[#allocation2 + $0xa8] sm:$0xff] %vm179_vm0, %v2470_v2  ;;  %v308_v13 = vld [vmem:[%s2783_s25] sm:$0xff]  ;;  %v309_v14 = vld [vmem:[%s2783_s25 + $0x8] sm:$0xff]  ;;  %v2801_v19 = vsel %vm551_vm5, 1.0, %v2470_v2 }
  0x11   : > { %202 = vst.msk [vmem:[#allocation2 + $0xb0] sm:$0xff] %vm179_vm0, %v2470_v2  ;;  %203 = vst.msk [vmem:[#allocation2 + $0xb8] sm:$0xff] %vm179_vm0, %v2470_v2  ;;  %v310_v15 = vld [vmem:[%s2783_s25 + $0x10] sm:$0xff]  ;;  %v311_v16 = vld [vmem:[%s2783_s25 + $0x18] sm:$0xf] }
  0x12   : > { %204 = vst.msk [vmem:[#allocation2 + $0xc0] sm:$0xff] %vm179_vm0, %v2470_v2  ;;  %205 = vst.msk [vmem:[#allocation2 + $0xc8] sm:$0xff] %vm179_vm0, %v2470_v2  ;;  %v312_v17 = vld [vmem:[%s2783_s25 + $0x20] sm:$0xff]  ;;  %v313_v18 = vld [vmem:[%s2783_s25 + $0x28] sm:$0xff] }
  0x13   : > { %206 = vst.msk [vmem:[#allocation2 + $0xd0] sm:$0xff] %vm179_vm0, %v2470_v2  ;;  %207 = vst.msk [vmem:[#allocation2 + $0xd8] sm:$0xff] %vm179_vm0, %v2470_v2  ;;  %v314_v20 = vld [vmem:[%s2783_s25 + $0x30] sm:$0xff]  ;;  %v315_v21 = vld [vmem:[%s2783_s25 + $0x38] sm:$0xf] }
  0x14   : > { %208 = vst.msk [vmem:[#allocation2 + $0xe0] sm:$0xff] %vm179_vm0, %v2470_v2  ;;  %209 = vst.msk [vmem:[#allocation2 + $0xe8] sm:$0xff] %vm179_vm0, %v2470_v2  ;;  %v316_v22 = vld [vmem:[%s2783_s25 + $0x40] sm:$0xff]  ;;  %v317_v23 = vld [vmem:[%s2783_s25 + $0x48] sm:$0xff] }
  0x15   : > { %210 = vst.msk [vmem:[#allocation2 + $0xf0] sm:$0xff] %vm179_vm0, %v2470_v2  ;;  %211 = vst.msk [vmem:[#allocation2 + $0xf8] sm:$0xff] %vm179_vm0, %v2470_v2  ;;  %v318_v24 = vld [vmem:[%s2783_s25 + $0x50] sm:$0xff]  ;;  %v319_v25 = vld [vmem:[%s2783_s25 + $0x58] sm:$0xf] }
  0x16   : > { %212 = vst.msk [vmem:[#allocation2 + $0x100] sm:$0xff] %vm179_vm0, %v2470_v2  ;;  %213 = vst.msk [vmem:[#allocation2 + $0x108] sm:$0xff] %vm179_vm0, %v2470_v2  ;;  %v320_v26 = vld [vmem:[%s2783_s25 + $0x60] sm:$0xff]  ;;  %v321_v27 = vld [vmem:[%s2783_s25 + $0x68] sm:$0xff] }
  0x17   : > { %214 = vst.msk [vmem:[#allocation2 + $0x110] sm:$0xff] %vm179_vm0, %v2470_v2  ;;  %215 = vst.msk [vmem:[#allocation2 + $0x118] sm:$0xff] %vm179_vm0, %v2470_v2  ;;  %v322_v28 = vld [vmem:[%s2783_s25 + $0x70] sm:$0xff]  ;;  %v323_v29 = vld [vmem:[%s2783_s25 + $0x78] sm:$0xf] }
  0x18   : > { %216 = vst.msk [vmem:[#allocation2 + $0x120] sm:$0xff] %vm179_vm0, %v2470_v2  ;;  %217 = vst.msk [vmem:[#allocation2 + $0x128] sm:$0xff] %vm179_vm0, %v2470_v2  ;;  %v324_v30 = vld [vmem:[%s2783_s25 + $0x80] sm:$0xff]  ;;  %v325_v31 = vld [vmem:[%s2783_s25 + $0x88] sm:$0xff] }
  0x19   : > { %218 = vst.msk [vmem:[#allocation2 + $0x130] sm:$0xff] %vm179_vm0, %v2470_v2  ;;  %219 = vst.msk [vmem:[#allocation2 + $0x138] sm:$0xff] %vm179_vm0, %v2470_v2  ;;  %v326_v32 = vld [vmem:[%s2783_s25 + $0x90] sm:$0xff]  ;;  %v327_v33 = vld [vmem:[%s2783_s25 + $0x98] sm:$0xf] }
  0x1a   : > { %220 = vst.msk [vmem:[#allocation2 + $0x140] sm:$0xff] %vm179_vm0, %v2470_v2  ;;  %221 = vst.msk [vmem:[#allocation2 + $0x148] sm:$0xff] %vm179_vm0, %v2470_v2  ;;  %v328_v34 = vld [vmem:[%s2783_s25 + $0xa0] sm:$0xff]  ;;  %v329_v35 = vld [vmem:[%s2783_s25 + $0xa8] sm:$0xff] }
  0x1b   : > { %222 = vst.msk [vmem:[#allocation2 + $0x150] sm:$0xff] %vm179_vm0, %v2470_v2  ;;  %223 = vst.msk [vmem:[#allocation2 + $0x158] sm:$0xff] %vm179_vm0, %v2470_v2  ;;  %v330_v36 = vld [vmem:[%s2783_s25 + $0xb0] sm:$0xff]  ;;  %v331_v37 = vld [vmem:[%s2783_s25 + $0xb8] sm:$0xf] }
  0x1c   : > { %224 = vst.msk [vmem:[#allocation2 + $0x160] sm:$0xff] %vm179_vm0, %v2470_v2  ;;  %225 = vst.msk [vmem:[#allocation2 + $0x168] sm:$0xff] %vm179_vm0, %v2470_v2  ;;  %v332_v38 = vld [vmem:[%s2783_s25 + $0xc0] sm:$0xff]  ;;  %v333_v39 = vld [vmem:[%s2783_s25 + $0xc8] sm:$0xff] }
  0x1d   : > { %226 = vst.msk [vmem:[#allocation2 + $0x170] sm:$0xff] %vm179_vm0, %v2470_v2  ;;  %227 = vst.msk [vmem:[#allocation2 + $0x178] sm:$0xff] %vm179_vm0, %v2470_v2  ;;  %v334_v40 = vld [vmem:[%s2783_s25 + $0xd0] sm:$0xff]  ;;  %v335_v41 = vld [vmem:[%s2783_s25 + $0xd8] sm:$0xf] }
  0x1e   : > { %228 = vst.msk [vmem:[#allocation2 + $0x180] sm:$0xff] %vm179_vm0, %v2470_v2  ;;  %229 = vst.msk [vmem:[#allocation2 + $0x188] sm:$0xff] %vm179_vm0, %v2470_v2  ;;  %v336_v42 = vld [vmem:[%s2783_s25 + $0xe0] sm:$0xff]  ;;  %v337_v43 = vld [vmem:[%s2783_s25 + $0xe8] sm:$0xff] }
  0x1f   : > { %230 = vst.msk [vmem:[#allocation2 + $0x190] sm:$0xff] %vm179_vm0, %v2470_v2  ;;  %231 = vst.msk [vmem:[#allocation2 + $0x198] sm:$0xff] %vm179_vm0, %v2470_v2  ;;  %v338_v44 = vld [vmem:[%s2783_s25 + $0xf0] sm:$0xff]  ;;  %v339_v45 = vld [vmem:[%s2783_s25 + $0xf8] sm:$0xf] }
  0x20   : > { %232 = vst.msk [vmem:[#allocation2 + $0x1a0] sm:$0xff] %vm179_vm0, %v2470_v2  ;;  %233 = vst.msk [vmem:[#allocation2 + $0x1a8] sm:$0xff] %vm179_vm0, %v2470_v2  ;;  %v340_v46 = vld [vmem:[%s2783_s25 + $0x100] sm:$0xff]  ;;  %v341_v47 = vld [vmem:[%s2783_s25 + $0x108] sm:$0xff] }
  0x21   : > { %234 = vst.msk [vmem:[#allocation2 + $0x1b0] sm:$0xff] %vm179_vm0, %v2470_v2  ;;  %235 = vst.msk [vmem:[#allocation2 + $0x1b8] sm:$0xff] %vm179_vm0, %v2470_v2  ;;  %v342_v48 = vld [vmem:[%s2783_s25 + $0x110] sm:$0xff]  ;;  %v343_v49 = vld [vmem:[%s2783_s25 + $0x118] sm:$0xf] }
  0x22   : > { %236 = vst.msk [vmem:[#allocation2 + $0x1c0] sm:$0xff] %vm179_vm0, %v2470_v2  ;;  %237 = vst.msk [vmem:[#allocation2 + $0x1c8] sm:$0xff] %vm179_vm0, %v2470_v2  ;;  %v344_v50 = vld [vmem:[%s2783_s25 + $0x120] sm:$0xff]  ;;  %v345_v51 = vld [vmem:[%s2783_s25 + $0x128] sm:$0xff] }
  0x23   : > { %238 = vst.msk [vmem:[#allocation2 + $0x1d0] sm:$0xff] %vm179_vm0, %v2470_v2  ;;  %239 = vst.msk [vmem:[#allocation2 + $0x1d8] sm:$0xff] %vm179_vm0, %v2470_v2  ;;  %v346_v52 = vld [vmem:[%s2783_s25 + $0x130] sm:$0xff]  ;;  %v347_v53 = vld [vmem:[%s2783_s25 + $0x138] sm:$0xf] }
  0x24   : > { %240 = vst.msk [vmem:[#allocation2 + $0x1e0] sm:$0xff] %vm179_vm0, %v2470_v2  ;;  %241 = vst.msk [vmem:[#allocation2 + $0x1e8] sm:$0xff] %vm179_vm0, %v2470_v2  ;;  %v348_v54 = vld [vmem:[%s2783_s25 + $0x140] sm:$0xff]  ;;  %v349_v55 = vld [vmem:[%s2783_s25 + $0x148] sm:$0xff] }
  0x25   : > { %242 = vst.msk [vmem:[#allocation2 + $0x1f0] sm:$0xff] %vm179_vm0, %v2470_v2  ;;  %243 = vst.msk [vmem:[#allocation2 + $0x1f8] sm:$0xff] %vm179_vm0, %v2470_v2  ;;  %v350_v56 = vld [vmem:[%s2783_s25 + $0x150] sm:$0xff]  ;;  %v351_v57 = vld [vmem:[%s2783_s25 + $0x158] sm:$0xf] }
  0x26   : > { %244 = vst.msk [vmem:[#allocation2 + $0x200] sm:$0xff] %vm179_vm0, %v2470_v2  ;;  %245 = vst.msk [vmem:[#allocation2 + $0x208] sm:$0xff] %vm179_vm0, %v2470_v2  ;;  %v352_v58 = vld [vmem:[%s2783_s25 + $0x160] sm:$0xff]  ;;  %v353_v59 = vld [vmem:[%s2783_s25 + $0x168] sm:$0xff] }
  0x27   : > { %246 = vst.msk [vmem:[#allocation2 + $0x210] sm:$0xff] %vm179_vm0, %v2470_v2  ;;  %247 = vst.msk [vmem:[#allocation2 + $0x218] sm:$0xff] %vm179_vm0, %v2470_v2  ;;  %v354_v60 = vld [vmem:[%s2783_s25 + $0x170] sm:$0xff]  ;;  %v355_v61 = vld [vmem:[%s2783_s25 + $0x178] sm:$0xf] }
  0x28   : > { %248 = vst.msk [vmem:[#allocation2 + $0x220] sm:$0xff] %vm179_vm0, %v2470_v2  ;;  %249 = vst.msk [vmem:[#allocation2 + $0x228] sm:$0xff] %vm179_vm0, %v2470_v2  ;;  %v356_v62 = vld [vmem:[%s2783_s25 + $0x180] sm:$0xff]  ;;  %v357_v63 = vld [vmem:[%s2783_s25 + $0x188] sm:$0xff] }
  0x29   : > { %250 = vst.msk [vmem:[#allocation2 + $0x230] sm:$0xff] %vm179_vm0, %v2470_v2  ;;  %251 = vst.msk [vmem:[#allocation2 + $0x238] sm:$0xff] %vm179_vm0, %v2470_v2  ;;  %v358_v1 = vld [vmem:[%s2783_s25 + $0x190] sm:$0xff]  ;;  %v360_v3 = vld [vmem:[%s2783_s25 + $0x1a0] sm:$0xff] }
  0x2a   : > { %252 = vst.msk [vmem:[#allocation2 + $0x240] sm:$0xff] %vm179_vm0, %v2470_v2  ;;  %253 = vst.msk [vmem:[#allocation2 + $0x248] sm:$0xff] %vm179_vm0, %v2470_v2  ;;  %v361_v4 = vld [vmem:[%s2783_s25 + $0x1a8] sm:$0xff]  ;;  %v362_v5 = vld [vmem:[%s2783_s25 + $0x1b0] sm:$0xff] }
  0x2b   : > { %254 = vst.msk [vmem:[#allocation2 + $0x250] sm:$0xff] %vm179_vm0, %v2470_v2  ;;  %255 = vst.msk [vmem:[#allocation2 + $0x258] sm:$0xff] %vm179_vm0, %v2470_v2  ;;  %v363_v6 = vld [vmem:[%s2783_s25 + $0x1b8] sm:$0xf]  ;;  %v364_v7 = vld [vmem:[%s2783_s25 + $0x1c0] sm:$0xff] }
  0x2c   : > { %256 = vst.msk [vmem:[#allocation2 + $0x260] sm:$0xff] %vm179_vm0, %v2470_v2  ;;  %257 = vst.msk [vmem:[#allocation2 + $0x268] sm:$0xff] %vm179_vm0, %v2470_v2  ;;  %v365_v8 = vld [vmem:[%s2783_s25 + $0x1c8] sm:$0xff]  ;;  %v366_v10 = vld [vmem:[%s2783_s25 + $0x1d0] sm:$0xff] }
  0x2d   : > { %258 = vst.msk [vmem:[#allocation2 + $0x270] sm:$0xff] %vm179_vm0, %v2470_v2  ;;  %259 = vst.msk [vmem:[#allocation2 + $0x278] sm:$0xff] %vm179_vm0, %v2470_v2 }
  0x2e   : > { %260 = vst.msk [vmem:[#allocation2 + $0x280] sm:$0xff] %vm179_vm0, %v2470_v2  ;;  %261 = vst.msk [vmem:[#allocation2 + $0x288] sm:$0xff] %vm179_vm0, %v2470_v2 }
  0x2f   : > { %262 = vst.msk [vmem:[#allocation2 + $0x290] sm:$0xff] %vm179_vm0, %v2470_v2  ;;  %263 = vst.msk [vmem:[#allocation2 + $0x298] sm:$0xff] %vm179_vm0, %v2470_v2 }
  0x30   : > { %264 = vst.msk [vmem:[#allocation2 + $0x2a0] sm:$0xff] %vm179_vm0, %v2470_v2  ;;  %265 = vst.msk [vmem:[#allocation2 + $0x2a8] sm:$0xff] %vm179_vm0, %v2470_v2 }
  0x31   : > { %266 = vst.msk [vmem:[#allocation2 + $0x2b0] sm:$0xff] %vm179_vm0, %v2470_v2  ;;  %267 = vst.msk [vmem:[#allocation2 + $0x2b8] sm:$0xff] %vm179_vm0, %v2470_v2 }
  0x32   : > { %268 = vst.msk [vmem:[#allocation2 + $0x2c0] sm:$0xff] %vm179_vm0, %v2470_v2  ;;  %269 = vst.msk [vmem:[#allocation2 + $0x2c8] sm:$0xff] %vm179_vm0, %v2470_v2 }
  0x33   : > { %270 = vst.msk [vmem:[#allocation2 + $0x2d0] sm:$0xff] %vm179_vm0, %v2470_v2  ;;  %271 = vst.msk [vmem:[#allocation2 + $0x2d8] sm:$0xff] %vm179_vm0, %v2470_v2 }
  0x34   : > { %272 = vst.msk [vmem:[#allocation2 + $0x2e0] sm:$0xff] %vm179_vm0, %v2470_v2  ;;  %273 = vst.msk [vmem:[#allocation2 + $0x2e8] sm:$0xff] %vm179_vm0, %v2470_v2 }
  0x35   : > { %274 = vst.msk [vmem:[#allocation2 + $0x2f0] sm:$0xff] %vm179_vm0, %v2470_v2  ;;  %275 = vst.msk [vmem:[#allocation2 + $0x2f8] sm:$0xff] %vm179_vm0, %v2470_v2 }
  0x36   : > { %276 = vst.msk [vmem:[#allocation2 + $0x300] sm:$0xff] %vm179_vm0, %v2470_v2  ;;  %277 = vst.msk [vmem:[#allocation2 + $0x308] sm:$0xff] %vm179_vm0, %v2470_v2 }
  0x37   : > { %278 = vst.msk [vmem:[#allocation2 + $0x310] sm:$0xff] %vm179_vm0, %v2470_v2  ;;  %279 = vst.msk [vmem:[#allocation2 + $0x318] sm:$0xff] %vm179_vm0, %v2470_v2 }
  0x38   : > { %280 = vst.msk [vmem:[#allocation2 + $0x320] sm:$0xff] %vm179_vm0, %v2470_v2  ;;  %281 = vst.msk [vmem:[#allocation2 + $0x328] sm:$0xff] %vm179_vm0, %v2470_v2 }
  0x39   : > { %282 = vst.msk [vmem:[#allocation2 + $0x330] sm:$0xff] %vm179_vm0, %v2470_v2  ;;  %283 = vst.msk [vmem:[#allocation2 + $0x338] sm:$0xff] %vm179_vm0, %v2470_v2 }
  0x3a   : > { %284 = vst.msk [vmem:[#allocation2 + $0x340] sm:$0xff] %vm179_vm0, %v2470_v2  ;;  %285 = vst.msk [vmem:[#allocation2 + $0x348] sm:$0xff] %vm179_vm0, %v2470_v2 }
  0x3b   : > { %286 = vst.msk [vmem:[#allocation2 + $0x350] sm:$0xff] %vm179_vm0, %v2470_v2  ;;  %287 = vst.msk [vmem:[#allocation2 + $0x358] sm:$0xff] %vm179_vm0, %v2470_v2 }
  0x3c   : > { %288 = vst.msk [vmem:[#allocation2 + $0x360] sm:$0xff] %vm179_vm0, %v2470_v2  ;;  %289 = vst.msk [vmem:[#allocation2 + $0x368] sm:$0xff] %vm179_vm0, %v2470_v2 }
  0x3d   : > { %290 = vst.msk [vmem:[#allocation2 + $0x370] sm:$0xff] %vm179_vm0, %v2470_v2  ;;  %291 = vst.msk [vmem:[#allocation2 + $0x378] sm:$0xff] %vm179_vm0, %v2470_v2 }
  0x3e   : > { %292 = vst.msk [vmem:[#allocation2 + $0x380] sm:$0xff] %vm179_vm0, %v2470_v2  ;;  %293 = vst.msk [vmem:[#allocation2 + $0x388] sm:$0xff] %vm179_vm0, %v2470_v2 }
  0x3f   : > { %294 = vst.msk [vmem:[#allocation2 + $0x390] sm:$0xff] %vm179_vm0, %v2470_v2  ;;  %295 = vst.msk [vmem:[#allocation2 + $0x398] sm:$0xff] %vm179_vm0, %v2470_v2 }
  0x40   : > { %296 = vst.msk [vmem:[#allocation2 + $0x3a0] sm:$0xff] %vm179_vm0, %v2470_v2  ;;  %297 = vst.msk [vmem:[#allocation2 + $0x3a8] sm:$0xff] %vm179_vm0, %v2470_v2 }
  0x41   : > { %298 = vst.msk [vmem:[#allocation2 + $0x3b0] sm:$0xff] %vm179_vm0, %v2470_v2  ;;  %299 = vst.msk [vmem:[#allocation2 + $0x3b8] sm:$0xff] %vm179_vm0, %v2470_v2 }
  0x42   : > { %300 = vst.msk [vmem:[#allocation2 + $0x3c0] sm:$0xff] %vm179_vm0, %v2470_v2  ;;  %301 = vst.msk [vmem:[#allocation2 + $0x3c8] sm:$0xff] %vm179_vm0, %v2470_v2 }
  0x43   : > { %302 = vst.msk [vmem:[#allocation2 + $0x3d0] sm:$0xff] %vm179_vm0, %v2470_v2  ;;  %303 = vst.msk [vmem:[#allocation2 + $0x3d8] sm:$0xff] %vm179_vm0, %v2470_v2 }
  0x44   : > { %304 = vst.msk [vmem:[#allocation2 + $0x3e0] sm:$0xff] %vm179_vm0, %v2470_v2  ;;  %305 = vst.msk [vmem:[#allocation2 + $0x3e8] sm:$0xff] %vm179_vm0, %v2470_v2 }
  0x45   : > { %306 = vst.msk [vmem:[#allocation2 + $0x3f0] sm:$0xff] %vm179_vm0, %v2470_v2  ;;  %307 = vst.msk [vmem:[#allocation2 + $0x3f8] sm:$0xff] %vm179_vm0, %v2470_v2  ;;  %v359_v2 = vld [vmem:[%s2783_s25 + $0x198] sm:$0xf] }
  0x46   : > { %421 = vst.msk [vmem:[#allocation2 + $0x42] sm:$0xff] %vm179_vm0, %v308_v13  ;;  %422 = vst.msk [vmem:[#allocation2 + $0x4a] sm:$0xff] %vm179_vm0, %v309_v14  ;;  %v367_v13 = vld [vmem:[%s2783_s25 + $0x1d8] sm:$0xf]  ;;  %v368_v14 = vld [vmem:[%s2783_s25 + $0x1e0] sm:$0xff] }
  0x47   : > { %423 = vst.msk [vmem:[#allocation2 + $0x52] sm:$0xff] %vm179_vm0, %v310_v15  ;;  %426 = vst.msk [vmem:[#allocation2 + $0x62] sm:$0xff] %vm179_vm0, %v312_v17  ;;  %v369_v15 = vld [vmem:[%s2783_s25 + $0x1e8] sm:$0xff]  ;;  %v371_v17 = vld [vmem:[%s2783_s25 + $0x1f8] sm:$0xf] }
  0x48   : > { %425 = vst.msk [vmem:[#allocation2 + $0x5a] sm:$0xf] %vm424_vm4, %v311_v16  ;;  %429 = vst.msk [vmem:[#allocation2 + $0x7a] sm:$0xf] %vm424_vm4, %v315_v21  ;;  %v370_v16 = vld [vmem:[%s2783_s25 + $0x1f0] sm:$0xff] }
  0x49   : > { %427 = vst.msk [vmem:[#allocation2 + $0x6a] sm:$0xff] %vm179_vm0, %v313_v18  ;;  %428 = vst.msk [vmem:[#allocation2 + $0x72] sm:$0xff] %vm179_vm0, %v314_v20  ;;  %v372_v18 = vld [vmem:[%s2783_s25 + $0x200] sm:$0xff]  ;;  %v373_v20 = vld [vmem:[%s2783_s25 + $0x208] sm:$0xff] }
  0x4a   : > { %430 = vst.msk [vmem:[#allocation2 + $0x82] sm:$0xff] %vm179_vm0, %v316_v22  ;;  %431 = vst.msk [vmem:[#allocation2 + $0x8a] sm:$0xff] %vm179_vm0, %v317_v23  ;;  %v374_v21 = vld [vmem:[%s2783_s25 + $0x210] sm:$0xff]  ;;  %v375_v22 = vld [vmem:[%s2783_s25 + $0x218] sm:$0xf] }
  0x4b   : > { %432 = vst.msk [vmem:[#allocation2 + $0x92] sm:$0xff] %vm179_vm0, %v318_v24  ;;  %434 = vst.msk [vmem:[#allocation2 + $0xa2] sm:$0xff] %vm179_vm0, %v320_v26  ;;  %v376_v23 = vld [vmem:[%s2783_s25 + $0x220] sm:$0xff]  ;;  %v377_v24 = vld [vmem:[%s2783_s25 + $0x228] sm:$0xff] }
  0x4c   : > { %433 = vst.msk [vmem:[#allocation2 + $0x9a] sm:$0xf] %vm424_vm4, %v319_v25  ;;  %437 = vst.msk [vmem:[#allocation2 + $0xba] sm:$0xf] %vm424_vm4, %v323_v29  ;;  %v378_v25 = vld [vmem:[%s2783_s25 + $0x230] sm:$0xff] }
  0x4d   : > { %435 = vst.msk [vmem:[#allocation2 + $0xaa] sm:$0xff] %vm179_vm0, %v321_v27  ;;  %436 = vst.msk [vmem:[#allocation2 + $0xb2] sm:$0xff] %vm179_vm0, %v322_v28  ;;  %v379_v26 = vld [vmem:[%s2783_s25 + $0x238] sm:$0xf]  ;;  %v380_v27 = vld [vmem:[%s2783_s25 + $0x240] sm:$0xff] }
  0x4e   : > { %438 = vst.msk [vmem:[#allocation2 + $0xc2] sm:$0xff] %vm179_vm0, %v324_v30  ;;  %439 = vst.msk [vmem:[#allocation2 + $0xca] sm:$0xff] %vm179_vm0, %v325_v31  ;;  %v381_v28 = vld [vmem:[%s2783_s25 + $0x248] sm:$0xff]  ;;  %v382_v29 = vld [vmem:[%s2783_s25 + $0x250] sm:$0xff] }
  0x4f   : > { %440 = vst.msk [vmem:[#allocation2 + $0xd2] sm:$0xff] %vm179_vm0, %v326_v32  ;;  %442 = vst.msk [vmem:[#allocation2 + $0xe2] sm:$0xff] %vm179_vm0, %v328_v34  ;;  %v383_v30 = vld [vmem:[%s2783_s25 + $0x258] sm:$0xf]  ;;  %v384_v31 = vld [vmem:[%s2783_s25 + $0x260] sm:$0xff] }
  0x50   : > { %441 = vst.msk [vmem:[#allocation2 + $0xda] sm:$0xf] %vm424_vm4, %v327_v33  ;;  %445 = vst.msk [vmem:[#allocation2 + $0xfa] sm:$0xf] %vm424_vm4, %v331_v37  ;;  %v385_v32 = vld [vmem:[%s2783_s25 + $0x268] sm:$0xff]  ;;  %v386_v33 = vld [vmem:[%s2783_s25 + $0x270] sm:$0xff] }
  0x51   : > { %443 = vst.msk [vmem:[#allocation2 + $0xea] sm:$0xff] %vm179_vm0, %v329_v35  ;;  %444 = vst.msk [vmem:[#allocation2 + $0xf2] sm:$0xff] %vm179_vm0, %v330_v36  ;;  %v387_v34 = vld [vmem:[%s2783_s25 + $0x278] sm:$0xf]  ;;  %v388_v35 = vld [vmem:[%s2783_s25 + $0x280] sm:$0xff] }
  0x52   : > { %446 = vst.msk [vmem:[#allocation2 + $0x102] sm:$0xff] %vm179_vm0, %v332_v38  ;;  %447 = vst.msk [vmem:[#allocation2 + $0x10a] sm:$0xff] %vm179_vm0, %v333_v39  ;;  %v389_v36 = vld [vmem:[%s2783_s25 + $0x288] sm:$0xff]  ;;  %v390_v37 = vld [vmem:[%s2783_s25 + $0x290] sm:$0xff] }
  0x53   : > { %448 = vst.msk [vmem:[#allocation2 + $0x112] sm:$0xff] %vm179_vm0, %v334_v40  ;;  %450 = vst.msk [vmem:[#allocation2 + $0x122] sm:$0xff] %vm179_vm0, %v336_v42  ;;  %v391_v38 = vld [vmem:[%s2783_s25 + $0x298] sm:$0xf]  ;;  %v392_v39 = vld [vmem:[%s2783_s25 + $0x2a0] sm:$0xff] }
  0x54   : > { %449 = vst.msk [vmem:[#allocation2 + $0x11a] sm:$0xf] %vm424_vm4, %v335_v41  ;;  %453 = vst.msk [vmem:[#allocation2 + $0x13a] sm:$0xf] %vm424_vm4, %v339_v45  ;;  %v393_v40 = vld [vmem:[%s2783_s25 + $0x2a8] sm:$0xff]  ;;  %v394_v41 = vld [vmem:[%s2783_s25 + $0x2b0] sm:$0xff] }
  0x55   : > { %451 = vst.msk [vmem:[#allocation2 + $0x12a] sm:$0xff] %vm179_vm0, %v337_v43  ;;  %452 = vst.msk [vmem:[#allocation2 + $0x132] sm:$0xff] %vm179_vm0, %v338_v44  ;;  %v395_v42 = vld [vmem:[%s2783_s25 + $0x2b8] sm:$0xf]  ;;  %v396_v43 = vld [vmem:[%s2783_s25 + $0x2c0] sm:$0xff] }
  0x56   : > { %454 = vst.msk [vmem:[#allocation2 + $0x142] sm:$0xff] %vm179_vm0, %v340_v46  ;;  %455 = vst.msk [vmem:[#allocation2 + $0x14a] sm:$0xff] %vm179_vm0, %v341_v47  ;;  %v397_v44 = vld [vmem:[%s2783_s25 + $0x2c8] sm:$0xff]  ;;  %v398_v45 = vld [vmem:[%s2783_s25 + $0x2d0] sm:$0xff] }
  0x57   : > { %456 = vst.msk [vmem:[#allocation2 + $0x152] sm:$0xff] %vm179_vm0, %v342_v48  ;;  %458 = vst.msk [vmem:[#allocation2 + $0x162] sm:$0xff] %vm179_vm0, %v344_v50  ;;  %v399_v46 = vld [vmem:[%s2783_s25 + $0x2d8] sm:$0xf]  ;;  %v400_v47 = vld [vmem:[%s2783_s25 + $0x2e0] sm:$0xff] }
  0x58   : > { %457 = vst.msk [vmem:[#allocation2 + $0x15a] sm:$0xf] %vm424_vm4, %v343_v49  ;;  %461 = vst.msk [vmem:[#allocation2 + $0x17a] sm:$0xf] %vm424_vm4, %v347_v53  ;;  %v401_v48 = vld [vmem:[%s2783_s25 + $0x2e8] sm:$0xff]  ;;  %v402_v49 = vld [vmem:[%s2783_s25 + $0x2f0] sm:$0xff] }
  0x59   : > { %459 = vst.msk [vmem:[#allocation2 + $0x16a] sm:$0xff] %vm179_vm0, %v345_v51  ;;  %460 = vst.msk [vmem:[#allocation2 + $0x172] sm:$0xff] %vm179_vm0, %v346_v52  ;;  %v403_v50 = vld [vmem:[%s2783_s25 + $0x2f8] sm:$0xf]  ;;  %v404_v51 = vld [vmem:[%s2783_s25 + $0x300] sm:$0xff] }
  0x5a   : > { %462 = vst.msk [vmem:[#allocation2 + $0x182] sm:$0xff] %vm179_vm0, %v348_v54  ;;  %463 = vst.msk [vmem:[#allocation2 + $0x18a] sm:$0xff] %vm179_vm0, %v349_v55  ;;  %v405_v52 = vld [vmem:[%s2783_s25 + $0x308] sm:$0xff]  ;;  %v406_v53 = vld [vmem:[%s2783_s25 + $0x310] sm:$0xff] }
  0x5b   : > { %464 = vst.msk [vmem:[#allocation2 + $0x192] sm:$0xff] %vm179_vm0, %v350_v56  ;;  %466 = vst.msk [vmem:[#allocation2 + $0x1a2] sm:$0xff] %vm179_vm0, %v352_v58  ;;  %v407_v54 = vld [vmem:[%s2783_s25 + $0x318] sm:$0xf]  ;;  %v408_v55 = vld [vmem:[%s2783_s25 + $0x320] sm:$0xff] }
  0x5c   : > { %465 = vst.msk [vmem:[#allocation2 + $0x19a] sm:$0xf] %vm424_vm4, %v351_v57  ;;  %469 = vst.msk [vmem:[#allocation2 + $0x1ba] sm:$0xf] %vm424_vm4, %v355_v61  ;;  %v409_v56 = vld [vmem:[%s2783_s25 + $0x328] sm:$0xff]  ;;  %v410_v57 = vld [vmem:[%s2783_s25 + $0x330] sm:$0xff] }
  0x5d   : > { %467 = vst.msk [vmem:[#allocation2 + $0x1aa] sm:$0xff] %vm179_vm0, %v353_v59  ;;  %468 = vst.msk [vmem:[#allocation2 + $0x1b2] sm:$0xff] %vm179_vm0, %v354_v60  ;;  %v411_v58 = vld [vmem:[%s2783_s25 + $0x338] sm:$0xf]  ;;  %v412_v59 = vld [vmem:[%s2783_s25 + $0x340] sm:$0xff] }
  0x5e   : > { %470 = vst.msk [vmem:[#allocation2 + $0x1c2] sm:$0xff] %vm179_vm0, %v356_v62  ;;  %471 = vst.msk [vmem:[#allocation2 + $0x1ca] sm:$0xff] %vm179_vm0, %v357_v63  ;;  %v413_v60 = vld [vmem:[%s2783_s25 + $0x348] sm:$0xff]  ;;  %v414_v61 = vld [vmem:[%s2783_s25 + $0x350] sm:$0xff] }
  0x5f   : > { %472 = vst.msk [vmem:[#allocation2 + $0x1d2] sm:$0xff] %vm179_vm0, %v358_v1  ;;  %474 = vst.msk [vmem:[#allocation2 + $0x1e2] sm:$0xff] %vm179_vm0, %v360_v3  ;;  %v415_v62 = vld [vmem:[%s2783_s25 + $0x358] sm:$0xf]  ;;  %v416_v63 = vld [vmem:[%s2783_s25 + $0x360] sm:$0xff] }
  0x60   : > { %473 = vst.msk [vmem:[#allocation2 + $0x1da] sm:$0xf] %vm424_vm4, %v359_v2  ;;  %477 = vst.msk [vmem:[#allocation2 + $0x1fa] sm:$0xf] %vm424_vm4, %v363_v6  ;;  %v417_v1 = vld [vmem:[%s2783_s25 + $0x368] sm:$0xff]  ;;  %v418_v2 = vld [vmem:[%s2783_s25 + $0x370] sm:$0xff] }
  0x61   : > { %475 = vst.msk [vmem:[#allocation2 + $0x1ea] sm:$0xff] %vm179_vm0, %v361_v4  ;;  %476 = vst.msk [vmem:[#allocation2 + $0x1f2] sm:$0xff] %vm179_vm0, %v362_v5  ;;  %v419_v3 = vld [vmem:[%s2783_s25 + $0x378] sm:$0xf] }
  0x62   : > { %478 = vst.msk [vmem:[#allocation2 + $0x202] sm:$0xff] %vm179_vm0, %v364_v7  ;;  %479 = vst.msk [vmem:[#allocation2 + $0x20a] sm:$0xff] %vm179_vm0, %v365_v8 }
  0x63   : > { %480 = vst.msk [vmem:[#allocation2 + $0x212] sm:$0xff] %vm179_vm0, %v366_v10  ;;  %482 = vst.msk [vmem:[#allocation2 + $0x222] sm:$0xff] %vm179_vm0, %v368_v14 }
  0x64   : > { %481 = vst.msk [vmem:[#allocation2 + $0x21a] sm:$0xf] %vm424_vm4, %v367_v13  ;;  %485 = vst.msk [vmem:[#allocation2 + $0x23a] sm:$0xf] %vm424_vm4, %v371_v17 }
  0x65   : > { %483 = vst.msk [vmem:[#allocation2 + $0x22a] sm:$0xff] %vm179_vm0, %v369_v15  ;;  %484 = vst.msk [vmem:[#allocation2 + $0x232] sm:$0xff] %vm179_vm0, %v370_v16 }
  0x66   : > { %486 = vst.msk [vmem:[#allocation2 + $0x242] sm:$0xff] %vm179_vm0, %v372_v18  ;;  %487 = vst.msk [vmem:[#allocation2 + $0x24a] sm:$0xff] %vm179_vm0, %v373_v20 }
  0x67   : > { %488 = vst.msk [vmem:[#allocation2 + $0x252] sm:$0xff] %vm179_vm0, %v374_v21  ;;  %490 = vst.msk [vmem:[#allocation2 + $0x262] sm:$0xff] %vm179_vm0, %v376_v23 }
  0x68   : > { %489 = vst.msk [vmem:[#allocation2 + $0x25a] sm:$0xf] %vm424_vm4, %v375_v22  ;;  %493 = vst.msk [vmem:[#allocation2 + $0x27a] sm:$0xf] %vm424_vm4, %v379_v26 }
  0x69   : > { %491 = vst.msk [vmem:[#allocation2 + $0x26a] sm:$0xff] %vm179_vm0, %v377_v24  ;;  %492 = vst.msk [vmem:[#allocation2 + $0x272] sm:$0xff] %vm179_vm0, %v378_v25 }
  0x6a   : > { %494 = vst.msk [vmem:[#allocation2 + $0x282] sm:$0xff] %vm179_vm0, %v380_v27  ;;  %495 = vst.msk [vmem:[#allocation2 + $0x28a] sm:$0xff] %vm179_vm0, %v381_v28 }
  0x6b   : > { %496 = vst.msk [vmem:[#allocation2 + $0x292] sm:$0xff] %vm179_vm0, %v382_v29  ;;  %498 = vst.msk [vmem:[#allocation2 + $0x2a2] sm:$0xff] %vm179_vm0, %v384_v31 }
  0x6c   : > { %497 = vst.msk [vmem:[#allocation2 + $0x29a] sm:$0xf] %vm424_vm4, %v383_v30  ;;  %501 = vst.msk [vmem:[#allocation2 + $0x2ba] sm:$0xf] %vm424_vm4, %v387_v34 }
  0x6d   : > { %499 = vst.msk [vmem:[#allocation2 + $0x2aa] sm:$0xff] %vm179_vm0, %v385_v32  ;;  %500 = vst.msk [vmem:[#allocation2 + $0x2b2] sm:$0xff] %vm179_vm0, %v386_v33 }
  0x6e   : > { %502 = vst.msk [vmem:[#allocation2 + $0x2c2] sm:$0xff] %vm179_vm0, %v388_v35  ;;  %503 = vst.msk [vmem:[#allocation2 + $0x2ca] sm:$0xff] %vm179_vm0, %v389_v36 }
  0x6f   : > { %504 = vst.msk [vmem:[#allocation2 + $0x2d2] sm:$0xff] %vm179_vm0, %v390_v37  ;;  %506 = vst.msk [vmem:[#allocation2 + $0x2e2] sm:$0xff] %vm179_vm0, %v392_v39 }
  0x70   : > { %505 = vst.msk [vmem:[#allocation2 + $0x2da] sm:$0xf] %vm424_vm4, %v391_v38  ;;  %509 = vst.msk [vmem:[#allocation2 + $0x2fa] sm:$0xf] %vm424_vm4, %v395_v42 }
  0x71   : > { %507 = vst.msk [vmem:[#allocation2 + $0x2ea] sm:$0xff] %vm179_vm0, %v393_v40  ;;  %508 = vst.msk [vmem:[#allocation2 + $0x2f2] sm:$0xff] %vm179_vm0, %v394_v41 }
  0x72   : > { %510 = vst.msk [vmem:[#allocation2 + $0x302] sm:$0xff] %vm179_vm0, %v396_v43  ;;  %511 = vst.msk [vmem:[#allocation2 + $0x30a] sm:$0xff] %vm179_vm0, %v397_v44 }
  0x73   : > { %512 = vst.msk [vmem:[#allocation2 + $0x312] sm:$0xff] %vm179_vm0, %v398_v45  ;;  %514 = vst.msk [vmem:[#allocation2 + $0x322] sm:$0xff] %vm179_vm0, %v400_v47 }
  0x74   : > { %513 = vst.msk [vmem:[#allocation2 + $0x31a] sm:$0xf] %vm424_vm4, %v399_v46  ;;  %517 = vst.msk [vmem:[#allocation2 + $0x33a] sm:$0xf] %vm424_vm4, %v403_v50 }
  0x75   : > { %515 = vst.msk [vmem:[#allocation2 + $0x32a] sm:$0xff] %vm179_vm0, %v401_v48  ;;  %516 = vst.msk [vmem:[#allocation2 + $0x332] sm:$0xff] %vm179_vm0, %v402_v49 }
  0x76   : > { %518 = vst.msk [vmem:[#allocation2 + $0x342] sm:$0xff] %vm179_vm0, %v404_v51  ;;  %519 = vst.msk [vmem:[#allocation2 + $0x34a] sm:$0xff] %vm179_vm0, %v405_v52 }
  0x77   : > { %520 = vst.msk [vmem:[#allocation2 + $0x352] sm:$0xff] %vm179_vm0, %v406_v53  ;;  %522 = vst.msk [vmem:[#allocation2 + $0x362] sm:$0xff] %vm179_vm0, %v408_v55 }
  0x78   : > { %521 = vst.msk [vmem:[#allocation2 + $0x35a] sm:$0xf] %vm424_vm4, %v407_v54  ;;  %525 = vst.msk [vmem:[#allocation2 + $0x37a] sm:$0xf] %vm424_vm4, %v411_v58 }
  0x79   : > { %523 = vst.msk [vmem:[#allocation2 + $0x36a] sm:$0xff] %vm179_vm0, %v409_v56  ;;  %524 = vst.msk [vmem:[#allocation2 + $0x372] sm:$0xff] %vm179_vm0, %v410_v57 }
  0x7a   : > { %526 = vst.msk [vmem:[#allocation2 + $0x382] sm:$0xff] %vm179_vm0, %v412_v59  ;;  %527 = vst.msk [vmem:[#allocation2 + $0x38a] sm:$0xff] %vm179_vm0, %v413_v60 }
  0x7b   : > { %528 = vst.msk [vmem:[#allocation2 + $0x392] sm:$0xff] %vm179_vm0, %v414_v61  ;;  %530 = vst.msk [vmem:[#allocation2 + $0x3a2] sm:$0xff] %vm179_vm0, %v416_v63 }
  0x7c   : > { %529 = vst.msk [vmem:[#allocation2 + $0x39a] sm:$0xf] %vm424_vm4, %v415_v62  ;;  %533 = vst.msk [vmem:[#allocation2 + $0x3ba] sm:$0xf] %vm424_vm4, %v419_v3 }
  0x7d   : > { %531 = vst.msk [vmem:[#allocation2 + $0x3aa] sm:$0xff] %vm179_vm0, %v417_v1  ;;  %532 = vst.msk [vmem:[#allocation2 + $0x3b2] sm:$0xff] %vm179_vm0, %v418_v2 }
  0x7e LB: >> { %v2471_v4 = vmov 0   ;;  %s2373_s27 = sshll.u32 %s2468_s26, 6  ;;  %vm1925_vm6 = vcmask 228352   ;;  %vm1932_vm7 = vcmask 1043456   ;;  %vm2472_vm8 = vmmov 1   ;;  %s2368_s5 = sshll.u32 %s2468_s26, 4  ;;  %s2468_s26 = sphi %s3018_s26, %s561_s26  }
  0x7f   : >> { %2453 = vset.pattern.permute.xlu1 %v2471_v4  ;;  %2452 = vset.pattern.permute.xlu0 %v2471_v4  ;;  %s3024_s28 = scalar_lea.vmem [#allocation2], %s2373_s27  ;;  %vm2418_vm9 = vmpackc.low %vm1932_vm7, %vm2472_vm8  ;;  %s2095_s6 = scalar_lea.vmem %s2778_s21, %s2368_s5  ;;  %vm2098_vm10 = vcmask 128000   ;;  %vm2096_vm11 = vcmask 130048  }
  0x80   : >> { %2399 = vmatprep.mubr.msk.f32.mxu0 %vm1925_vm6, %v2773_v9  ;;  %2410 = vmatprep.mubr.msk.f32.mxu1 %vm1925_vm6, %v2789_v12  ;;  %s561_s26 = sadd.s32 1, %s2468_s26  }
  0x81   : >> { %p558_p5 = scmp.ge.s32.totalorder %s561_s26, 14  }
  0x84   : >> { %v567_v5 = vld [vmem:[%s3024_s28 + $0x10] sm:$0xff]  ;;  %v565_v6 = vld [vmem:[%s3024_s28] sm:$0xff]  ;;  %v568_v7 = vld [vmem:[%s3024_s28 + $0x18] sm:$0xf] }
  0x85   : >> { %582 = vperm.xlu1 %2453, %v567_v5   ;;  %572 = vperm.xlu0 %2452, %v565_v6   ;;  %v566_v8 = vld [vmem:[%s3024_s28 + $0x8] sm:$0xff]  ;;  %v607_v14 = vld [vmem:[%s3024_s28 + $0x19] sm:$0xf]  ;;  %v606_v15 = vld [vmem:[%s3024_s28 + $0x11] sm:$0xff] }
  0x86   : >> { %v605_v10 = vld [vmem:[%s3024_s28 + $0x9] sm:$0xff]  ;;  %v604_v13 = vld [vmem:[%s3024_s28 + $0x1] sm:$0xff]  ;;  %v647_v18 = vld [vmem:[%s3024_s28 + $0x1a] sm:$0xf] }
  0x87   : >> { %v645_v16 = vld [vmem:[%s3024_s28 + $0xa] sm:$0xff]  ;;  %v644_v17 = vld [vmem:[%s3024_s28 + $0x2] sm:$0xff]  ;;  %v646_v20 = vld [vmem:[%s3024_s28 + $0x12] sm:$0xff] }
  0x88   : >> { %v685_v21 = vld [vmem:[%s3024_s28 + $0xb] sm:$0xff]  ;;  %v684_v22 = vld [vmem:[%s3024_s28 + $0x3] sm:$0xff]  ;;  %v687_v23 = vld [vmem:[%s3024_s28 + $0x1b] sm:$0xf] }
  0x89   : >> { %587 = vperm.xlu1 %2453, %v568_v7   ;;  %577 = vperm.xlu0 %2452, %v566_v8   ;;  %v686_v24 = vld [vmem:[%s3024_s28 + $0x13] sm:$0xff]  ;;  %v724_v26 = vld [vmem:[%s3024_s28 + $0x4] sm:$0xff]  ;;  %v727_v27 = vld [vmem:[%s3024_s28 + $0x1c] sm:$0xf] }
  0x8a   : >> { %v725_v25 = vld [vmem:[%s3024_s28 + $0xc] sm:$0xff]  ;;  %v726_v28 = vld [vmem:[%s3024_s28 + $0x14] sm:$0xff]  ;;  %v2213_v30 = vld [vmem:[%s3024_s28 + $0x20] sm:$0xff] }
  0x8b   : >> { %v2214_v29 = vld [vmem:[%s3024_s28 + $0x28] sm:$0xff]  ;;  %v2216_v31 = vld [vmem:[%s3024_s28 + $0x38] sm:$0xf]  ;;  %v2215_v32 = vld [vmem:[%s3024_s28 + $0x30] sm:$0xff] }
  0x8c   : >> { %v2220_v33 = vld [vmem:[%s3024_s28 + $0x29] sm:$0xff]  ;;  %v2219_v34 = vld [vmem:[%s3024_s28 + $0x21] sm:$0xff]  ;;  %v2222_v35 = vld [vmem:[%s3024_s28 + $0x39] sm:$0xf] }
  0x8d   : >> { %617 = vperm.xlu1 %2453, %v605_v10   ;;  %612 = vperm.xlu0 %2452, %v604_v13   ;;  %v2221_v36 = vld [vmem:[%s3024_s28 + $0x31] sm:$0xff]  ;;  %v2225_v38 = vld [vmem:[%s3024_s28 + $0x22] sm:$0xff]  ;;  %v2228_v39 = vld [vmem:[%s3024_s28 + $0x3a] sm:$0xf] }
  0x8e   : >> { %v2226_v37 = vld [vmem:[%s3024_s28 + $0x2a] sm:$0xff]  ;;  %v2227_v40 = vld [vmem:[%s3024_s28 + $0x32] sm:$0xff]  ;;  %v2234_v45 = vld [vmem:[%s3024_s28 + $0x3b] sm:$0xf] }
  0x8f   : >> { %v2232_v41 = vld [vmem:[%s3024_s28 + $0x2b] sm:$0xff]  ;;  %v2231_v42 = vld [vmem:[%s3024_s28 + $0x23] sm:$0xff]  ;;  %v2233_v44 = vld [vmem:[%s3024_s28 + $0x33] sm:$0xff] }
  0x90   : >> { %v2237_v43 = vld [vmem:[%s3024_s28 + $0x24] sm:$0xff]  ;;  %v2238_v46 = vld [vmem:[%s3024_s28 + $0x2c] sm:$0xff]  ;;  %v2240_v49 = vld [vmem:[%s3024_s28 + $0x3c] sm:$0xf] }
  0x91   : >> { %627 = vperm.xlu1 %2453, %v607_v14   ;;  %622 = vperm.xlu0 %2452, %v606_v15   ;;  %v2246_v47 = vld [vmem:[%s3024_s28 + $0x48] sm:$0xff]  ;;  %v2245_v48 = vld [vmem:[%s3024_s28 + $0x40] sm:$0xff]  ;;  %v2239_v50 = vld [vmem:[%s3024_s28 + $0x34] sm:$0xff] }
  0x92   : >> { %v2252_v51 = vld [vmem:[%s3024_s28 + $0x49] sm:$0xff]  ;;  %v2251_v52 = vld [vmem:[%s3024_s28 + $0x41] sm:$0xff]  ;;  %v2248_v53 = vld [vmem:[%s3024_s28 + $0x58] sm:$0xf] }
  0x93   : >> { %v2247_v54 = vld [vmem:[%s3024_s28 + $0x50] sm:$0xff]  ;;  %v2257_v56 = vld [vmem:[%s3024_s28 + $0x42] sm:$0xff]  ;;  %v2254_v57 = vld [vmem:[%s3024_s28 + $0x59] sm:$0xf] }
  0x94   : >> { %v2258_v55 = vld [vmem:[%s3024_s28 + $0x4a] sm:$0xff]  ;;  %v2260_v61 = vld [vmem:[%s3024_s28 + $0x5a] sm:$0xf]  ;;  %v2259_v62 = vld [vmem:[%s3024_s28 + $0x52] sm:$0xff] }
  0x95   : >> { %657 = vperm.xlu1 %2453, %v645_v16   ;;  %652 = vperm.xlu0 %2452, %v644_v17   ;;  %v2253_v58 = vld [vmem:[%s3024_s28 + $0x51] sm:$0xff]  ;;  %v2263_v60 = vld [vmem:[%s3024_s28 + $0x43] sm:$0xff]  ;;  %v2266_v2 = vld [vmem:[%s3024_s28 + $0x5b] sm:$0xf] }
  0x96   : >> { %v2264_v59 = vld [vmem:[%s3024_s28 + $0x4b] sm:$0xff]  ;;  %v2265_v3 = vld [vmem:[%s3024_s28 + $0x53] sm:$0xff]  ;;  %v2277_v5 = vld [vmem:[%s3024_s28 + $0x60] sm:$0xff] }
  0x97   : >> { %v2270_v63 = vld [vmem:[%s3024_s28 + $0x4c] sm:$0xff]  ;;  %v2269_v1 = vld [vmem:[%s3024_s28 + $0x44] sm:$0xff]  ;;  %v2272_v6 = vld [vmem:[%s3024_s28 + $0x5c] sm:$0xf] }
  0x98   : >> { %v2278_v4 = vld [vmem:[%s3024_s28 + $0x68] sm:$0xff]  ;;  %v2271_v7 = vld [vmem:[%s3024_s28 + $0x54] sm:$0xff] }
  0x99   : >> { %667 = vperm.xlu1 %2453, %v647_v18   ;;  %662 = vperm.xlu0 %2452, %v646_v20   ;;  %v2284_v8 = vld [vmem:[%s3024_s28 + $0x69] sm:$0xff]  ;;  %v2283_v10 = vld [vmem:[%s3024_s28 + $0x61] sm:$0xff]  ;;  %v2280_v13 = vld [vmem:[%s3024_s28 + $0x78] sm:$0xf] }
  0x9a   : >> { %v2279_v14 = vld [vmem:[%s3024_s28 + $0x70] sm:$0xff]  ;;  %v2289_v18 = vld [vmem:[%s3024_s28 + $0x62] sm:$0xff] }
  0x9b   : >> { %v2290_v17 = vld [vmem:[%s3024_s28 + $0x6a] sm:$0xff] }
  0x9d   : >> { %697 = vperm.xlu1 %2453, %v685_v21   ;;  %692 = vperm.xlu0 %2452, %v684_v22   ;;  %v2286_v22 = vld [vmem:[%s3024_s28 + $0x79] sm:$0xf] }
  0xa1   : >> { %707 = vperm.xlu1 %2453, %v687_v23   ;;  %702 = vperm.xlu0 %2452, %v686_v24   ;;  %v2285_v23 = vld [vmem:[%s3024_s28 + $0x71] sm:$0xff] }
  0xa5   : >> { %737 = vperm.xlu1 %2453, %v725_v25   ;;  %732 = vperm.xlu0 %2452, %v724_v26   ;;  %v2296_v26 = vld [vmem:[%s3024_s28 + $0x6b] sm:$0xff] }
  0xa9   : >> { %747 = vperm.xlu1 %2453, %v727_v27   ;;  %742 = vperm.xlu0 %2452, %v726_v28   ;;  %v2295_v27 = vld [vmem:[%s3024_s28 + $0x63] sm:$0xff] }
  0xad   : >> { %780 = vperm.xlu1 %2453, %v2214_v29   ;;  %775 = vperm.xlu0 %2452, %v2213_v30   ;;  %v2292_v30 = vld [vmem:[%s3024_s28 + $0x7a] sm:$0xf] }
  0xb1   : >> { %790 = vperm.xlu1 %2453, %v2216_v31   ;;  %785 = vperm.xlu0 %2452, %v2215_v32   ;;  %v2291_v31 = vld [vmem:[%s3024_s28 + $0x72] sm:$0xff] }
  0xb5   : >> { %820 = vperm.xlu1 %2453, %v2220_v33   ;;  %815 = vperm.xlu0 %2452, %v2219_v34   ;;  %v2302_v34 = vld [vmem:[%s3024_s28 + $0x6c] sm:$0xff] }
  0xb9   : >> { %830 = vperm.xlu1 %2453, %v2222_v35   ;;  %825 = vperm.xlu0 %2452, %v2221_v36   ;;  %v2301_v35 = vld [vmem:[%s3024_s28 + $0x64] sm:$0xff] }
  0xbd   : >> { %860 = vperm.xlu1 %2453, %v2226_v37   ;;  %855 = vperm.xlu0 %2452, %v2225_v38   ;;  %v2298_v38 = vld [vmem:[%s3024_s28 + $0x7b] sm:$0xf] }
  0xc1   : >> { %870 = vperm.xlu1 %2453, %v2228_v39   ;;  %865 = vperm.xlu0 %2452, %v2227_v40   ;;  %v2297_v39 = vld [vmem:[%s3024_s28 + $0x73] sm:$0xff] }
  0xc5   : >> { %900 = vperm.xlu1 %2453, %v2232_v41   ;;  %895 = vperm.xlu0 %2452, %v2231_v42   ;;  %v2310_v42 = vld [vmem:[%s3024_s28 + $0x88] sm:$0xff] }
  0xc9   : >> { %935 = vperm.xlu1 %2453, %v2237_v43   ;;  %905 = vperm.xlu0 %2452, %v2233_v44   ;;  %v2309_v43 = vld [vmem:[%s3024_s28 + $0x80] sm:$0xff] }
  0xcd   : >> { %910 = vperm.xlu1 %2453, %v2234_v45   ;;  %940 = vperm.xlu0 %2452, %v2238_v46   ;;  %v2304_v46 = vld [vmem:[%s3024_s28 + $0x7c] sm:$0xf] }
  0xd1   : >> { %983 = vperm.xlu1 %2453, %v2246_v47   ;;  %978 = vperm.xlu0 %2452, %v2245_v48   ;;  %v2303_v47 = vld [vmem:[%s3024_s28 + $0x74] sm:$0xff] }
  0xd5   : >> { %950 = vperm.xlu1 %2453, %v2240_v49   ;;  %945 = vperm.xlu0 %2452, %v2239_v50   ;;  %v2316_v50 = vld [vmem:[%s3024_s28 + $0x89] sm:$0xff] }
  0xd9   : >> { %1023 = vperm.xlu1 %2453, %v2252_v51   ;;  %1018 = vperm.xlu0 %2452, %v2251_v52   ;;  %v2315_v51 = vld [vmem:[%s3024_s28 + $0x81] sm:$0xff] }
  0xdd   : >> { %993 = vperm.xlu1 %2453, %v2248_v53   ;;  %988 = vperm.xlu0 %2452, %v2247_v54   ;;  %v3121_v54 = vld [vmem:[%s3593_s1 + $0x1] ss:$0 sm:$0xff] }
  0xe1   : >> { %1063 = vperm.xlu1 %2453, %v2258_v55   ;;  %1058 = vperm.xlu0 %2452, %v2257_v56   ;;  %v3126_v55 = vld [vmem:[%s3593_s1] ss:$0 sm:$0xff]  ;;  %v2312_v56 = vld [vmem:[%s3024_s28 + $0x98] sm:$0xf] }
  0xe5   : >> { %1033 = vperm.xlu1 %2453, %v2254_v57   ;;  %1028 = vperm.xlu0 %2452, %v2253_v58  }
  0xe9   : >> { %1103 = vperm.xlu1 %2453, %v2264_v59   ;;  %1098 = vperm.xlu0 %2452, %v2263_v60   ;;  %v3134_v59 = vld [vmem:[%s3593_s1 + $0x2] ss:$0 sm:$0xff]  ;;  %v2311_v60 = vld [vmem:[%s3024_s28 + $0x90] sm:$0xff] }
  0xed   : >> { %1073 = vperm.xlu1 %2453, %v2260_v61   ;;  %1068 = vperm.xlu0 %2452, %v2259_v62  }
  0xf1   : >> { %1143 = vperm.xlu1 %2453, %v2270_v63   ;;  %1138 = vperm.xlu0 %2452, %v2269_v1  }
  0xf5   : >> { %1113 = vperm.xlu1 %2453, %v2266_v2   ;;  %1108 = vperm.xlu0 %2452, %v2265_v3  }
  0xf9   : >> { %1186 = vperm.xlu1 %2453, %v2278_v4   ;;  %1181 = vperm.xlu0 %2452, %v2277_v5  }
  0xfd   : >> { %1153 = vperm.xlu1 %2453, %v2272_v6   ;;  %1148 = vperm.xlu0 %2452, %v2271_v7   ;;  %v3152_v6 = vld [vmem:[%s3593_s1 + $0x3] ss:$0 sm:$0xff] }
 0x101   : >> { %1226 = vperm.xlu1 %2453, %v2284_v8   ;;  %1221 = vperm.xlu0 %2452, %v2283_v10  }
 0x104   : >> { %v3092_v15 = vpop.permute.xlu1 %582  ;;  %v3094_v16 = vpop.permute.xlu0 %572 }
 0x105   : >> { %1196 = vperm.xlu1 %2453, %v2280_v13   ;;  %1191 = vperm.xlu0 %2452, %v2279_v14   ;;  %v598_v2 = vmul.f32 %v3126_v55, %v3092_v15  ;;  %v596_v7 = vmul.f32 %v3126_v55, %v3094_v16  ;;  %v2322_v14 = vld [vmem:[%s3024_s28 + $0x8a] sm:$0xff]  ;;  %v2321_v16 = vld [vmem:[%s3024_s28 + $0x82] sm:$0xff] }
 0x108   : >> { %v3098_v20 = vpop.permute.xlu1 %587  ;;  %v3100_v21 = vpop.permute.xlu0 %577 }
 0x109   : >> { %1266 = vperm.xlu1 %2453, %v2290_v17   ;;  %1261 = vperm.xlu0 %2452, %v2289_v18   ;;  %v599_v3 = vmul.f32 %v3126_v55, %v3098_v20  ;;  %v597_v8 = vmul.f32 %v3126_v55, %v3100_v21 }
 0x10c   : >> { %v618_v24 = vpop.permute.xlu1 %617  ;;  %v613_v25 = vpop.permute.xlu0 %612 }
 0x10d   : >> { %1236 = vperm.xlu1 %2453, %v2286_v22   ;;  %1231 = vperm.xlu0 %2452, %v2285_v23   ;;  %v637_v61 = vmul.f32 %v3121_v54, %v618_v24  ;;  %v636_v62 = vmul.f32 %v3121_v54, %v613_v25  ;;  %v3166_v22 = vld [vmem:[%s3593_s1 + $0x4] ss:$0 sm:$0xff] }
 0x10f   : >> { %v641_v23 = vadd.f32 %v637_v61, %v597_v8  ;;  %v640_v21 = vadd.f32 %v636_v62, %v596_v7  ;;  %v2327_v62 = vld [vmem:[%s3024_s28 + $0x83] sm:$0xff] }
 0x110   : >> { %v628_v28 = vpop.permute.xlu1 %627  ;;  %v623_v29 = vpop.permute.xlu0 %622 }
 0x111   : >> { %1306 = vperm.xlu1 %2453, %v2296_v26   ;;  %1301 = vperm.xlu0 %2452, %v2295_v27   ;;  %v639_v57 = vmul.f32 %v3121_v54, %v628_v28  ;;  %v638_v58 = vmul.f32 %v3121_v54, %v623_v29 }
 0x113   : >> { %v643_v15 = vadd.f32 %v639_v57, %v599_v3  ;;  %v642_v17 = vadd.f32 %v638_v58, %v598_v2 }
 0x114   : >> { %v658_v32 = vpop.permute.xlu1 %657  ;;  %v653_v33 = vpop.permute.xlu0 %652 }
 0x115   : >> { %1276 = vperm.xlu1 %2453, %v2292_v30   ;;  %1271 = vperm.xlu0 %2452, %v2291_v31   ;;  %v677_v10 = vmul.f32 %v3134_v59, %v658_v32  ;;  %v676_v13 = vmul.f32 %v3134_v59, %v653_v33 }
 0x117   : >> { %v681_v32 = vadd.f32 %v677_v10, %v641_v23  ;;  %v680_v33 = vadd.f32 %v676_v13, %v640_v21  ;;  %v3212_v23 = vld [vmem:[%s3593_s1 + $0x7] ss:$0 sm:$0xff]  ;;  %v2324_v21 = vld [vmem:[%s3024_s28 + $0x9a] sm:$0xf] }
 0x118   : >> { %v668_v36 = vpop.permute.xlu1 %667  ;;  %v663_v37 = vpop.permute.xlu0 %662 }
 0x119   : >> { %1346 = vperm.xlu1 %2453, %v2302_v34   ;;  %1341 = vperm.xlu0 %2452, %v2301_v35   ;;  %v679_v4 = vmul.f32 %v3134_v59, %v668_v36  ;;  %v678_v5 = vmul.f32 %v3134_v59, %v663_v37  ;;  %v3178_v36 = vld [vmem:[%s3593_s1 + $0x5] ss:$0 sm:$0xff]  ;;  %v2318_v37 = vld [vmem:[%s3024_s28 + $0x99] sm:$0xf] }
 0x11b   : >> { %v683_v28 = vadd.f32 %v679_v4, %v643_v15  ;;  %v682_v29 = vadd.f32 %v678_v5, %v642_v17 }
 0x11c   : >> { %v698_v40 = vpop.permute.xlu1 %697  ;;  %v693_v41 = vpop.permute.xlu0 %692 }
 0x11d   : >> { %1316 = vperm.xlu1 %2453, %v2298_v38   ;;  %1311 = vperm.xlu0 %2452, %v2297_v39   ;;  %v717_v24 = vmul.f32 %v3152_v6, %v698_v40  ;;  %v716_v25 = vmul.f32 %v3152_v6, %v693_v41 }
 0x120   : >> { %v708_v44 = vpop.permute.xlu1 %707  ;;  %v703_v45 = vpop.permute.xlu0 %702 }
 0x121   : >> { %1389 = vperm.xlu1 %2453, %v2310_v42   ;;  %1384 = vperm.xlu0 %2452, %v2309_v43   ;;  %v719_v18 = vmul.f32 %v3152_v6, %v708_v44  ;;  %v718_v20 = vmul.f32 %v3152_v6, %v703_v45  ;;  %v2317_v42 = vld [vmem:[%s3024_s28 + $0x91] sm:$0xff]  ;;  %v721_v43 = vadd.f32 %v717_v24, %v681_v32 }
 0x122   : >> { %v720_v44 = vadd.f32 %v716_v25, %v680_v33 }
 0x123   : >> { %v723_v38 = vadd.f32 %v719_v18, %v683_v28  ;;  %v722_v39 = vadd.f32 %v718_v20, %v682_v29 }
 0x124   : >> { %v738_v48 = vpop.permute.xlu1 %737  ;;  %v733_v49 = vpop.permute.xlu0 %732 }
 0x125   : >> { %1356 = vperm.xlu1 %2453, %v2304_v46   ;;  %1351 = vperm.xlu0 %2452, %v2303_v47   ;;  %v757_v34 = vmul.f32 %v3166_v22, %v738_v48  ;;  %v756_v35 = vmul.f32 %v3166_v22, %v733_v49  ;;  %v3187_v49 = vld [vmem:[%s3593_s1 + $0x6] ss:$0 sm:$0xff] }
 0x128   : >> { %v748_v52 = vpop.permute.xlu1 %747  ;;  %v743_v53 = vpop.permute.xlu0 %742 }
 0x129   : >> { %1429 = vperm.xlu1 %2453, %v2316_v50   ;;  %1424 = vperm.xlu0 %2452, %v2315_v51   ;;  %v759_v30 = vmul.f32 %v3166_v22, %v748_v52  ;;  %v758_v31 = vmul.f32 %v3166_v22, %v743_v53  ;;  %v761_v50 = vadd.f32 %v757_v34, %v721_v43 }
 0x12a   : >> { %v760_v51 = vadd.f32 %v756_v35, %v720_v44  ;;  %v2334_v35 = vld [vmem:[%s3024_s28 + $0x8c] sm:$0xff] }
 0x12b   : >> { %v763_v47 = vadd.f32 %v759_v30, %v723_v38  ;;  %v762_v48 = vadd.f32 %v758_v31, %v722_v39 }
 0x12c   : >> { %v3139_v63 = vpop.permute.xlu1 %780  ;;  %v3141_v1 = vpop.permute.xlu0 %775 }
 0x12d   : >> { %1399 = vperm.xlu1 %2453, %v2312_v56   ;;  %1394 = vperm.xlu0 %2452, %v2311_v60   ;;  %v800_v52 = vmul.f32 %v3178_v36, %v3139_v63  ;;  %v799_v53 = vmul.f32 %v3178_v36, %v3141_v1  ;;  %v2328_v56 = vld [vmem:[%s3024_s28 + $0x8b] sm:$0xff]  ;;  %v1591_v18 = vmul.f32 %v3126_v55, %v3139_v63 }
 0x12f   : >> { %v804_v17 = vadd.f32 %v800_v52, %v761_v50  ;;  %v803_v20 = vadd.f32 %v799_v53, %v760_v51  ;;  %v2330_v50 = vld [vmem:[%s3024_s28 + $0x9b] sm:$0xf] }
 0x130   : >> { %v791_v26 = vpop.permute.xlu1 %790  ;;  %v786_v27 = vpop.permute.xlu0 %785 }
 0x131   : >> { %1469 = vperm.xlu1 %2453, %v2322_v14   ;;  %1464 = vperm.xlu0 %2452, %v2321_v16   ;;  %v802_v40 = vmul.f32 %v3178_v36, %v791_v26  ;;  %v801_v41 = vmul.f32 %v3178_v36, %v786_v27  ;;  %v1593_v58 = vmul.f32 %v3126_v55, %v791_v26 }
 0x132   : >> { %v1592_v61 = vmul.f32 %v3126_v55, %v786_v27  ;;  %v1590_v16 = vmul.f32 %v3126_v55, %v3141_v1  ;;  %v2323_v27 = vld [vmem:[%s3024_s28 + $0x92] sm:$0xff] }
 0x133   : >> { %v806_v57 = vadd.f32 %v802_v40, %v763_v47  ;;  %v805_v60 = vadd.f32 %v801_v41, %v762_v48  ;;  %v2333_v41 = vld [vmem:[%s3024_s28 + $0x84] sm:$0xff] }
 0x134   : >> { %v821_v45 = vpop.permute.xlu1 %820  ;;  %v816_v46 = vpop.permute.xlu0 %815  ;;  %v3229_v48 = vld [vmem:[%s3593_s1 + $0x8] ss:$0 sm:$0xff] }
 0x135   : >> { %1439 = vperm.xlu1 %2453, %v2318_v37   ;;  %1434 = vperm.xlu0 %2452, %v2317_v42   ;;  %v840_v2 = vmul.f32 %v3187_v49, %v821_v45  ;;  %v1599_v3 = vmul.f32 %v3121_v54, %v821_v45  ;;  %v839_v4 = vmul.f32 %v3187_v49, %v816_v46 }
 0x136   : >> { %v1598_v5 = vmul.f32 %v3121_v54, %v816_v46 }
 0x137   : >> { %v844_v28 = vadd.f32 %v840_v2, %v804_v17  ;;  %v1603_v29 = vadd.f32 %v1599_v3, %v1591_v18  ;;  %v843_v63 = vadd.f32 %v839_v4, %v803_v20  ;;  %v3240_v3 = vld [vmem:[%s3593_s1 + $0x9] ss:$0 sm:$0xff] }
 0x138   : >> { %v831_v7 = vpop.permute.xlu1 %830  ;;  %v826_v8 = vpop.permute.xlu0 %825  ;;  %v1602_v30 = vadd.f32 %v1598_v5, %v1590_v16  ;;  %v2343_v4 = vld [vmem:[%s3024_s28 + $0xa8] sm:$0xff] }
 0x139   : >> { %v842_v10 = vmul.f32 %v3187_v49, %v831_v7  ;;  %v1601_v13 = vmul.f32 %v3121_v54, %v831_v7  ;;  %v841_v14 = vmul.f32 %v3187_v49, %v826_v8  ;;  %v1600_v15 = vmul.f32 %v3121_v54, %v826_v8  ;;  %1509 = vperm.xlu1 %2453, %v2328_v56  }
 0x13a   : >> { %1504 = vperm.xlu0 %2452, %v2327_v62  }
 0x13b   : >> { %v846_v24 = vadd.f32 %v842_v10, %v806_v57  ;;  %v1605_v25 = vadd.f32 %v1601_v13, %v1593_v58  ;;  %v845_v54 = vadd.f32 %v841_v14, %v805_v60  ;;  %v1604_v26 = vadd.f32 %v1600_v15, %v1592_v61  ;;  %v2329_v57 = vld [vmem:[%s3024_s28 + $0x93] sm:$0xff]  ;;  %v2342_v13 = vld [vmem:[%s3024_s28 + $0xa0] sm:$0xff] }
 0x13c   : >> { %v861_v31 = vpop.permute.xlu1 %860  ;;  %v856_v55 = vpop.permute.xlu0 %855 }
 0x13d   : >> { %v880_v1 = vmul.f32 %v3212_v23, %v861_v31  ;;  %v1607_v32 = vmul.f32 %v3134_v59, %v861_v31  ;;  %v879_v33 = vmul.f32 %v3212_v23, %v856_v55  ;;  %v1606_v34 = vmul.f32 %v3134_v59, %v856_v55  ;;  %1479 = vperm.xlu1 %2453, %v2324_v21   ;;  %v2336_v21 = vld [vmem:[%s3024_s28 + $0x9c] sm:$0xf] }
 0x13e   : >> { %1474 = vperm.xlu0 %2452, %v2323_v27   ;;  %v2335_v27 = vld [vmem:[%s3024_s28 + $0x94] sm:$0xff] }
 0x13f   : >> { %v884_v37 = vadd.f32 %v880_v1, %v844_v28  ;;  %v1611_v38 = vadd.f32 %v1607_v32, %v1603_v29  ;;  %v883_v39 = vadd.f32 %v879_v33, %v843_v63  ;;  %v1610_v40 = vadd.f32 %v1606_v34, %v1602_v30  ;;  %v3257_v1 = vld [vmem:[%s3593_s1 + $0xa] ss:$0 sm:$0xff] }
 0x140   : >> { %v871_v42 = vpop.permute.xlu1 %870  ;;  %v866_v43 = vpop.permute.xlu0 %865  ;;  %v2347_v32 = vld [vmem:[%s3024_s28 + $0xa9] sm:$0xff] }
 0x141   : >> { %v882_v44 = vmul.f32 %v3212_v23, %v871_v42  ;;  %v1609_v45 = vmul.f32 %v3134_v59, %v871_v42  ;;  %v881_v46 = vmul.f32 %v3212_v23, %v866_v43  ;;  %v1608_v47 = vmul.f32 %v3134_v59, %v866_v43  ;;  %1549 = vperm.xlu1 %2453, %v2334_v35  }
 0x142   : >> { %1544 = vperm.xlu0 %2452, %v2333_v41  }
 0x143   : >> { %v886_v51 = vadd.f32 %v882_v44, %v846_v24  ;;  %v1613_v52 = vadd.f32 %v1609_v45, %v1605_v25  ;;  %v885_v53 = vadd.f32 %v881_v46, %v845_v54  ;;  %v1612_v56 = vadd.f32 %v1608_v47, %v1604_v26  ;;  %v2345_v44 = vld [vmem:[%s3024_s28 + $0xb8] sm:$0xf] }
 0x144   : >> { %v901_v58 = vpop.permute.xlu1 %900  ;;  %v896_v60 = vpop.permute.xlu0 %895 }
 0x145   : >> { %v920_v61 = vmul.f32 %v3229_v48, %v901_v58  ;;  %v1615_v59 = vmul.f32 %v3152_v6, %v901_v58  ;;  %v919_v62 = vmul.f32 %v3229_v48, %v896_v60  ;;  %v1614_v2 = vmul.f32 %v3152_v6, %v896_v60  ;;  %1519 = vperm.xlu1 %2453, %v2330_v50  }
 0x146   : >> { %1514 = vperm.xlu0 %2452, %v2329_v57  }
 0x147   : >> { %v924_v5 = vadd.f32 %v920_v61, %v884_v37  ;;  %v1619_v7 = vadd.f32 %v1615_v59, %v1611_v38  ;;  %v923_v8 = vadd.f32 %v919_v62, %v883_v39  ;;  %v1618_v10 = vadd.f32 %v1614_v2, %v1610_v40  ;;  %v2346_v38 = vld [vmem:[%s3024_s28 + $0xa1] sm:$0xff]  ;;  %v3274_v61 = vld [vmem:[%s3593_s1 + $0xb] ss:$0 sm:$0xff] }
 0x148   : >> { %v936_v14 = vpop.permute.xlu1 %935  ;;  %v906_v15 = vpop.permute.xlu0 %905  ;;  %v2351_v59 = vld [vmem:[%s3024_s28 + $0xaa] sm:$0xff] }
 0x149   : >> { %v959_v17 = vmul.f32 %v3240_v3, %v936_v14  ;;  %v1622_v18 = vmul.f32 %v3166_v22, %v936_v14  ;;  %v921_v20 = vmul.f32 %v3229_v48, %v906_v15  ;;  %v1616_v16 = vmul.f32 %v3152_v6, %v906_v15  ;;  %1764 = vperm.xlu1 %2453, %v2343_v4  }
 0x14a   : >> { %1759 = vperm.xlu0 %2452, %v2342_v13  }
 0x14b   : >> { %v963_v24 = vadd.f32 %v959_v17, %v923_v8  ;;  %v1626_v25 = vadd.f32 %v1622_v18, %v1618_v10  ;;  %v925_v54 = vadd.f32 %v921_v20, %v885_v53  ;;  %v1620_v26 = vadd.f32 %v1616_v16, %v1612_v56  ;;  %v2349_v17 = vld [vmem:[%s3024_s28 + $0xb9] sm:$0xf] }
 0x14c   : >> { %v911_v28 = vpop.permute.xlu1 %910  ;;  %v941_v29 = vpop.permute.xlu0 %940 }
 0x14d   : >> { %v922_v63 = vmul.f32 %v3229_v48, %v911_v28  ;;  %v1617_v30 = vmul.f32 %v3152_v6, %v911_v28  ;;  %v960_v31 = vmul.f32 %v3240_v3, %v941_v29  ;;  %v1623_v55 = vmul.f32 %v3166_v22, %v941_v29  ;;  %1559 = vperm.xlu1 %2453, %v2336_v21  }
 0x14e   : >> { %1554 = vperm.xlu0 %2452, %v2335_v27  }
 0x14f   : >> { %v926_v33 = vadd.f32 %v922_v63, %v886_v51  ;;  %v1621_v34 = vadd.f32 %v1617_v30, %v1613_v52  ;;  %v964_v35 = vadd.f32 %v960_v31, %v924_v5  ;;  %v1627_v37 = vadd.f32 %v1623_v55, %v1619_v7  ;;  %v2344_v51 = vld [vmem:[%s3024_s28 + $0xb0] sm:$0xff]  ;;  %v2350_v7 = vld [vmem:[%s3024_s28 + $0xa2] sm:$0xff]  ;;  %v3291_v63 = vld [vmem:[%s3593_s1 + $0xc] ss:$0 sm:$0xff] }
 0x150   : >> { %v984_v6 = vpop.permute.xlu1 %983  ;;  %v979_v39 = vpop.permute.xlu0 %978  ;;  %v2355_v30 = vld [vmem:[%s3024_s28 + $0xab] sm:$0xff] }
 0x151   : >> { %v1003_v40 = vmul.f32 %v3257_v1, %v984_v6  ;;  %v1631_v41 = vmul.f32 %v3178_v36, %v984_v6  ;;  %v1002_v42 = vmul.f32 %v3257_v1, %v979_v39  ;;  %v1630_v43 = vmul.f32 %v3178_v36, %v979_v39  ;;  %1796 = vperm.xlu1 %2453, %v2347_v32  }
 0x152   : >> { %1791 = vperm.xlu0 %2452, %v2346_v38  }
 0x153   : >> { %v1007_v45 = vadd.f32 %v1003_v40, %v964_v35  ;;  %v1635_v46 = vadd.f32 %v1631_v41, %v1627_v37  ;;  %v1006_v47 = vadd.f32 %v1002_v42, %v963_v24  ;;  %v1634_v50 = vadd.f32 %v1630_v43, %v1626_v25  ;;  %v2348_v24 = vld [vmem:[%s3024_s28 + $0xb1] sm:$0xff]  ;;  %v2353_v40 = vld [vmem:[%s3024_s28 + $0xba] sm:$0xf] }
 0x154   : >> { %v951_v52 = vpop.permute.xlu1 %950  ;;  %v946_v53 = vpop.permute.xlu0 %945 }
 0x155   : >> { %v962_v56 = vmul.f32 %v3240_v3, %v951_v52  ;;  %v1625_v57 = vmul.f32 %v3166_v22, %v951_v52  ;;  %v961_v58 = vmul.f32 %v3240_v3, %v946_v53  ;;  %v1624_v60 = vmul.f32 %v3166_v22, %v946_v53  ;;  %1774 = vperm.xlu1 %2453, %v2345_v44  }
 0x156   : >> { %1769 = vperm.xlu0 %2452, %v2344_v51  }
 0x157   : >> { %v966_v62 = vadd.f32 %v962_v56, %v926_v33  ;;  %v1629_v2 = vadd.f32 %v1625_v57, %v1621_v34  ;;  %v965_v4 = vadd.f32 %v961_v58, %v925_v54  ;;  %v1628_v5 = vadd.f32 %v1624_v60, %v1620_v26  ;;  %v2354_v34 = vld [vmem:[%s3024_s28 + $0xa3] sm:$0xff]  ;;  %v3308_v56 = vld [vmem:[%s3593_s1 + $0xd] ss:$0 sm:$0xff] }
 0x158   : >> { %v1024_v8 = vpop.permute.xlu1 %1023  ;;  %v1019_v10 = vpop.permute.xlu0 %1018  ;;  %v2359_v57 = vld [vmem:[%s3024_s28 + $0xac] sm:$0xff] }
 0x159   : >> { %v1043_v13 = vmul.f32 %v3274_v61, %v1024_v8  ;;  %v1639_v22 = vmul.f32 %v3187_v49, %v1024_v8  ;;  %v1042_v14 = vmul.f32 %v3274_v61, %v1019_v10  ;;  %v1638_v15 = vmul.f32 %v3187_v49, %v1019_v10  ;;  %1828 = vperm.xlu1 %2453, %v2351_v59  }
 0x15a   : >> { %1823 = vperm.xlu0 %2452, %v2350_v7  }
 0x15b   : >> { %v1047_v18 = vadd.f32 %v1043_v13, %v1007_v45  ;;  %v1643_v20 = vadd.f32 %v1639_v22, %v1635_v46  ;;  %v1046_v16 = vadd.f32 %v1042_v14, %v1006_v47  ;;  %v1642_v21 = vadd.f32 %v1638_v15, %v1634_v50  ;;  %v2352_v45 = vld [vmem:[%s3024_s28 + $0xb2] sm:$0xff]  ;;  %v2357_v13 = vld [vmem:[%s3024_s28 + $0xbb] sm:$0xf] }
 0x15c   : >> { %v994_v25 = vpop.permute.xlu1 %993  ;;  %v989_v54 = vpop.permute.xlu0 %988 }
 0x15d   : >> { %v1005_v26 = vmul.f32 %v3257_v1, %v994_v25  ;;  %v1633_v27 = vmul.f32 %v3178_v36, %v994_v25  ;;  %v1004_v28 = vmul.f32 %v3257_v1, %v989_v54  ;;  %v1632_v29 = vmul.f32 %v3178_v36, %v989_v54  ;;  %1806 = vperm.xlu1 %2453, %v2349_v17  }
 0x15e   : >> { %1801 = vperm.xlu0 %2452, %v2348_v24  }
 0x15f   : >> { %v1009_v31 = vadd.f32 %v1005_v26, %v966_v62  ;;  %v1637_v55 = vadd.f32 %v1633_v27, %v1629_v2  ;;  %v1008_v32 = vadd.f32 %v1004_v28, %v965_v4  ;;  %v1636_v33 = vadd.f32 %v1632_v29, %v1628_v5  ;;  %v2358_v2 = vld [vmem:[%s3024_s28 + $0xa4] sm:$0xff]  ;;  %v3325_v26 = vld [vmem:[%s3593_s1 + $0xe] ss:$0 sm:$0xff]  ;;  %v2361_v27 = vld [vmem:[%s3024_s28 + $0xbc] sm:$0xf] }
 0x160   : >> { %v1064_v35 = vpop.permute.xlu1 %1063  ;;  %v1059_v37 = vpop.permute.xlu0 %1058 }
 0x161   : >> { %v1083_v38 = vmul.f32 %v3291_v63, %v1064_v35  ;;  %v1647_v36 = vmul.f32 %v3212_v23, %v1064_v35  ;;  %v1082_v6 = vmul.f32 %v3291_v63, %v1059_v37  ;;  %v1646_v39 = vmul.f32 %v3212_v23, %v1059_v37  ;;  %1860 = vperm.xlu1 %2453, %v2355_v30  }
 0x162   : >> { %1855 = vperm.xlu0 %2452, %v2354_v34  }
 0x163   : >> { %v1087_v41 = vadd.f32 %v1083_v38, %v1047_v18  ;;  %v1651_v42 = vadd.f32 %v1647_v36, %v1643_v20  ;;  %v1086_v43 = vadd.f32 %v1082_v6, %v1046_v16  ;;  %v1650_v44 = vadd.f32 %v1646_v39, %v1642_v21  ;;  %v2356_v18 = vld [vmem:[%s3024_s28 + $0xb3] sm:$0xff] }
 0x164   : >> { %v1034_v46 = vpop.permute.xlu1 %1033  ;;  %v1029_v47 = vpop.permute.xlu0 %1028 }
 0x165   : >> { %v1045_v50 = vmul.f32 %v3274_v61, %v1034_v46  ;;  %v1641_v51 = vmul.f32 %v3187_v49, %v1034_v46  ;;  %v1044_v52 = vmul.f32 %v3274_v61, %v1029_v47  ;;  %v1640_v53 = vmul.f32 %v3187_v49, %v1029_v47  ;;  %1838 = vperm.xlu1 %2453, %v2353_v40   ;;  %v3340_v46 = vld [vmem:[%s3593_s1 + $0xf] ss:$0 sm:$0xff] }
 0x166   : >> { %1833 = vperm.xlu0 %2452, %v2352_v45  }
 0x167   : >> { %v1049_v58 = vadd.f32 %v1045_v50, %v1009_v31  ;;  %v1645_v60 = vadd.f32 %v1641_v51, %v1637_v55  ;;  %v1048_v59 = vadd.f32 %v1044_v52, %v1008_v32  ;;  %v1644_v62 = vadd.f32 %v1640_v53, %v1636_v33  ;;  %v2360_v55 = vld [vmem:[%s3024_s28 + $0xb4] sm:$0xff] }
 0x168   : >> { %v1104_v4 = vpop.permute.xlu1 %1103  ;;  %v1099_v5 = vpop.permute.xlu0 %1098 }
 0x169   : >> { %v1123_v7 = vmul.f32 %v3308_v56, %v1104_v4  ;;  %v1655_v49 = vmul.f32 %v3229_v48, %v1104_v4  ;;  %v1122_v8 = vmul.f32 %v3308_v56, %v1099_v5  ;;  %v1654_v10 = vmul.f32 %v3229_v48, %v1099_v5  ;;  %1892 = vperm.xlu1 %2453, %v2359_v57  }
 0x16a   : >> { %1887 = vperm.xlu0 %2452, %v2358_v2  }
 0x16b   : >> { %v1127_v22 = vadd.f32 %v1123_v7, %v1087_v41  ;;  %v1659_v14 = vadd.f32 %v1655_v49, %v1651_v42  ;;  %v1126_v15 = vadd.f32 %v1122_v8, %v1086_v43  ;;  %v1658_v17 = vadd.f32 %v1654_v10, %v1650_v44 }
 0x16c   : >> { %v1074_v20 = vpop.permute.xlu1 %1073  ;;  %v1069_v16 = vpop.permute.xlu0 %1068 }
 0x16d   : >> { %v1085_v21 = vmul.f32 %v3291_v63, %v1074_v20  ;;  %v1649_v24 = vmul.f32 %v3212_v23, %v1074_v20  ;;  %v1084_v25 = vmul.f32 %v3291_v63, %v1069_v16  ;;  %v1648_v54 = vmul.f32 %v3212_v23, %v1069_v16  ;;  %1870 = vperm.xlu1 %2453, %v2357_v13  }
 0x16e   : >> { %1865 = vperm.xlu0 %2452, %v2356_v18  }
 0x16f   : >> { %v1089_v28 = vadd.f32 %v1085_v21, %v1049_v58  ;;  %v1653_v29 = vadd.f32 %v1649_v24, %v1645_v60  ;;  %v1088_v30 = vadd.f32 %v1084_v25, %v1048_v59  ;;  %v1652_v31 = vadd.f32 %v1648_v54, %v1644_v62 }
 0x170   : >> { %v1144_v32 = vpop.permute.xlu1 %1143  ;;  %v1139_v33 = vpop.permute.xlu0 %1138 }
 0x171   : >> { %v1163_v34 = vmul.f32 %v3325_v26, %v1144_v32  ;;  %v1663_v35 = vmul.f32 %v3240_v3, %v1144_v32  ;;  %v1162_v23 = vmul.f32 %v3325_v26, %v1139_v33  ;;  %v1662_v37 = vmul.f32 %v3240_v3, %v1139_v33  ;;  %1902 = vperm.xlu1 %2453, %v2361_v27  }
 0x172   : >> { %1897 = vperm.xlu0 %2452, %v2360_v55  }
 0x173   : >> { %v1167_v38 = vadd.f32 %v1163_v34, %v1127_v22  ;;  %v1667_v36 = vadd.f32 %v1663_v35, %v1659_v14  ;;  %v1166_v6 = vadd.f32 %v1162_v23, %v1126_v15  ;;  %v1666_v39 = vadd.f32 %v1662_v37, %v1658_v17  ;;  %v3353_v14 = vld [vmem:[%s3593_s1 + $0x10] ss:$0 sm:$0xff]  ;;  %v3370_v23 = vld [vmem:[%s3593_s1 + $0x11] ss:$0 sm:$0xff] }
 0x174   : >> { %v1114_v40 = vpop.permute.xlu1 %1113  ;;  %v1109_v41 = vpop.permute.xlu0 %1108 }
 0x175   : >> { %v1125_v42 = vmul.f32 %v3308_v56, %v1114_v40  ;;  %v1657_v43 = vmul.f32 %v3229_v48, %v1114_v40  ;;  %v1124_v44 = vmul.f32 %v3308_v56, %v1109_v41  ;;  %v1656_v45 = vmul.f32 %v3229_v48, %v1109_v41 }
 0x177   : >> { %v1129_v47 = vadd.f32 %v1125_v42, %v1089_v28  ;;  %v1661_v50 = vadd.f32 %v1657_v43, %v1653_v29  ;;  %v1128_v51 = vadd.f32 %v1124_v44, %v1088_v30  ;;  %v1660_v52 = vadd.f32 %v1656_v45, %v1652_v31 }
 0x178   : >> { %v1187_v53 = vpop.permute.xlu1 %1186  ;;  %v1182_v57 = vpop.permute.xlu0 %1181 }
 0x179   : >> { %v1206_v58 = vmul.f32 %v3340_v46, %v1187_v53  ;;  %v1671_v60 = vmul.f32 %v3257_v1, %v1187_v53  ;;  %v1205_v59 = vmul.f32 %v3340_v46, %v1182_v57  ;;  %v1670_v62 = vmul.f32 %v3257_v1, %v1182_v57 }
 0x17b   : >> { %v1210_v48 = vadd.f32 %v1206_v58, %v1167_v38  ;;  %v1675_v2 = vadd.f32 %v1671_v60, %v1667_v36  ;;  %v1209_v4 = vadd.f32 %v1205_v59, %v1166_v6  ;;  %v1674_v5 = vadd.f32 %v1670_v62, %v1666_v39  ;;  %v3383_v59 = vld [vmem:[%s3593_s1 + $0x12] ss:$0 sm:$0xff] }
 0x17c   : >> { %v1154_v7 = vpop.permute.xlu1 %1153  ;;  %v1149_v49 = vpop.permute.xlu0 %1148 }
 0x17d   : >> { %v1165_v8 = vmul.f32 %v3325_v26, %v1154_v7  ;;  %v1665_v10 = vmul.f32 %v3240_v3, %v1154_v7  ;;  %v1164_v13 = vmul.f32 %v3325_v26, %v1149_v49  ;;  %v1664_v22 = vmul.f32 %v3240_v3, %v1149_v49 }
 0x17f   : >> { %v1169_v15 = vadd.f32 %v1165_v8, %v1129_v47  ;;  %v1669_v17 = vadd.f32 %v1665_v10, %v1661_v50  ;;  %v1168_v18 = vadd.f32 %v1164_v13, %v1128_v51  ;;  %v1668_v20 = vadd.f32 %v1664_v22, %v1660_v52 }
 0x180   : >> { %v1227_v16 = vpop.permute.xlu1 %1226  ;;  %v1222_v21 = vpop.permute.xlu0 %1221 }
 0x181   : >> { %v1246_v24 = vmul.f32 %v3353_v14, %v1227_v16  ;;  %v1679_v25 = vmul.f32 %v3274_v61, %v1227_v16  ;;  %v1245_v54 = vmul.f32 %v3353_v14, %v1222_v21  ;;  %v1678_v3 = vmul.f32 %v3274_v61, %v1222_v21 }
 0x183   : >> { %v1250_v27 = vadd.f32 %v1246_v24, %v1210_v48  ;;  %v1683_v28 = vadd.f32 %v1679_v25, %v1675_v2  ;;  %v1249_v29 = vadd.f32 %v1245_v54, %v1209_v4  ;;  %v1682_v30 = vadd.f32 %v1678_v3, %v1674_v5  ;;  %v3400_v54 = vld [vmem:[%s3593_s1 + $0x13] ss:$0 sm:$0xff] }
 0x184   : >> { %v1197_v31 = vpop.permute.xlu1 %1196  ;;  %v1192_v55 = vpop.permute.xlu0 %1191 }
 0x185   : >> { %v1208_v32 = vmul.f32 %v3340_v46, %v1197_v31  ;;  %v1673_v33 = vmul.f32 %v3257_v1, %v1197_v31  ;;  %v1207_v34 = vmul.f32 %v3340_v46, %v1192_v55  ;;  %v1672_v35 = vmul.f32 %v3257_v1, %v1192_v55 }
 0x187   : >> { %v1212_v37 = vadd.f32 %v1208_v32, %v1169_v15  ;;  %v1677_v38 = vadd.f32 %v1673_v33, %v1669_v17  ;;  %v1211_v36 = vadd.f32 %v1207_v34, %v1168_v18  ;;  %v1676_v6 = vadd.f32 %v1672_v35, %v1668_v20 }
 0x188   : >> { %v1267_v39 = vpop.permute.xlu1 %1266  ;;  %v1262_v40 = vpop.permute.xlu0 %1261 }
 0x189   : >> { %v1286_v41 = vmul.f32 %v3370_v23, %v1267_v39  ;;  %v1687_v42 = vmul.f32 %v3291_v63, %v1267_v39  ;;  %v1285_v43 = vmul.f32 %v3370_v23, %v1262_v40  ;;  %v1686_v44 = vmul.f32 %v3291_v63, %v1262_v40 }
 0x18b   : >> { %v1290_v1 = vadd.f32 %v1286_v41, %v1250_v27  ;;  %v1691_v45 = vadd.f32 %v1687_v42, %v1683_v28  ;;  %v1289_v47 = vadd.f32 %v1285_v43, %v1249_v29  ;;  %v1690_v50 = vadd.f32 %v1686_v44, %v1682_v30 }
 0x18c   : >> { %v1237_v51 = vpop.permute.xlu1 %1236  ;;  %v1232_v52 = vpop.permute.xlu0 %1231 }
 0x18d   : >> { %v1248_v53 = vmul.f32 %v3353_v14, %v1237_v51  ;;  %v1681_v57 = vmul.f32 %v3274_v61, %v1237_v51  ;;  %v1247_v58 = vmul.f32 %v3353_v14, %v1232_v52  ;;  %v1680_v60 = vmul.f32 %v3274_v61, %v1232_v52 }
 0x18f   : >> { %v1252_v62 = vadd.f32 %v1248_v53, %v1212_v37  ;;  %v1685_v48 = vadd.f32 %v1681_v57, %v1677_v38  ;;  %v1251_v2 = vadd.f32 %v1247_v58, %v1211_v36  ;;  %v1684_v4 = vadd.f32 %v1680_v60, %v1676_v6  ;;  %v3409_v36 = vld [vmem:[%s3593_s1 + $0x14] ss:$0 sm:$0xff] }
 0x190   : >> { %v1307_v5 = vpop.permute.xlu1 %1306  ;;  %v1302_v7 = vpop.permute.xlu0 %1301 }
 0x191   : >> { %v1326_v49 = vmul.f32 %v3383_v59, %v1307_v5  ;;  %v1695_v8 = vmul.f32 %v3308_v56, %v1307_v5  ;;  %v1325_v10 = vmul.f32 %v3383_v59, %v1302_v7  ;;  %v1694_v13 = vmul.f32 %v3308_v56, %v1302_v7 }
 0x193   : >> { %v1330_v61 = vadd.f32 %v1326_v49, %v1290_v1  ;;  %v3389_v22 = vadd.f32 %v1695_v8, %v1691_v45  ;;  %v1329_v15 = vadd.f32 %v1325_v10, %v1289_v47  ;;  %v3391_v17 = vadd.f32 %v1694_v13, %v1690_v50 }
 0x194   : >> { %v1277_v18 = vpop.permute.xlu1 %1276  ;;  %v1272_v20 = vpop.permute.xlu0 %1271 }
 0x195   : >> { %v1288_v16 = vmul.f32 %v3370_v23, %v1277_v18  ;;  %v1689_v21 = vmul.f32 %v3291_v63, %v1277_v18  ;;  %v1287_v24 = vmul.f32 %v3370_v23, %v1272_v20  ;;  %v1688_v25 = vmul.f32 %v3291_v63, %v1272_v20 }
 0x197   : >> { %v1292_v3 = vadd.f32 %v1288_v16, %v1252_v62  ;;  %v1693_v27 = vadd.f32 %v1689_v21, %v1685_v48  ;;  %v1291_v28 = vadd.f32 %v1287_v24, %v1251_v2  ;;  %v1692_v29 = vadd.f32 %v1688_v25, %v1684_v4 }
 0x198   : >> { %v1347_v30 = vpop.permute.xlu1 %1346  ;;  %v1342_v31 = vpop.permute.xlu0 %1341 }
 0x199   : >> { %v1366_v55 = vmul.f32 %v3400_v54, %v1347_v30  ;;  %v1365_v32 = vmul.f32 %v3400_v54, %v1342_v31  ;;  %v1703_v25 = vmul.f32 %v3325_v26, %v1347_v30 }
 0x19b   : >> { %v1370_v33 = vadd.f32 %v1366_v55, %v1330_v61  ;;  %v1369_v34 = vadd.f32 %v1365_v32, %v1329_v15 }
 0x19c   : >> { %v1317_v35 = vpop.permute.xlu1 %1316  ;;  %v1312_v37 = vpop.permute.xlu0 %1311 }
 0x19d   : >> { %v1328_v63 = vmul.f32 %v3383_v59, %v1317_v35  ;;  %v1327_v38 = vmul.f32 %v3383_v59, %v1312_v37  ;;  %v1696_v55 = vmul.f32 %v3308_v56, %v1312_v37 }
 0x19f   : >> { %v1332_v6 = vadd.f32 %v1328_v63, %v1292_v3  ;;  %v1331_v39 = vadd.f32 %v1327_v38, %v1291_v28  ;;  %v1702_v3 = vmul.f32 %v3325_v26, %v1342_v31  ;;  %v1697_v28 = vmul.f32 %v3308_v56, %v1317_v35 }
 0x1a0   : >> { %v1390_v40 = vpop.permute.xlu1 %1389  ;;  %v1385_v41 = vpop.permute.xlu0 %1384  ;;  %v1707_v31 = vadd.f32 %v1703_v25, %v3389_v22 }
 0x1a1   : >> { %v1409_v42 = vmul.f32 %v3409_v36, %v1390_v40  ;;  %v1408_v43 = vmul.f32 %v3409_v36, %v1385_v41  ;;  %v1711_v32 = vmul.f32 %v3340_v46, %v1390_v40  ;;  %v1706_v35 = vadd.f32 %v1702_v3, %v3391_v17 }
 0x1a2   : >> { %v1701_v37 = vadd.f32 %v1697_v28, %v1693_v27 }
 0x1a3   : >> { %v1413_v44 = vadd.f32 %v1409_v42, %v1370_v33  ;;  %v3413_v1 = vadd.f32 %v1408_v43, %v1369_v34  ;;  %v1710_v33 = vmul.f32 %v3340_v46, %v1385_v41  ;;  %v3456_v34 = vld [vmem:[%s3593_s1 + $0x15] ss:$0 sm:$0xff]  ;;  %v3471_v41 = vld [vmem:[%s3593_s1 + $0x16] ss:$0 sm:$0xff]  ;;  %v1715_v42 = vadd.f32 %v1711_v32, %v1707_v31 }
 0x1a4   : >> { %v1357_v45 = vpop.permute.xlu1 %1356  ;;  %v1352_v47 = vpop.permute.xlu0 %1351 }
 0x1a5   : >> { %v1368_v50 = vmul.f32 %v3400_v54, %v1357_v45  ;;  %v1367_v51 = vmul.f32 %v3400_v54, %v1352_v47  ;;  %v1705_v38 = vmul.f32 %v3325_v26, %v1357_v45  ;;  %v1704_v56 = vmul.f32 %v3325_v26, %v1352_v47 }
 0x1a6   : >> { %v1714_v43 = vadd.f32 %v1710_v33, %v1706_v35 }
 0x1a7   : >> { %v3417_v52 = vadd.f32 %v1368_v50, %v1332_v6  ;;  %v3419_v53 = vadd.f32 %v1367_v51, %v1331_v39  ;;  %v1700_v6 = vadd.f32 %v1696_v55, %v1692_v29  ;;  %v1709_v26 = vadd.f32 %v1705_v38, %v1701_v37 }
 0x1a8   : >> { %v1430_v57 = vpop.permute.xlu1 %1429  ;;  %v1425_v58 = vpop.permute.xlu0 %1424 }
 0x1a9   : >> { %v1449_v39 = vmul.f32 %v3456_v34, %v1430_v57  ;;  %v1719_v40 = vmul.f32 %v3353_v14, %v1430_v57  ;;  %v1448_v45 = vmul.f32 %v3456_v34, %v1425_v58  ;;  %v1718_v22 = vmul.f32 %v3353_v14, %v1425_v58 }
 0x1aa   : >> { %v1708_v51 = vadd.f32 %v1704_v56, %v1700_v6 }
 0x1ab   : >> { %v1453_v28 = vadd.f32 %v1449_v39, %v1413_v44  ;;  %v1723_v58 = vadd.f32 %v1719_v40, %v1715_v42  ;;  %v1452_v33 = vadd.f32 %v1448_v45, %v3413_v1  ;;  %v3504_v39 = vld [vmem:[%s3593_s1 + $0x18] ss:$0 sm:$0xff] }
 0x1ac   : >> { %v1400_v60 = vpop.permute.xlu1 %1399  ;;  %v1395_v62 = vpop.permute.xlu0 %1394 }
 0x1ad   : >> { %v1411_v27 = vmul.f32 %v3409_v36, %v1400_v60  ;;  %v1713_v29 = vmul.f32 %v3340_v46, %v1400_v60  ;;  %v1410_v47 = vmul.f32 %v3409_v36, %v1395_v62  ;;  %v1712_v57 = vmul.f32 %v3340_v46, %v1395_v62  ;;  %v3493_v46 = vld [vmem:[%s3593_s1 + $0x17] ss:$0 sm:$0xff] }
 0x1ae   : >> { %v1722_v60 = vadd.f32 %v1718_v22, %v1714_v43 }
 0x1af   : >> { %v1415_v44 = vadd.f32 %v1411_v27, %v3417_v52  ;;  %v1414_v35 = vadd.f32 %v1410_v47, %v3419_v53  ;;  %v1716_v56 = vadd.f32 %v1712_v57, %v1708_v51 }
 0x1b0   : >> { %v1470_v48 = vpop.permute.xlu1 %1469  ;;  %v1465_v2 = vpop.permute.xlu0 %1464 }
 0x1b1   : >> { %v1489_v25 = vmul.f32 %v3471_v41, %v1470_v48  ;;  %v1727_v3 = vmul.f32 %v3370_v23, %v1470_v48  ;;  %v1488_v55 = vmul.f32 %v3471_v41, %v1465_v2  ;;  %v1726_v32 = vmul.f32 %v3370_v23, %v1465_v2 }
 0x1b2   : >> { %v1717_v48 = vadd.f32 %v1713_v29, %v1709_v26 }
 0x1b3   : >> { %v1493_v37 = vadd.f32 %v1489_v25, %v1453_v28  ;;  %v1731_v6 = vadd.f32 %v1727_v3, %v1723_v58  ;;  %v1492_v40 = vadd.f32 %v1488_v55, %v1452_v33  ;;  %v1730_v52 = vadd.f32 %v1726_v32, %v1722_v60 }
 0x1b4   : >> { %v1440_v4 = vpop.permute.xlu1 %1439  ;;  %v3421_v5 = vpop.permute.xlu0 %1434 }
 0x1b5   : >> { %v1451_v38 = vmul.f32 %v3456_v34, %v1440_v4  ;;  %v1721_v31 = vmul.f32 %v3353_v14, %v1440_v4  ;;  %v1450_v2 = vmul.f32 %v3456_v34, %v3421_v5  ;;  %v1720_v4 = vmul.f32 %v3353_v14, %v3421_v5 }
 0x1b7   : >> { %v1455_v43 = vadd.f32 %v1451_v38, %v1415_v44  ;;  %v1725_v45 = vadd.f32 %v1721_v31, %v1717_v48  ;;  %v1454_v26 = vadd.f32 %v1450_v2, %v1414_v35  ;;  %v1724_v51 = vadd.f32 %v1720_v4, %v1716_v56 }
 0x1b8   : >> { %v3423_v7 = vpop.permute.xlu1 %1509 }
 0x1b9   : >> { %v3425_v49 = vpop.permute.xlu0 %1504  ;;  %v1529_v53 = vmul.f32 %v3493_v46, %v3423_v7  ;;  %v1735_v42 = vmul.f32 %v3383_v59, %v3423_v7 }
 0x1ba   : >> { %v1528_v22 = vmul.f32 %v3493_v46, %v3425_v49  ;;  %v1734_v14 = vmul.f32 %v3383_v59, %v3425_v49 }
 0x1bb   : >> { %v1533_v3 = vadd.f32 %v1529_v53, %v1493_v37  ;;  %v1739_v28 = vadd.f32 %v1735_v42, %v1731_v6 }
 0x1bc   : >> { %v3427_v8 = vpop.permute.xlu1 %1479  ;;  %v1738_v32 = vadd.f32 %v1734_v14, %v1730_v52 }
 0x1bd   : >> { %v3429_v10 = vpop.permute.xlu0 %1474  ;;  %v1491_v27 = vmul.f32 %v3471_v41, %v3427_v8  ;;  %v1729_v57 = vmul.f32 %v3370_v23, %v3427_v8 }
 0x1be   : >> { %v1490_v25 = vmul.f32 %v3471_v41, %v3429_v10  ;;  %v1728_v33 = vmul.f32 %v3370_v23, %v3429_v10 }
 0x1bf   : >> { %v1495_v38 = vadd.f32 %v1491_v27, %v1455_v43 }
 0x1c0   : >> { %v3431_v13 = vpop.permute.xlu1 %1549  ;;  %v1494_v2 = vadd.f32 %v1490_v25, %v1454_v26  ;;  %v1732_v6 = vadd.f32 %v1728_v33, %v1724_v51 }
 0x1c1   : >> { %v3433_v61 = vpop.permute.xlu0 %1544  ;;  %v1569_v29 = vmul.f32 %v3504_v39, %v3431_v13  ;;  %v1743_v47 = vmul.f32 %v3400_v54, %v3431_v13  ;;  %v1532_v13 = vadd.f32 %v1528_v22, %v1492_v40 }
 0x1c2   : >> { %v1742_v49 = vmul.f32 %v3400_v54, %v3433_v61  ;;  %v1568_v58 = vmul.f32 %v3504_v39, %v3433_v61  ;;  %v1733_v61 = vadd.f32 %v1729_v57, %v1725_v45 }
 0x1c3   : >> { %v1573_v31 = vadd.f32 %v1569_v29, %v1533_v3  ;;  %v1747_v44 = vadd.f32 %v1743_v47, %v1739_v28 }
 0x1c4   : >> { %v3435_v15 = vpop.permute.xlu1 %1519  ;;  %v1746_v56 = vadd.f32 %v1742_v49, %v1738_v32  ;;  %v1572_v37 = vadd.f32 %v1568_v58, %v1532_v13 }
 0x1c5   : >> { %v3437_v18 = vpop.permute.xlu0 %1514  ;;  %v1737_v23 = vmul.f32 %v3383_v59, %v3435_v15  ;;  %v1583_v53 = vadd.f32 %v2504_v0, %v1573_v31 }
 0x1c6   : >> { %v1736_v4 = vmul.f32 %v3383_v59, %v3437_v18  ;;  %v1530_v47 = vmul.f32 %v3493_v46, %v3437_v18 }
 0x1c7   : >> { %v1741_v26 = vadd.f32 %v1737_v23, %v1733_v61  ;;  %v1587_v23 = vmax.f32 %v1583_v53, 0.0 }
 0x1c8   : >> { %v3439_v20 = vpop.permute.xlu1 %1764  ;;  %v1740_v51 = vadd.f32 %v1736_v4, %v1732_v6 }
 0x1c9   : >> { %v3441_v16 = vpop.permute.xlu0 %1759  ;;  %v1778_v55 = vmul.f32 %v3409_v36, %v3439_v20 }
 0x1ca   : >> { %v1777_v8 = vmul.f32 %v3409_v36, %v3441_v16 }
 0x1cb   : >> { %v1782_v10 = vadd.f32 %v1778_v55, %v1747_v44 }
 0x1cc   : >> { %v3443_v21 = vpop.permute.xlu1 %1559  ;;  %v1781_v40 = vadd.f32 %v1777_v8, %v1746_v56 }
 0x1cd   : >> { %v3445_v24 = vpop.permute.xlu0 %1554  ;;  %v1571_v18 = vmul.f32 %v3504_v39, %v3443_v21 }
 0x1ce   : >> { %v1744_v22 = vmul.f32 %v3400_v54, %v3445_v24 }
 0x1d0   : >> { %v3458_v63 = vpop.permute.xlu1 %1796  ;;  %v1748_v55 = vadd.f32 %v1744_v22, %v1740_v51 }
 0x1d1   : >> { %v3461_v30 = vpop.permute.xlu0 %1791  ;;  %v1810_v48 = vmul.f32 %v3456_v34, %v3458_v63 }
 0x1d2   : >> { %v1809_v20 = vmul.f32 %v3456_v34, %v3461_v30  ;;  %v1745_v30 = vmul.f32 %v3400_v54, %v3443_v21  ;;  %v1534_v21 = vadd.f32 %v1530_v47, %v1494_v2 }
 0x1d3   : >> { %v1814_v42 = vadd.f32 %v1810_v48, %v1782_v10 }
 0x1d4   : >> { %v3475_v17 = vpop.permute.xlu1 %1774  ;;  %v1813_v59 = vadd.f32 %v1809_v20, %v1781_v40  ;;  %v1749_v54 = vadd.f32 %v1745_v30, %v1741_v26 }
 0x1d5   : >> { %v3480_v50 = vpop.permute.xlu0 %1769  ;;  %v1780_v27 = vmul.f32 %v3409_v36, %v3475_v17 }
 0x1d7   : >> { %v1784_v33 = vadd.f32 %v1780_v27, %v1749_v54 }
 0x1d8   : >> { %v1829_v62 = vpop.permute.xlu1 %1828 }
 0x1d9   : >> { %v1824_v1 = vpop.permute.xlu0 %1823  ;;  %v1842_v16 = vmul.f32 %v3471_v41, %v1829_v62  ;;  %v1531_v62 = vmul.f32 %v3493_v46, %v3435_v15  ;;  %v1779_v15 = vmul.f32 %v3409_v36, %v3480_v50 }
 0x1da   : >> { %v1841_v63 = vmul.f32 %v3471_v41, %v1824_v1  ;;  %v1582_v1 = vadd.f32 %v2504_v0, %v1572_v37 }
 0x1db   : >> { %v1846_v29 = vadd.f32 %v1842_v16, %v1814_v42  ;;  %v1783_v8 = vadd.f32 %v1779_v15, %v1748_v55  ;;  %v1535_v48 = vadd.f32 %v1531_v62, %v1495_v38 }
 0x1dc   : >> { %v1807_v5 = vpop.permute.xlu1 %1806  ;;  %v1845_v57 = vadd.f32 %v1841_v63, %v1813_v59 }
 0x1dd   : >> { %v1802_v7 = vpop.permute.xlu0 %1801  ;;  %v1812_v49 = vmul.f32 %v3456_v34, %v1807_v5  ;;  %v1570_v5 = vmul.f32 %v3504_v39, %v3445_v24  ;;  %v1575_v24 = vadd.f32 %v1571_v18, %v1535_v48 }
 0x1de   : >> { %v1811_v17 = vmul.f32 %v3456_v34, %v1802_v7 }
 0x1df   : >> { %v1816_v34 = vadd.f32 %v1812_v49, %v1784_v33  ;;  %v1574_v6 = vadd.f32 %v1570_v5, %v1534_v21 }
 0x1e0   : >> { %v1861_v60 = vpop.permute.xlu1 %1860  ;;  %v1815_v56 = vadd.f32 %v1811_v17, %v1783_v8 }
 0x1e1   : >> { %v1856_v35 = vpop.permute.xlu0 %1855  ;;  %v1874_v43 = vmul.f32 %v3493_v46, %v1861_v60  ;;  %v1584_v62 = vadd.f32 %v2504_v0, %v1574_v6 }
 0x1e2   : >> { %v1873_v14 = vmul.f32 %v3493_v46, %v1856_v35 }
 0x1e3   : >> { %v1878_v3 = vadd.f32 %v1874_v43, %v1846_v29  ;;  %v1588_v29 = vmax.f32 %v1584_v62, 0.0 }
 0x1e4   : >> { %v1839_v52 = vpop.permute.xlu1 %1838  ;;  %v1877_v13 = vadd.f32 %v1873_v14, %v1845_v57 }
 0x1e5   : >> { %v1834_v45 = vpop.permute.xlu0 %1833  ;;  %v1844_v36 = vmul.f32 %v3471_v41, %v1839_v52 }
 0x1e6   : >> { %v1843_v60 = vmul.f32 %v3471_v41, %v1834_v45  ;;  %v1586_v41 = vmax.f32 %v1582_v1, 0.0 }
 0x1e7   : >> { %v1848_v10 = vadd.f32 %v1844_v36, %v1816_v34 }
 0x1e8   : >> { %v1893_v25 = vpop.permute.xlu1 %1892  ;;  %v1847_v4 = vadd.f32 %v1843_v60, %v1815_v56 }
 0x1e9   : >> { %v1906_v28 = vmul.f32 %v3504_v39, %v1893_v25  ;;  %v1888_v58 = vpop.permute.xlu0 %1887 }
 0x1ea   : >> { %v1905_v32 = vmul.f32 %v3504_v39, %v1888_v58 }
 0x1eb   : >> { %v1910_v50 = vadd.f32 %v1906_v28, %v1878_v3 }
 0x1ec   : >> { %v1909_v31 = vadd.f32 %v1905_v32, %v1877_v13  ;;  %v1871_v44 = vpop.permute.xlu1 %1870 }
 0x1ed   : >> { %v1914_v7 = vadd.f32 %v2504_v0, %v1910_v50  ;;  %v1876_v35 = vmul.f32 %v3493_v46, %v1871_v44  ;;  %v1866_v61 = vpop.permute.xlu0 %1865 }
 0x1ee   : >> { %v1913_v20 = vadd.f32 %v2504_v0, %v1909_v31  ;;  %v1875_v37 = vmul.f32 %v3493_v46, %v1866_v61  ;;  %v1585_v46 = vadd.f32 %v2504_v0, %v1575_v24 }
 0x1ef   : >> { %v1918_v16 = vmax.f32 %v1914_v7, 0.0  ;;  %v1880_v52 = vadd.f32 %v1876_v35, %v1848_v10 }
 0x1f0   : >> { %v1917_v38 = vmax.f32 %v1913_v20, 0.0  ;;  %v1903_v40 = vpop.permute.xlu1 %1902  ;;  %v1879_v43 = vadd.f32 %v1875_v37, %v1847_v4  ;;  %v1589_v26 = vmax.f32 %v1585_v46, 0.0 }
 0x1f1   : >> { %v1922_v63 = vmax.f32 %v1587_v23, %v1918_v16  ;;  %v1908_v30 = vmul.f32 %v3504_v39, %v1903_v40  ;;  %v1898_v42 = vpop.permute.xlu0 %1897 }
 0x1f2   : >> { %v1921_v2 = vmax.f32 %v1586_v41, %v1917_v38  ;;  %v1907_v45 = vmul.f32 %v3504_v39, %v1898_v42 }
 0x1f3   : >> { %v1912_v53 = vadd.f32 %v1908_v30, %v1880_v52 }
 0x1f4   : >> { %v1911_v22 = vadd.f32 %v1907_v45, %v1879_v43  ;;  %v2413_v59 = vpack.c.bf16 %v1922_v63, %v1921_v2 }
 0x1f5   : >> { %v1916_v14 = vadd.f32 %v2504_v0, %v1912_v53 }
 0x1f6   : >> { %v1915_v1 = vadd.f32 %v2504_v0, %v1911_v22  ;;  %2414 = vmatprep.subr.bf16.mxu0 %v2413_v59  ;;  %2424 = vmatprep.subr.bf16.mxu1 %v2413_v59 }
 0x1f7   : >> { %v1920_v27 = vmax.f32 %v1916_v14, 0.0  ;;  %2416 = vmatpush3.bf16.msra.mxu0 %v2413_v59  ;;  %2426 = vmatpush3.bf16.msra.mxu1 %v2413_v59 }
 0x1f8   : >> { %v1919_v39 = vmax.f32 %v1915_v1, 0.0 }
 0x1f9   : >> { %v1924_v47 = vmax.f32 %v1589_v26, %v1920_v27 }
 0x1fa   : >> { %v1923_v51 = vmax.f32 %v1588_v29, %v1919_v39 }
 0x1fc   : >> { %v2417_v15 = vpack.c.bf16 %v1924_v47, %v1923_v51 }
 0x1fe   : >> { %2419 = vmatprep.subr.msk.bf16.mxu0 %vm2418_vm9, %v2417_v15  ;;  %2429 = vmatprep.subr.msk.bf16.mxu1 %vm2418_vm9, %v2417_v15 }
 0x1ff   : >> { %2422 = vmatpush3.bf16.msk.msra.mxu0 %vm2418_vm9, %v2417_v15  ;;  %2432 = vmatpush3.bf16.msk.msra.mxu1 %vm2418_vm9, %v2417_v15 }
 0x202   : >> { %2400 = vmatmul.mubr.msk.f32.vlgmr.msra.gmra.mrb[0].mxu0 %vm1925_vm6, %v2786_v11  ;;  %2411 = vmatmul.mubr.msk.f32.vlgmr.msra.gmra.mrb[0].mxu1 %vm1925_vm6, %v2801_v19 }
 0x2d3   : > { %560 = sbr.rel (!%p558_p5) target bundleno = 126 (0x7e), region = 101 }
 0x2d5   : >> { %v2401_v57 = vpop.f32.mrb[0].mxu0  ;;  %v2412_v25 = vpop.f32.mrb[0].mxu1 }
 0x2d6   : >> { %v2093_v54 = vmax.f32 %v2401_v57, %v2412_v25  ;;  %v2002_v49 = vpop.f32.mrb[1].mxu0  ;;  %v2083_v3 = vpop.f32.mrb[1].mxu1 }
 0x2d7   : >> { %v2092_v28 = vmax.f32 %v2002_v49, %v2083_v3 }
 0x2d8   : >> { %2099 = vst.msk [vmem:[%s2095_s6 + $0x8] sm:$0x3f] %vm2098_vm10, %v2093_v54 }
 0x2d9   : >> { %2097 = vst.msk [vmem:[%s2095_s6] sm:$0xff] %vm2096_vm11, %v2092_v28 }
 0x2da PF: > { %s13_s12 = sadd.s32 1, %s2464_s12  }
 0x2db   : > { %p10_p6 = scmp.ge.s32.totalorder %s13_s12, 4  }
 0x2dd   :  { %12 = sbr.rel (!%p10_p6) target bundleno = 1 (0x1), region = 112 }

// kernel: cnn_forward.4
= control target key start
LH: loop header
LB: loop body
LE: loop exit
PB: predicated region body
PF: predicated region fallthrough
CT: control target
= control target key end

     0   :  { %s5906_s12 = smov 0   ;;  %s6591_s0 = inlined_call_operand.vmem [shape: f32[28,14,16], index: 0, kind: input, shape index: {}]   ;;  %s6592_s1 = inlined_call_operand.vmem [shape: f32[25,16,32], index: 1, kind: input, shape index: {}]   ;;  %s6593_s2 = inlined_call_operand.vmem [shape: f32[1,32], index: 2, kind: input, shape index: {}]   ;;  %s6594_s3 = inlined_call_operand.vmem [shape: f32[14,7,32], index: 3, kind: output, shape index: {}]  }
   0x1 LB: > { %s4741_s13 = sadd.s32 4294967295, %s5875_s12   ;;  %p4745_p0 = scmp.ge.s32.totalorder %s5875_s12, 1  ;;  %s5875_s12 = sphi %s5906_s12, %s13_s12  }
   0x2   : > { %p139_p1 = scmp.lt.s32.totalorder %s5875_s12, 3 }
   0x4   : > { %p140_p2 = pnand %p4745_p0, %p139_p1 }
   0x5   : > { %vm177_vm0 = vcmask (!%p140_p2), 130048   ;;  %v5917_v0 = vld [vmem:[%s6593_s2] ss:$0 sm:$0xff] (!%p140_p2)  ;;  %v292_v1 = vlaneseq (!%p140_p2)  ;;  %s5921_s16 = smul.u32 (!%p140_p2), 7, %s4741_s13  ;;  %vm180_vm1 = vcmask (!%p140_p2), 123904   ;;  %v5881_v2 = vmov (!%p140_p2), 0.0  }
   0x6   : > { %143 = sbr.rel (%p140_p2) target bundleno = 686 (0x2ae), region = 32  ;;  %185 = vst.msk [vmem:[#allocation2 + $0x30] sm:$0xff] (!%p140_p2), %vm177_vm0, %v5881_v2  ;;  %178 = vst.msk [vmem:[#allocation2] sm:$0xff] (!%p140_p2), %vm177_vm0, %v5881_v2  ;;  %vm263_vm3 = vcmask (!%p140_p2), 128000   ;;  %s6107_s26 = smov (!%p140_p2), 0  }
   0x7   : > { %179 = vst.msk [vmem:[#allocation2 + $0x8] sm:$0xff] (!%p140_p2), %vm177_vm0, %v5881_v2  ;;  %182 = vst.msk [vmem:[#allocation2 + $0x18] sm:$0xff] (!%p140_p2), %vm177_vm0, %v5881_v2  ;;  %s164_s17 = smul.u32 (!%p140_p2), 14, %s4741_s13  ;;  %v293_v3 = vshrl.u32 (!%p140_p2), %v292_v1, 7  ;;  %v295_v4 = vand.u32 (!%p140_p2), 127, %v292_v1  ;;  %p172_p3 = scmp.lt.s32.totalorder (!%p140_p2), %s5921_s16, 13 }
   0x8   : > { %183 = vst.msk [vmem:[#allocation2 + $0x20] sm:$0xff] (!%p140_p2), %vm177_vm0, %v5881_v2  ;;  %186 = vst.msk [vmem:[#allocation2 + $0x38] sm:$0xff] (!%p140_p2), %vm177_vm0, %v5881_v2 }
   0x9   : > { %188 = vst.msk [vmem:[#allocation2 + $0x48] sm:$0xff] (!%p140_p2), %vm177_vm0, %v5881_v2  ;;  %189 = vst.msk [vmem:[#allocation2 + $0x50] sm:$0xff] (!%p140_p2), %vm177_vm0, %v5881_v2  ;;  %p165_p4 = scmp.lt.s32.totalorder (!%p140_p2), %s164_s17, 27  ;;  %v296_v5 = vmul.u32 (!%p140_p2), 2, %v293_v3 }
   0xa   : > { %191 = vst.msk [vmem:[#allocation2 + $0x60] sm:$0xff] (!%p140_p2), %vm177_vm0, %v5881_v2  ;;  %192 = vst.msk [vmem:[#allocation2 + $0x68] sm:$0xff] (!%p140_p2), %vm177_vm0, %v5881_v2 }
   0xb   : > { %194 = vst.msk [vmem:[#allocation2 + $0x78] sm:$0xff] (!%p140_p2), %vm177_vm0, %v5881_v2  ;;  %195 = vst.msk [vmem:[#allocation2 + $0x80] sm:$0xff] (!%p140_p2), %vm177_vm0, %v5881_v2  ;;  %vm297_vm2 = vcmp.eq.s32.totalorder (!%p140_p2), %v295_v4, %v296_v5  ;;  %v300_v6 = vadd.s32 (!%p140_p2), 1, %v296_v5 }
   0xc   : > { %197 = vst.msk [vmem:[#allocation2 + $0x90] sm:$0xff] (!%p140_p2), %vm177_vm0, %v5881_v2  ;;  %198 = vst.msk [vmem:[#allocation2 + $0x98] sm:$0xff] (!%p140_p2), %vm177_vm0, %v5881_v2  ;;  %v6036_v7 = vsel (!%p140_p2), %vm297_vm2, 1.0, %v5881_v2 }
   0xd   : > { %200 = vst.msk [vmem:[#allocation2 + $0xa8] sm:$0xff] %vm177_vm0, %v5881_v2  ;;  %201 = vst.msk [vmem:[#allocation2 + $0xb0] sm:$0xff] %vm177_vm0, %v5881_v2  ;;  %s6596_s16 = smov (!%p172_p3, %s5921_s16), 13  ;;  %s6598_s17 = smov (!%p165_p4, %s164_s17), 27  ;;  %vm301_vm4 = vcmp.eq.s32.totalorder %v295_v4, %v300_v6 }
   0xe   : > { %203 = vst.msk [vmem:[#allocation2 + $0xc0] sm:$0xff] %vm177_vm0, %v5881_v2  ;;  %204 = vst.msk [vmem:[#allocation2 + $0xc8] sm:$0xff] %vm177_vm0, %v5881_v2  ;;  %s4748_s18 = sshll.u32 %s6596_s16, 3  ;;  %s4969_s22 = sshll.u32 %s6598_s17, 4  ;;  %v6049_v8 = vsel %vm301_vm4, 1.0, %v5881_v2 }
   0xf   : > { %206 = vst.msk [vmem:[#allocation2 + $0xd8] sm:$0xff] %vm177_vm0, %v5881_v2  ;;  %207 = vst.msk [vmem:[#allocation2 + $0xe0] sm:$0xff] %vm177_vm0, %v5881_v2  ;;  %s6041_s21 = scalar_lea.vmem %s6594_s3, %s4748_s18  ;;  %s6046_s25 = scalar_lea.vmem %s6591_s0, %s4969_s22 }
  0x10   : > { %209 = vst.msk [vmem:[#allocation2 + $0xf0] sm:$0xff] %vm177_vm0, %v5881_v2  ;;  %210 = vst.msk [vmem:[#allocation2 + $0xf8] sm:$0xff] %vm177_vm0, %v5881_v2  ;;  %v233_v9 = vld [vmem:[%s6046_s25] sm:$0xff]  ;;  %v234_v10 = vld [vmem:[%s6046_s25 + $0x8] sm:$0x3f] }
  0x11   : > { %212 = vst.msk [vmem:[#allocation2 + $0x108] sm:$0xff] %vm177_vm0, %v5881_v2  ;;  %213 = vst.msk [vmem:[#allocation2 + $0x110] sm:$0xff] %vm177_vm0, %v5881_v2  ;;  %v235_v11 = vld [vmem:[%s6046_s25 + $0x10] sm:$0xff]  ;;  %v236_v12 = vld [vmem:[%s6046_s25 + $0x18] sm:$0x3f] }
  0x12   : > { %215 = vst.msk [vmem:[#allocation2 + $0x120] sm:$0xff] %vm177_vm0, %v5881_v2  ;;  %216 = vst.msk [vmem:[#allocation2 + $0x128] sm:$0xff] %vm177_vm0, %v5881_v2  ;;  %v237_v13 = vld [vmem:[%s6046_s25 + $0x20] sm:$0xff]  ;;  %v238_v14 = vld [vmem:[%s6046_s25 + $0x28] sm:$0x3f] }
  0x13   : > { %218 = vst.msk [vmem:[#allocation2 + $0x138] sm:$0xff] %vm177_vm0, %v5881_v2  ;;  %219 = vst.msk [vmem:[#allocation2 + $0x140] sm:$0xff] %vm177_vm0, %v5881_v2  ;;  %v239_v15 = vld [vmem:[%s6046_s25 + $0x30] sm:$0xff]  ;;  %v240_v16 = vld [vmem:[%s6046_s25 + $0x38] sm:$0x3f] }
  0x14   : > { %221 = vst.msk [vmem:[#allocation2 + $0x150] sm:$0xff] %vm177_vm0, %v5881_v2  ;;  %222 = vst.msk [vmem:[#allocation2 + $0x158] sm:$0xff] %vm177_vm0, %v5881_v2  ;;  %v241_v17 = vld [vmem:[%s6046_s25 + $0x40] sm:$0xff]  ;;  %v242_v18 = vld [vmem:[%s6046_s25 + $0x48] sm:$0x3f] }
  0x15   : > { %224 = vst.msk [vmem:[#allocation2 + $0x168] sm:$0xff] %vm177_vm0, %v5881_v2  ;;  %225 = vst.msk [vmem:[#allocation2 + $0x170] sm:$0xff] %vm177_vm0, %v5881_v2  ;;  %v243_v19 = vld [vmem:[%s6046_s25 + $0x50] sm:$0xff]  ;;  %v244_v20 = vld [vmem:[%s6046_s25 + $0x58] sm:$0x3f] }
  0x16   : > { %227 = vst.msk [vmem:[#allocation2 + $0x180] sm:$0xff] %vm177_vm0, %v5881_v2  ;;  %228 = vst.msk [vmem:[#allocation2 + $0x188] sm:$0xff] %vm177_vm0, %v5881_v2  ;;  %v245_v21 = vld [vmem:[%s6046_s25 + $0x60] sm:$0xff]  ;;  %v246_v22 = vld [vmem:[%s6046_s25 + $0x68] sm:$0x3f] }
  0x17   : > { %230 = vst.msk [vmem:[#allocation2 + $0x198] sm:$0xff] %vm177_vm0, %v5881_v2  ;;  %231 = vst.msk [vmem:[#allocation2 + $0x1a0] sm:$0xff] %vm177_vm0, %v5881_v2  ;;  %v247_v23 = vld [vmem:[%s6046_s25 + $0x70] sm:$0xff]  ;;  %v248_v24 = vld [vmem:[%s6046_s25 + $0x78] sm:$0x3f] }
  0x18   : > { %181 = vst.msk [vmem:[#allocation2 + $0x10] sm:$0x3] %vm180_vm1, %v5881_v2  ;;  %184 = vst.msk [vmem:[#allocation2 + $0x28] sm:$0x3] %vm180_vm1, %v5881_v2  ;;  %v249_v25 = vld [vmem:[%s6046_s25 + $0x80] sm:$0xff]  ;;  %v251_v27 = vld [vmem:[%s6046_s25 + $0x90] sm:$0xff] }
  0x19   : > { %187 = vst.msk [vmem:[#allocation2 + $0x40] sm:$0x3] %vm180_vm1, %v5881_v2  ;;  %190 = vst.msk [vmem:[#allocation2 + $0x58] sm:$0x3] %vm180_vm1, %v5881_v2  ;;  %v250_v26 = vld [vmem:[%s6046_s25 + $0x88] sm:$0x3f] }
  0x1a   : > { %193 = vst.msk [vmem:[#allocation2 + $0x70] sm:$0x3] %vm180_vm1, %v5881_v2  ;;  %196 = vst.msk [vmem:[#allocation2 + $0x88] sm:$0x3] %vm180_vm1, %v5881_v2  ;;  %v252_v28 = vld [vmem:[%s6046_s25 + $0x98] sm:$0x3f] }
  0x1b   : > { %199 = vst.msk [vmem:[#allocation2 + $0xa0] sm:$0x3] %vm180_vm1, %v5881_v2  ;;  %202 = vst.msk [vmem:[#allocation2 + $0xb8] sm:$0x3] %vm180_vm1, %v5881_v2  ;;  %v253_v29 = vld [vmem:[%s6046_s25 + $0xa0] sm:$0xff]  ;;  %v255_v31 = vld [vmem:[%s6046_s25 + $0xb0] sm:$0xff] }
  0x1c   : > { %205 = vst.msk [vmem:[#allocation2 + $0xd0] sm:$0x3] %vm180_vm1, %v5881_v2  ;;  %208 = vst.msk [vmem:[#allocation2 + $0xe8] sm:$0x3] %vm180_vm1, %v5881_v2  ;;  %v254_v30 = vld [vmem:[%s6046_s25 + $0xa8] sm:$0x3f] }
  0x1d   : > { %211 = vst.msk [vmem:[#allocation2 + $0x100] sm:$0x3] %vm180_vm1, %v5881_v2  ;;  %214 = vst.msk [vmem:[#allocation2 + $0x118] sm:$0x3] %vm180_vm1, %v5881_v2  ;;  %v256_v32 = vld [vmem:[%s6046_s25 + $0xb8] sm:$0x3f] }
  0x1e   : > { %217 = vst.msk [vmem:[#allocation2 + $0x130] sm:$0x3] %vm180_vm1, %v5881_v2  ;;  %220 = vst.msk [vmem:[#allocation2 + $0x148] sm:$0x3] %vm180_vm1, %v5881_v2  ;;  %v257_v33 = vld [vmem:[%s6046_s25 + $0xc0] sm:$0xff]  ;;  %v259_v35 = vld [vmem:[%s6046_s25 + $0xd0] sm:$0xff] }
  0x1f   : > { %223 = vst.msk [vmem:[#allocation2 + $0x160] sm:$0x3] %vm180_vm1, %v5881_v2  ;;  %226 = vst.msk [vmem:[#allocation2 + $0x178] sm:$0x3] %vm180_vm1, %v5881_v2  ;;  %v258_v34 = vld [vmem:[%s6046_s25 + $0xc8] sm:$0x3f] }
  0x20   : > { %229 = vst.msk [vmem:[#allocation2 + $0x190] sm:$0x3] %vm180_vm1, %v5881_v2  ;;  %232 = vst.msk [vmem:[#allocation2 + $0x1a8] sm:$0x3] %vm180_vm1, %v5881_v2  ;;  %v260_v36 = vld [vmem:[%s6046_s25 + $0xd8] sm:$0x3f] }
  0x21   : > { %262 = vst.msk [vmem:[#allocation2 + $0x32] sm:$0xff] %vm177_vm0, %v233_v9  ;;  %265 = vst.msk [vmem:[#allocation2 + $0x4a] sm:$0xff] %vm177_vm0, %v235_v11 }
  0x22   : > { %264 = vst.msk [vmem:[#allocation2 + $0x3a] sm:$0x3f] %vm263_vm3, %v234_v10  ;;  %266 = vst.msk [vmem:[#allocation2 + $0x52] sm:$0x3f] %vm263_vm3, %v236_v12 }
  0x23   : > { %267 = vst.msk [vmem:[#allocation2 + $0x62] sm:$0xff] %vm177_vm0, %v237_v13  ;;  %269 = vst.msk [vmem:[#allocation2 + $0x7a] sm:$0xff] %vm177_vm0, %v239_v15 }
  0x24   : > { %268 = vst.msk [vmem:[#allocation2 + $0x6a] sm:$0x3f] %vm263_vm3, %v238_v14  ;;  %270 = vst.msk [vmem:[#allocation2 + $0x82] sm:$0x3f] %vm263_vm3, %v240_v16 }
  0x25   : > { %271 = vst.msk [vmem:[#allocation2 + $0x92] sm:$0xff] %vm177_vm0, %v241_v17  ;;  %273 = vst.msk [vmem:[#allocation2 + $0xaa] sm:$0xff] %vm177_vm0, %v243_v19 }
  0x26   : > { %272 = vst.msk [vmem:[#allocation2 + $0x9a] sm:$0x3f] %vm263_vm3, %v242_v18  ;;  %274 = vst.msk [vmem:[#allocation2 + $0xb2] sm:$0x3f] %vm263_vm3, %v244_v20 }
  0x27   : > { %275 = vst.msk [vmem:[#allocation2 + $0xc2] sm:$0xff] %vm177_vm0, %v245_v21  ;;  %277 = vst.msk [vmem:[#allocation2 + $0xda] sm:$0xff] %vm177_vm0, %v247_v23 }
  0x28   : > { %276 = vst.msk [vmem:[#allocation2 + $0xca] sm:$0x3f] %vm263_vm3, %v246_v22  ;;  %278 = vst.msk [vmem:[#allocation2 + $0xe2] sm:$0x3f] %vm263_vm3, %v248_v24 }
  0x29   : > { %279 = vst.msk [vmem:[#allocation2 + $0xf2] sm:$0xff] %vm177_vm0, %v249_v25  ;;  %281 = vst.msk [vmem:[#allocation2 + $0x10a] sm:$0xff] %vm177_vm0, %v251_v27 }
  0x2a   : > { %280 = vst.msk [vmem:[#allocation2 + $0xfa] sm:$0x3f] %vm263_vm3, %v250_v26  ;;  %282 = vst.msk [vmem:[#allocation2 + $0x112] sm:$0x3f] %vm263_vm3, %v252_v28 }
  0x2b   : > { %283 = vst.msk [vmem:[#allocation2 + $0x122] sm:$0xff] %vm177_vm0, %v253_v29  ;;  %285 = vst.msk [vmem:[#allocation2 + $0x13a] sm:$0xff] %vm177_vm0, %v255_v31 }
  0x2c   : > { %284 = vst.msk [vmem:[#allocation2 + $0x12a] sm:$0x3f] %vm263_vm3, %v254_v30  ;;  %286 = vst.msk [vmem:[#allocation2 + $0x142] sm:$0x3f] %vm263_vm3, %v256_v32 }
  0x2d   : > { %287 = vst.msk [vmem:[#allocation2 + $0x152] sm:$0xff] %vm177_vm0, %v257_v33  ;;  %289 = vst.msk [vmem:[#allocation2 + $0x16a] sm:$0xff] %vm177_vm0, %v259_v35 }
  0x2e   : > { %288 = vst.msk [vmem:[#allocation2 + $0x15a] sm:$0x3f] %vm263_vm3, %v258_v34  ;;  %290 = vst.msk [vmem:[#allocation2 + $0x172] sm:$0x3f] %vm263_vm3, %v260_v36 }
  0x2f LB: >> { %v4753_v37 = vld [vmem:[%s6592_s1 + $0x10] sm:$0xff]  ;;  %v4754_v38 = vld [vmem:[%s6592_s1 + $0x18] sm:$0xff]  ;;  %v315_v39 = vld [vmem:[%s6592_s1] sm:$0xff]  ;;  %s4752_s8 = smul.u32 48, %s5879_s26  ;;  %vm5883_vm5 = vmmov 0   ;;  %vm4504_vm6 = vcmask 1045504   ;;  %s5879_s26 = sphi %s6107_s26, %s309_s26  }
  0x30   : >> { %v5540_v40 = vpack.c.bf16 %v4754_v38, %v4753_v37  ;;  %v316_v41 = vld [vmem:[%s6592_s1 + $0x8] sm:$0xff]  ;;  %v4759_v43 = vld [vmem:[%s6592_s1 + $0x20] sm:$0xff]  ;;  %v4763_v52 = vld [vmem:[%s6592_s1 + $0x30] sm:$0xff]  ;;  %vm5885_vm7 = vmmov 1   ;;  %vm4500_vm9 = vcmask 113664   ;;  %vm4654_vm10 = vcmask 260096  }
  0x31   : >> { %v5544_v42 = vpack.c.bf16 %v316_v41, %v315_v39  ;;  %v4760_v44 = vld [vmem:[%s6592_s1 + $0x28] sm:$0xff]  ;;  %s6131_s14 = scalar_lea.vmem [#allocation2], %s4752_s8  ;;  %v4764_v53 = vld [vmem:[%s6592_s1 + $0x38] sm:$0xff]  ;;  %v4767_v59 = vld [vmem:[%s6592_s1 + $0x40] sm:$0xff] }
  0x32   : >> { %5541 = vmatprep.subr.bf16.mxu0 %v5540_v40  ;;  %5641 = vmatprep.subr.bf16.mxu1 %v5540_v40  ;;  %v5548_v51 = vpack.c.bf16 %v4760_v44, %v4759_v43  ;;  %v5552_v58 = vpack.c.bf16 %v4764_v53, %v4763_v52  ;;  %v4768_v60 = vld [vmem:[%s6592_s1 + $0x48] sm:$0xff]  ;;  %v4775_v3 = vld [vmem:[%s6592_s1 + $0x50] sm:$0xff]  ;;  %v4776_v4 = vld [vmem:[%s6592_s1 + $0x58] sm:$0xff] }
  0x33   : >> { %5543 = vmatpush3.bf16.msra.mxu0 %v5540_v40  ;;  %5643 = vmatpush3.bf16.msra.mxu1 %v5540_v40  ;;  %v5556_v2 = vpack.c.bf16 %v4768_v60, %v4767_v59  ;;  %v5560_v11 = vpack.c.bf16 %v4776_v4, %v4775_v3  ;;  %v4781_v12 = vld [vmem:[%s6592_s1 + $0x60] sm:$0xff]  ;;  %v4782_v13 = vld [vmem:[%s6592_s1 + $0x68] sm:$0xff]  ;;  %v4787_v18 = vld [vmem:[%s6592_s1 + $0x70] sm:$0xff] }
  0x34   : >> { %5545 = vmatprep.subr.bf16.mxu0 %v5544_v42  ;;  %5645 = vmatprep.subr.bf16.mxu1 %v5544_v42  ;;  %v5564_v17 = vpack.c.bf16 %v4782_v13, %v4781_v12  ;;  %v4788_v19 = vld [vmem:[%s6592_s1 + $0x78] sm:$0xff]  ;;  %v4793_v23 = vld [vmem:[%s6592_s1 + $0x80] sm:$0xff]  ;;  %v4794_v24 = vld [vmem:[%s6592_s1 + $0x88] sm:$0xff] }
  0x35   : >> { %v317_v45 = vld [vmem:[%s6131_s14 + $0x1] sm:$0xff]  ;;  %v6135_v46 = vld [vmem:[%s6131_s14 + $0x19] sm:$0xff]  ;;  %v318_v47 = vld [vmem:[%s6131_s14 + $0x9] sm:$0x3f]  ;;  %v5568_v22 = vpack.c.bf16 %v4788_v19, %v4787_v18  ;;  %v5572_v27 = vpack.c.bf16 %v4794_v24, %v4793_v23 }
  0x36   : >> { %5180 = vmatprep.mubr.msk.f32.mxu0 %vm177_vm0, %v317_v45  ;;  %5355 = vmatprep.mubr.msk.f32.mxu1 %vm177_vm0, %v6135_v46  ;;  %v6142_v48 = vld [vmem:[%s6131_s14 + $0x21] sm:$0x3f]  ;;  %v6146_v50 = vld [vmem:[%s6131_s14 + $0x18] sm:$0xff]  ;;  %v314_v54 = vld [vmem:[%s6131_s14 + $0x8] sm:$0x3f] }
  0x37   : >> { %v313_v49 = vld [vmem:[%s6131_s14] sm:$0xff]  ;;  %5181 = vmatmul.mubr.msk.f32.vlgmr.msra.gmra.mrb[0].mxu0 %vm177_vm0, %v318_v47  ;;  %5356 = vmatmul.mubr.msk.f32.vlgmr.msra.gmra.mrb[0].mxu1 %vm177_vm0, %v6142_v48  ;;  %v485_v61 = vld [vmem:[%s6131_s14 + $0xa] sm:$0x3f]  ;;  %v6222_v16 = vld [vmem:[%s6131_s14 + $0x30] sm:$0xff] }
  0x38   : >> { %5547 = vmatpush3.bf16.msra.mxu0 %v5544_v42  ;;  %5647 = vmatpush3.bf16.msra.mxu1 %v5544_v42  ;;  %v4774_v55 = vld [vmem:[%s6131_s14 + $0x20] sm:$0x3f]  ;;  %v573_v5 = vld [vmem:[%s6131_s14 + $0xb] sm:$0x3f]  ;;  %v6238_v20 = vld [vmem:[%s6131_s14 + $0x38] sm:$0x3f] }
  0x39   : >> { %5187 = vmatprep.mubr.msk.f32.mxu0 %vm177_vm0, %v313_v49  ;;  %5362 = vmatprep.mubr.msk.f32.mxu1 %vm177_vm0, %v6146_v50  ;;  %v484_v56 = vld [vmem:[%s6131_s14 + $0x2] sm:$0xff]  ;;  %v6164_v57 = vld [vmem:[%s6131_s14 + $0x1a] sm:$0xff]  ;;  %v661_v14 = vld [vmem:[%s6131_s14 + $0xc] sm:$0x3f] }
  0x3a   : >> { %5549 = vmatprep.subr.bf16.mxu0 %v5548_v51  ;;  %5649 = vmatprep.subr.bf16.mxu1 %v5548_v51  ;;  %v6179_v62 = vld [vmem:[%s6131_s14 + $0x22] sm:$0x3f]  ;;  %v6241_v21 = vld [vmem:[%s6131_s14 + $0x31] sm:$0xff]  ;;  %v6257_v25 = vld [vmem:[%s6131_s14 + $0x39] sm:$0x3f] }
  0x3b   : >> { %v572_v63 = vld [vmem:[%s6131_s14 + $0x3] sm:$0xff]  ;;  %v6183_v1 = vld [vmem:[%s6131_s14 + $0x1b] sm:$0xff]  ;;  %v6260_v26 = vld [vmem:[%s6131_s14 + $0x32] sm:$0xff] }
  0x3c   : >> { %v6199_v6 = vld [vmem:[%s6131_s14 + $0x23] sm:$0x3f]  ;;  %v4799_v28 = vld [vmem:[%s6592_s1 + $0x90] sm:$0xff]  ;;  %v4800_v29 = vld [vmem:[%s6592_s1 + $0x98] sm:$0xff] }
  0x3d   : >> { %v660_v9 = vld [vmem:[%s6131_s14 + $0x4] sm:$0xff]  ;;  %v6203_v10 = vld [vmem:[%s6131_s14 + $0x1c] sm:$0xff]  ;;  %v6280_v31 = vld [vmem:[%s6131_s14 + $0x33] sm:$0xff]  ;;  %v5576_v32 = vpack.c.bf16 %v4800_v29, %v4799_v28 }
  0x3e   : >> { %v6219_v15 = vld [vmem:[%s6131_s14 + $0x24] sm:$0x3f]  ;;  %v6277_v30 = vld [vmem:[%s6131_s14 + $0x3a] sm:$0x3f]  ;;  %v4813_v38 = vld [vmem:[%s6592_s1 + $0xb0] sm:$0xff] }
  0x3f   : >> { %5188 = vmatmul.mubr.msk.f32.vlgmr.msra.gmra.mrb[0].mxu0 %vm177_vm0, %v314_v54  ;;  %5363 = vmatmul.mubr.msk.f32.vlgmr.msra.gmra.mrb[0].mxu1 %vm177_vm0, %v4774_v55  ;;  %v4807_v33 = vld [vmem:[%s6592_s1 + $0xa0] sm:$0xff]  ;;  %v4808_v34 = vld [vmem:[%s6592_s1 + $0xa8] sm:$0xff]  ;;  %v6300_v36 = vld [vmem:[%s6131_s14 + $0x34] sm:$0xff] }
  0x40   : >> { %5551 = vmatpush3.bf16.msra.mxu0 %v5548_v51  ;;  %5651 = vmatpush3.bf16.msra.mxu1 %v5548_v51  ;;  %v6297_v35 = vld [vmem:[%s6131_s14 + $0x3b] sm:$0x3f]  ;;  %v5580_v37 = vpack.c.bf16 %v4808_v34, %v4807_v33  ;;  %v6320_v41 = vld [vmem:[%s6131_s14 + $0x48] sm:$0xff]  ;;  %v6337_v45 = vld [vmem:[%s6131_s14 + $0x50] sm:$0x3f] }
  0x41   : >> { %5194 = vmatprep.mubr.msk.f32.mxu0 %vm177_vm0, %v484_v56  ;;  %5369 = vmatprep.mubr.msk.f32.mxu1 %vm177_vm0, %v6164_v57  ;;  %v4814_v39 = vld [vmem:[%s6592_s1 + $0xb8] sm:$0xff]  ;;  %v4819_v43 = vld [vmem:[%s6592_s1 + $0xc0] sm:$0xff]  ;;  %v4820_v44 = vld [vmem:[%s6592_s1 + $0xc8] sm:$0xff] }
  0x42   : >> { %5553 = vmatprep.subr.bf16.mxu0 %v5552_v58  ;;  %5653 = vmatprep.subr.bf16.mxu1 %v5552_v58  ;;  %v6317_v40 = vld [vmem:[%s6131_s14 + $0x3c] sm:$0x3f]  ;;  %v5584_v42 = vpack.c.bf16 %v4814_v39, %v4813_v38  ;;  %v5588_v47 = vpack.c.bf16 %v4820_v44, %v4819_v43  ;;  %v6360_v51 = vld [vmem:[%s6131_s14 + $0x4a] sm:$0xff]  ;;  %v6397_v60 = vld [vmem:[%s6131_s14 + $0x53] sm:$0x3f] }
  0x43   : >> { %v4826_v49 = vld [vmem:[%s6592_s1 + $0xd8] sm:$0xff]  ;;  %v4831_v53 = vld [vmem:[%s6592_s1 + $0xe0] sm:$0xff]  ;;  %v4832_v54 = vld [vmem:[%s6592_s1 + $0xe8] sm:$0xff] }
  0x44   : >> { %v6380_v56 = vld [vmem:[%s6131_s14 + $0x4b] sm:$0xff]  ;;  %v4840_v59 = vld [vmem:[%s6592_s1 + $0xf8] sm:$0xff]  ;;  %v6420_v3 = vld [vmem:[%s6131_s14 + $0x60] sm:$0xff] }
  0x45   : >> { %v4857_v12 = vld [vmem:[%s6592_s1 + $0x120] sm:$0xff]  ;;  %v4858_v13 = vld [vmem:[%s6592_s1 + $0x128] sm:$0xff]  ;;  %v4864_v18 = vld [vmem:[%s6592_s1 + $0x138] sm:$0xff] }
  0x46   : >> { %v6477_v19 = vld [vmem:[%s6131_s14 + $0x6a] sm:$0x3f]  ;;  %v4878_v28 = vld [vmem:[%s6592_s1 + $0x158] sm:$0xff]  ;;  %v4943_v34 = vld [vmem:[%s6131_s14 + $0x80] sm:$0x3f] }
  0x47   : >> { %5195 = vmatmul.mubr.msk.f32.vlgmr.msra.gmra.mrb[0].mxu0 %vm177_vm0, %v485_v61  ;;  %5370 = vmatmul.mubr.msk.f32.vlgmr.msra.gmra.mrb[0].mxu1 %vm177_vm0, %v6179_v62  ;;  %v6400_v61 = vld [vmem:[%s6131_s14 + $0x4c] sm:$0xff]  ;;  %v4890_v38 = vld [vmem:[%s6592_s1 + $0x178] sm:$0xff]  ;;  %v4947_v39 = vld [vmem:[%s6131_s14 + $0x81] sm:$0x3f] }
  0x48   : >> { %5555 = vmatpush3.bf16.msra.mxu0 %v5552_v58  ;;  %5655 = vmatpush3.bf16.msra.mxu1 %v5552_v58  ;;  %v4839_v58 = vld [vmem:[%s6592_s1 + $0xf0] sm:$0xff]  ;;  %v4872_v23 = vld [vmem:[%s6592_s1 + $0x148] sm:$0xff]  ;;  %v4951_v44 = vld [vmem:[%s6131_s14 + $0x82] sm:$0x3f] }
  0x49   : >> { %5201 = vmatprep.mubr.msk.f32.mxu0 %vm177_vm0, %v572_v63  ;;  %5376 = vmatprep.mubr.msk.f32.mxu1 %vm177_vm0, %v6183_v1  ;;  %v4845_v63 = vld [vmem:[%s6592_s1 + $0x100] sm:$0xff]  ;;  %v6497_v24 = vld [vmem:[%s6131_s14 + $0x6b] sm:$0x3f]  ;;  %vm5742_vm8 = vmpackc.low %vm4504_vm6, %vm5885_vm7 }
  0x4a   : >> { %5557 = vmatprep.subr.bf16.mxu0 %v5556_v2  ;;  %5657 = vmatprep.subr.bf16.mxu1 %v5556_v2  ;;  %v4894_v29 = vld [vmem:[%s6131_s14 + $0x6c] sm:$0x3f] }
  0x4b   : >> { %v4884_v33 = vld [vmem:[%s6592_s1 + $0x168] sm:$0xff] }
  0x4c   : >> { %v4896_v43 = vld [vmem:[%s6592_s1 + $0x188] sm:$0xff] }
  0x4f   : >> { %5202 = vmatmul.mubr.msk.f32.vlgmr.msra.gmra.mrb[0].mxu0 %vm177_vm0, %v573_v5  ;;  %5377 = vmatmul.mubr.msk.f32.vlgmr.msra.gmra.mrb[0].mxu1 %vm177_vm0, %v6199_v6  ;;  %v4851_v5 = vld [vmem:[%s6592_s1 + $0x110] sm:$0xff] }
  0x50   : >> { %5559 = vmatpush3.bf16.msra.mxu0 %v5556_v2  ;;  %5659 = vmatpush3.bf16.msra.mxu1 %v5556_v2  ;;  %v6417_v2 = vld [vmem:[%s6131_s14 + $0x54] sm:$0x3f] }
  0x51   : >> { %5208 = vmatprep.mubr.msk.f32.mxu0 %vm177_vm0, %v660_v9  ;;  %5383 = vmatprep.mubr.msk.f32.mxu1 %vm177_vm0, %v6203_v10  ;;  %v6437_v9 = vld [vmem:[%s6131_s14 + $0x68] sm:$0x3f] }
  0x52   : >> { %5561 = vmatprep.subr.bf16.mxu0 %v5560_v11  ;;  %5661 = vmatprep.subr.bf16.mxu1 %v5560_v11 }
  0x57   : >> { %5209 = vmatmul.mubr.msk.f32.vlgmr.msra.gmra.mrb[0].mxu0 %vm177_vm0, %v661_v14  ;;  %5384 = vmatmul.mubr.msk.f32.vlgmr.msra.gmra.mrb[0].mxu1 %vm177_vm0, %v6219_v15  ;;  %v6457_v14 = vld [vmem:[%s6131_s14 + $0x69] sm:$0x3f] }
  0x58   : >> { %5563 = vmatpush3.bf16.msra.mxu0 %v5560_v11  ;;  %5663 = vmatpush3.bf16.msra.mxu1 %v5560_v11 }
  0x59   : >> { %5215 = vmatprep.mubr.msk.f32.mxu0 %vm177_vm0, %v6146_v50  ;;  %5390 = vmatprep.mubr.msk.f32.mxu1 %vm177_vm0, %v6222_v16  ;;  %v6357_v50 = vld [vmem:[%s6131_s14 + $0x51] sm:$0x3f] }
  0x5a   : >> { %5565 = vmatprep.subr.bf16.mxu0 %v5564_v17  ;;  %5665 = vmatprep.subr.bf16.mxu1 %v5564_v17 }
  0x5f   : >> { %5216 = vmatmul.mubr.msk.f32.vlgmr.msra.gmra.mrb[0].mxu0 %vm177_vm0, %v4774_v55  ;;  %5391 = vmatmul.mubr.msk.f32.vlgmr.msra.gmra.mrb[0].mxu1 %vm177_vm0, %v6238_v20  ;;  %v6377_v55 = vld [vmem:[%s6131_s14 + $0x52] sm:$0x3f] }
  0x60   : >> { %5567 = vmatpush3.bf16.msra.mxu0 %v5564_v17  ;;  %5667 = vmatpush3.bf16.msra.mxu1 %v5564_v17  ;;  %v4863_v17 = vld [vmem:[%s6592_s1 + $0x130] sm:$0xff] }
  0x61   : >> { %5222 = vmatprep.mubr.msk.f32.mxu0 %vm177_vm0, %v6135_v46  ;;  %5397 = vmatprep.mubr.msk.f32.mxu1 %vm177_vm0, %v6241_v21  ;;  %v6340_v46 = vld [vmem:[%s6131_s14 + $0x49] sm:$0xff] }
  0x62   : >> { %5569 = vmatprep.subr.bf16.mxu0 %v5568_v22  ;;  %5669 = vmatprep.subr.bf16.mxu1 %v5568_v22 }
  0x67   : >> { %5223 = vmatmul.mubr.msk.f32.vlgmr.msra.gmra.mrb[0].mxu0 %vm177_vm0, %v6142_v48  ;;  %5398 = vmatmul.mubr.msk.f32.vlgmr.msra.gmra.mrb[0].mxu1 %vm177_vm0, %v6257_v25  ;;  %v4825_v48 = vld [vmem:[%s6592_s1 + $0xd0] sm:$0xff] }
  0x68   : >> { %5571 = vmatpush3.bf16.msra.mxu0 %v5568_v22  ;;  %5671 = vmatpush3.bf16.msra.mxu1 %v5568_v22  ;;  %v5592_v52 = vpack.c.bf16 %v4826_v49, %v4825_v48  ;;  %v4871_v22 = vld [vmem:[%s6592_s1 + $0x140] sm:$0xff] }
  0x69   : >> { %5229 = vmatprep.mubr.msk.f32.mxu0 %vm177_vm0, %v6164_v57  ;;  %5404 = vmatprep.mubr.msk.f32.mxu1 %vm177_vm0, %v6260_v26  ;;  %v5596_v57 = vpack.c.bf16 %v4832_v54, %v4831_v53  ;;  %v4958_v48 = vld [vmem:[%s6131_s14 + $0x7c] sm:$0xff]  ;;  %v4959_v49 = vld [vmem:[%s6131_s14 + $0x84] sm:$0x3f] }
  0x6a   : >> { %5573 = vmatprep.subr.bf16.mxu0 %v5572_v27  ;;  %5673 = vmatprep.subr.bf16.mxu1 %v5572_v27 }
  0x6f   : >> { %5230 = vmatmul.mubr.msk.f32.vlgmr.msra.gmra.mrb[0].mxu0 %vm177_vm0, %v6179_v62  ;;  %5405 = vmatmul.mubr.msk.f32.vlgmr.msra.gmra.mrb[0].mxu1 %vm177_vm0, %v6277_v30  ;;  %v5600_v62 = vpack.c.bf16 %v4840_v59, %v4839_v58 }
  0x70   : >> { %5575 = vmatpush3.bf16.msra.mxu0 %v5572_v27  ;;  %5675 = vmatpush3.bf16.msra.mxu1 %v5572_v27  ;;  %v4877_v27 = vld [vmem:[%s6592_s1 + $0x150] sm:$0xff] }
  0x71   : >> { %5236 = vmatprep.mubr.msk.f32.mxu0 %vm177_vm0, %v6183_v1  ;;  %5411 = vmatprep.mubr.msk.f32.mxu1 %vm177_vm0, %v6280_v31  ;;  %v4846_v1 = vld [vmem:[%s6592_s1 + $0x108] sm:$0xff] }
  0x72   : >> { %5577 = vmatprep.subr.bf16.mxu0 %v5576_v32  ;;  %5677 = vmatprep.subr.bf16.mxu1 %v5576_v32  ;;  %v5604_v4 = vpack.c.bf16 %v4846_v1, %v4845_v63 }
  0x77   : >> { %5237 = vmatmul.mubr.msk.f32.vlgmr.msra.gmra.mrb[0].mxu0 %vm177_vm0, %v6199_v6  ;;  %5412 = vmatmul.mubr.msk.f32.vlgmr.msra.gmra.mrb[0].mxu1 %vm177_vm0, %v6297_v35  ;;  %v4852_v6 = vld [vmem:[%s6592_s1 + $0x118] sm:$0xff] }
  0x78   : >> { %5579 = vmatpush3.bf16.msra.mxu0 %v5576_v32  ;;  %5679 = vmatpush3.bf16.msra.mxu1 %v5576_v32  ;;  %v5608_v11 = vpack.c.bf16 %v4852_v6, %v4851_v5  ;;  %v4883_v32 = vld [vmem:[%s6592_s1 + $0x160] sm:$0xff] }
  0x79   : >> { %5243 = vmatprep.mubr.msk.f32.mxu0 %vm177_vm0, %v6203_v10  ;;  %5418 = vmatprep.mubr.msk.f32.mxu1 %vm177_vm0, %v6300_v36  ;;  %v6440_v10 = vld [vmem:[%s6131_s14 + $0x61] sm:$0xff] }
  0x7a   : >> { %5581 = vmatprep.subr.bf16.mxu0 %v5580_v37  ;;  %5681 = vmatprep.subr.bf16.mxu1 %v5580_v37 }
  0x7f   : >> { %5244 = vmatmul.mubr.msk.f32.vlgmr.msra.gmra.mrb[0].mxu0 %vm177_vm0, %v6219_v15  ;;  %5419 = vmatmul.mubr.msk.f32.vlgmr.msra.gmra.mrb[0].mxu1 %vm177_vm0, %v6317_v40  ;;  %v6460_v15 = vld [vmem:[%s6131_s14 + $0x62] sm:$0xff] }
  0x80   : >> { %5583 = vmatpush3.bf16.msra.mxu0 %v5580_v37  ;;  %5683 = vmatpush3.bf16.msra.mxu1 %v5580_v37  ;;  %v4889_v37 = vld [vmem:[%s6592_s1 + $0x170] sm:$0xff] }
  0x81   : >> { %5250 = vmatprep.mubr.msk.f32.mxu0 %vm177_vm0, %v6222_v16  ;;  %5425 = vmatprep.mubr.msk.f32.mxu1 %vm177_vm0, %v6320_v41  ;;  %v5612_v16 = vpack.c.bf16 %v4858_v13, %v4857_v12 }
  0x82   : >> { %5585 = vmatprep.subr.bf16.mxu0 %v5584_v42  ;;  %5685 = vmatprep.subr.bf16.mxu1 %v5584_v42 }
  0x87   : >> { %5251 = vmatmul.mubr.msk.f32.vlgmr.msra.gmra.mrb[0].mxu0 %vm177_vm0, %v6238_v20  ;;  %5426 = vmatmul.mubr.msk.f32.vlgmr.msra.gmra.mrb[0].mxu1 %vm177_vm0, %v6337_v45  ;;  %v6480_v20 = vld [vmem:[%s6131_s14 + $0x63] sm:$0xff] }
  0x88   : >> { %5587 = vmatpush3.bf16.msra.mxu0 %v5584_v42  ;;  %5687 = vmatpush3.bf16.msra.mxu1 %v5584_v42  ;;  %v4895_v42 = vld [vmem:[%s6592_s1 + $0x180] sm:$0xff] }
  0x89   : >> { %5257 = vmatprep.mubr.msk.f32.mxu0 %vm177_vm0, %v6241_v21  ;;  %5432 = vmatprep.mubr.msk.f32.mxu1 %vm177_vm0, %v6340_v46  ;;  %v5616_v21 = vpack.c.bf16 %v4864_v18, %v4863_v17 }
  0x8a   : >> { %5589 = vmatprep.subr.bf16.mxu0 %v5588_v47  ;;  %5689 = vmatprep.subr.bf16.mxu1 %v5588_v47 }
  0x8f   : >> { %5258 = vmatmul.mubr.msk.f32.vlgmr.msra.gmra.mrb[0].mxu0 %vm177_vm0, %v6257_v25  ;;  %5433 = vmatmul.mubr.msk.f32.vlgmr.msra.gmra.mrb[0].mxu1 %vm177_vm0, %v6357_v50  ;;  %v6500_v25 = vld [vmem:[%s6131_s14 + $0x64] sm:$0xff] }
  0x90   : >> { %5591 = vmatpush3.bf16.msra.mxu0 %v5588_v47  ;;  %5691 = vmatpush3.bf16.msra.mxu1 %v5588_v47  ;;  %v4955_v47 = vld [vmem:[%s6131_s14 + $0x83] sm:$0x3f] }
  0x91   : >> { %5264 = vmatprep.mubr.msk.f32.mxu0 %vm177_vm0, %v6260_v26  ;;  %5439 = vmatprep.mubr.msk.f32.mxu1 %vm177_vm0, %v6360_v51  ;;  %v5620_v26 = vpack.c.bf16 %v4872_v23, %v4871_v22 }
  0x92   : >> { %5593 = vmatprep.subr.bf16.mxu0 %v5592_v52  ;;  %5693 = vmatprep.subr.bf16.mxu1 %v5592_v52 }
  0x97   : >> { %5265 = vmatmul.mubr.msk.f32.vlgmr.msra.gmra.mrb[0].mxu0 %vm177_vm0, %v6277_v30  ;;  %5440 = vmatmul.mubr.msk.f32.vlgmr.msra.gmra.mrb[0].mxu1 %vm177_vm0, %v6377_v55  ;;  %v4942_v30 = vld [vmem:[%s6131_s14 + $0x78] sm:$0xff] }
  0x98   : >> { %5595 = vmatpush3.bf16.msra.mxu0 %v5592_v52  ;;  %5695 = vmatpush3.bf16.msra.mxu1 %v5592_v52 }
  0x99   : >> { %5271 = vmatprep.mubr.msk.f32.mxu0 %vm177_vm0, %v6280_v31  ;;  %5446 = vmatprep.mubr.msk.f32.mxu1 %vm177_vm0, %v6380_v56  ;;  %v5624_v31 = vpack.c.bf16 %v4878_v28, %v4877_v27 }
  0x9a   : >> { %5597 = vmatprep.subr.bf16.mxu0 %v5596_v57  ;;  %5697 = vmatprep.subr.bf16.mxu1 %v5596_v57 }
  0x9f   : >> { %5272 = vmatmul.mubr.msk.f32.vlgmr.msra.gmra.mrb[0].mxu0 %vm177_vm0, %v6297_v35  ;;  %5447 = vmatmul.mubr.msk.f32.vlgmr.msra.gmra.mrb[0].mxu1 %vm177_vm0, %v6397_v60  ;;  %v4946_v35 = vld [vmem:[%s6131_s14 + $0x79] sm:$0xff] }
  0xa0   : >> { %5599 = vmatpush3.bf16.msra.mxu0 %v5596_v57  ;;  %5699 = vmatpush3.bf16.msra.mxu1 %v5596_v57 }
  0xa1   : >> { %5278 = vmatprep.mubr.msk.f32.mxu0 %vm177_vm0, %v6300_v36  ;;  %5453 = vmatprep.mubr.msk.f32.mxu1 %vm177_vm0, %v6400_v61  ;;  %v5628_v36 = vpack.c.bf16 %v4884_v33, %v4883_v32 }
  0xa2   : >> { %5601 = vmatprep.subr.bf16.mxu0 %v5600_v62  ;;  %5701 = vmatprep.subr.bf16.mxu1 %v5600_v62 }
  0xa7   : >> { %5279 = vmatmul.mubr.msk.f32.vlgmr.msra.gmra.mrb[0].mxu0 %vm177_vm0, %v6317_v40  ;;  %5454 = vmatmul.mubr.msk.f32.vlgmr.msra.gmra.mrb[0].mxu1 %vm177_vm0, %v6417_v2  ;;  %v4950_v40 = vld [vmem:[%s6131_s14 + $0x7a] sm:$0xff] }
  0xa8   : >> { %5603 = vmatpush3.bf16.msra.mxu0 %v5600_v62  ;;  %5703 = vmatpush3.bf16.msra.mxu1 %v5600_v62 }
  0xa9   : >> { %5285 = vmatprep.mubr.msk.f32.mxu0 %vm177_vm0, %v6320_v41  ;;  %5460 = vmatprep.mubr.msk.f32.mxu1 %vm177_vm0, %v6420_v3  ;;  %v5632_v41 = vpack.c.bf16 %v4890_v38, %v4889_v37 }
  0xaa   : >> { %5605 = vmatprep.subr.bf16.mxu0 %v5604_v4  ;;  %5705 = vmatprep.subr.bf16.mxu1 %v5604_v4 }
  0xaf   : >> { %5286 = vmatmul.mubr.msk.f32.vlgmr.msra.gmra.mrb[0].mxu0 %vm177_vm0, %v6337_v45  ;;  %5461 = vmatmul.mubr.msk.f32.vlgmr.msra.gmra.mrb[0].mxu1 %vm177_vm0, %v6437_v9  ;;  %v4954_v45 = vld [vmem:[%s6131_s14 + $0x7b] sm:$0xff]  ;;  %s4966_s14 = sshll.u32 %s5879_s26, 3  ;;  %s309_s26 = sadd.s32 1, %s5879_s26  }
  0xb0   : >> { %5607 = vmatpush3.bf16.msra.mxu0 %v5604_v4  ;;  %5707 = vmatpush3.bf16.msra.mxu1 %v5604_v4  ;;  %s4653_s9 = scalar_lea.vmem %s6041_s21, %s4966_s14  ;;  %p306_p5 = scmp.ge.s32.totalorder %s309_s26, 7  }
  0xb1   : >> { %5292 = vmatprep.mubr.msk.f32.mxu0 %vm177_vm0, %v6340_v46  ;;  %5467 = vmatprep.mubr.msk.f32.mxu1 %vm177_vm0, %v6440_v10  ;;  %v5636_v46 = vpack.c.bf16 %v4896_v43, %v4895_v42 }
  0xb2   : >> { %5609 = vmatprep.subr.bf16.mxu0 %v5608_v11  ;;  %5709 = vmatprep.subr.bf16.mxu1 %v5608_v11 }
  0xb7   : >> { %5293 = vmatmul.mubr.msk.f32.vlgmr.msra.gmra.mrb[0].mxu0 %vm177_vm0, %v6357_v50  ;;  %5468 = vmatmul.mubr.msk.f32.vlgmr.msra.gmra.mrb[0].mxu1 %vm177_vm0, %v6457_v14  ;;  %v5882_v50 = vmov 0.0|0.0  }
  0xb8   : >> { %5611 = vmatpush3.bf16.msra.mxu0 %v5608_v11  ;;  %5711 = vmatpush3.bf16.msra.mxu1 %v5608_v11 }
  0xb9   : >> { %5299 = vmatprep.mubr.msk.f32.mxu0 %vm177_vm0, %v6360_v51  ;;  %5474 = vmatprep.mubr.msk.f32.mxu1 %vm177_vm0, %v6460_v15  ;;  %v5884_v51 = vmov 0.0  }
  0xba   : >> { %5613 = vmatprep.subr.bf16.mxu0 %v5612_v16  ;;  %5713 = vmatprep.subr.bf16.mxu1 %v5612_v16 }
  0xbf   : >> { %5300 = vmatmul.mubr.msk.f32.vlgmr.msra.gmra.mrb[0].mxu0 %vm177_vm0, %v6377_v55  ;;  %5475 = vmatmul.mubr.msk.f32.vlgmr.msra.gmra.mrb[0].mxu1 %vm177_vm0, %v6477_v19 }
  0xc0   : >> { %5615 = vmatpush3.bf16.msra.mxu0 %v5612_v16  ;;  %5715 = vmatpush3.bf16.msra.mxu1 %v5612_v16 }
  0xc1   : >> { %5306 = vmatprep.mubr.msk.f32.mxu0 %vm177_vm0, %v6380_v56  ;;  %5481 = vmatprep.mubr.msk.f32.mxu1 %vm177_vm0, %v6480_v20 }
  0xc2   : >> { %5617 = vmatprep.subr.bf16.mxu0 %v5616_v21  ;;  %5717 = vmatprep.subr.bf16.mxu1 %v5616_v21 }
  0xc7   : >> { %5307 = vmatmul.mubr.msk.f32.vlgmr.msra.gmra.mrb[0].mxu0 %vm177_vm0, %v6397_v60  ;;  %5482 = vmatmul.mubr.msk.f32.vlgmr.msra.gmra.mrb[0].mxu1 %vm177_vm0, %v6497_v24 }
  0xc8   : >> { %5619 = vmatpush3.bf16.msra.mxu0 %v5616_v21  ;;  %5719 = vmatpush3.bf16.msra.mxu1 %v5616_v21 }
  0xc9   : >> { %5313 = vmatprep.mubr.msk.f32.mxu0 %vm177_vm0, %v6400_v61  ;;  %5488 = vmatprep.mubr.msk.f32.mxu1 %vm177_vm0, %v6500_v25 }
  0xca   : >> { %5621 = vmatprep.subr.bf16.mxu0 %v5620_v26  ;;  %5721 = vmatprep.subr.bf16.mxu1 %v5620_v26 }
  0xcf   : >> { %5314 = vmatmul.mubr.msk.f32.vlgmr.msra.gmra.mrb[0].mxu0 %vm177_vm0, %v6417_v2  ;;  %5489 = vmatmul.mubr.msk.f32.vlgmr.msra.gmra.mrb[0].mxu1 %vm177_vm0, %v4894_v29 }
  0xd0   : >> { %5623 = vmatpush3.bf16.msra.mxu0 %v5620_v26  ;;  %5723 = vmatpush3.bf16.msra.mxu1 %v5620_v26 }
  0xd1   : >> { %5320 = vmatprep.mubr.msk.f32.mxu0 %vm177_vm0, %v6420_v3  ;;  %5495 = vmatprep.mubr.msk.f32.mxu1 %vm177_vm0, %v4942_v30 }
  0xd2   : >> { %5625 = vmatprep.subr.bf16.mxu0 %v5624_v31  ;;  %5725 = vmatprep.subr.bf16.mxu1 %v5624_v31 }
  0xd7   : >> { %5321 = vmatmul.mubr.msk.f32.vlgmr.msra.gmra.mrb[0].mxu0 %vm177_vm0, %v6437_v9  ;;  %5496 = vmatmul.mubr.msk.f32.vlgmr.msra.gmra.mrb[0].mxu1 %vm177_vm0, %v4943_v34 }
  0xd8   : >> { %5627 = vmatpush3.bf16.msra.mxu0 %v5624_v31  ;;  %5727 = vmatpush3.bf16.msra.mxu1 %v5624_v31 }
  0xd9   : >> { %5327 = vmatprep.mubr.msk.f32.mxu0 %vm177_vm0, %v6440_v10  ;;  %5502 = vmatprep.mubr.msk.f32.mxu1 %vm177_vm0, %v4946_v35 }
  0xda   : >> { %5629 = vmatprep.subr.bf16.mxu0 %v5628_v36  ;;  %5729 = vmatprep.subr.bf16.mxu1 %v5628_v36 }
  0xdf   : >> { %5328 = vmatmul.mubr.msk.f32.vlgmr.msra.gmra.mrb[0].mxu0 %vm177_vm0, %v6457_v14  ;;  %5503 = vmatmul.mubr.msk.f32.vlgmr.msra.gmra.mrb[0].mxu1 %vm177_vm0, %v4947_v39 }
  0xe0   : >> { %5631 = vmatpush3.bf16.msra.mxu0 %v5628_v36  ;;  %5731 = vmatpush3.bf16.msra.mxu1 %v5628_v36 }
  0xe1   : >> { %5334 = vmatprep.mubr.msk.f32.mxu0 %vm177_vm0, %v6460_v15  ;;  %5509 = vmatprep.mubr.msk.f32.mxu1 %vm177_vm0, %v4950_v40 }
  0xe2   : >> { %5633 = vmatprep.subr.bf16.mxu0 %v5632_v41  ;;  %5733 = vmatprep.subr.bf16.mxu1 %v5632_v41 }
  0xe7   : >> { %5335 = vmatmul.mubr.msk.f32.vlgmr.msra.gmra.mrb[0].mxu0 %vm177_vm0, %v6477_v19  ;;  %5510 = vmatmul.mubr.msk.f32.vlgmr.msra.gmra.mrb[0].mxu1 %vm177_vm0, %v4951_v44 }
  0xe8   : >> { %5635 = vmatpush3.bf16.msra.mxu0 %v5632_v41  ;;  %5735 = vmatpush3.bf16.msra.mxu1 %v5632_v41 }
  0xe9   : >> { %5341 = vmatprep.mubr.msk.f32.mxu0 %vm177_vm0, %v6480_v20  ;;  %5516 = vmatprep.mubr.msk.f32.mxu1 %vm177_vm0, %v4954_v45 }
  0xea   : >> { %5637 = vmatprep.subr.bf16.mxu0 %v5636_v46  ;;  %5737 = vmatprep.subr.bf16.mxu1 %v5636_v46 }
  0xef   : >> { %5342 = vmatmul.mubr.msk.f32.vlgmr.msra.gmra.mrb[0].mxu0 %vm177_vm0, %v6497_v24  ;;  %5517 = vmatmul.mubr.msk.f32.vlgmr.msra.gmra.mrb[0].mxu1 %vm177_vm0, %v4955_v47 }
  0xf0   : >> { %5639 = vmatpush3.bf16.msra.mxu0 %v5636_v46  ;;  %5739 = vmatpush3.bf16.msra.mxu1 %v5636_v46 }
  0xf1   : >> { %5348 = vmatprep.mubr.msk.f32.mxu0 %vm177_vm0, %v6500_v25  ;;  %5523 = vmatprep.mubr.msk.f32.mxu1 %vm177_vm0, %v4958_v48 }
  0xf2   : >> { %5740 = vmatprep.subr.bf16.mxu0 %v5882_v50  ;;  %5744 = vmatprep.subr.bf16.mxu1 %v5882_v50 }
  0xf7   : >> { %5349 = vmatmul.mubr.msk.f32.vlgmr.msra.gmra.mrb[0].mxu0 %vm177_vm0, %v4894_v29  ;;  %5524 = vmatmul.mubr.msk.f32.vlgmr.msra.gmra.mrb[0].mxu1 %vm177_vm0, %v4959_v49 }
  0xf8   : >> { %5530 = vmatprep.mubr.msk.f32.mxu0 %vm5883_vm5, %v5884_v51  ;;  %5537 = vmatprep.mubr.msk.f32.mxu1 %vm5883_vm5, %v5884_v51 }
 0x1ca   : >> { %v5350_v52 = vpop.f32.mrb[0].mxu0  ;;  %v5525_v53 = vpop.f32.mrb[0].mxu1 }
 0x1cb   : >> { %v2527_v54 = vadd.f32 %v5350_v52, %v5917_v0  ;;  %v4495_v55 = vadd.f32 %v5525_v53, %v5917_v0  ;;  %v2509_v56 = vpop.f32.mrb[1].mxu0  ;;  %v4483_v57 = vpop.f32.mrb[1].mxu1 }
 0x1cc   : >> { %v2526_v58 = vadd.f32 %v5917_v0, %v2509_v56  ;;  %v4494_v59 = vadd.f32 %v5917_v0, %v4483_v57 }
 0x1cd   : >> { %v2529_v60 = vmax.f32 %v2527_v54, 0.0  ;;  %v4497_v61 = vmax.f32 %v4495_v55, 0.0 }
 0x1ce   : >> { %v2528_v62 = vmax.f32 %v2526_v58, 0.0  ;;  %v4496_v63 = vmax.f32 %v4494_v59, 0.0 }
 0x1cf   : >> { %v4499_v1 = vmax.f32 %v2529_v60, %v4497_v61 }
 0x1d0   : >> { %v4498_v2 = vmax.f32 %v2528_v62, %v4496_v63 }
 0x1d2   : >> { %v5741_v3 = vpack.c.bf16 %v4499_v1, %v4498_v2 }
 0x1d4   : >> { %5743 = vmatpush3.bf16.msk.msra.mxu0 %vm5742_vm8, %v5741_v3  ;;  %5747 = vmatpush3.bf16.msk.msra.mxu1 %vm5742_vm8, %v5741_v3 }
 0x1d7   : >> { %5531 = vmatmul.mubr.msk.f32.vlgmr.msra.gmra.mrb[2].mxu0 %vm4500_vm9, %v6036_v7  ;;  %5538 = vmatmul.mubr.msk.f32.vlgmr.msra.gmra.mrb[2].mxu1 %vm4500_vm9, %v6049_v8 }
 0x2a7   : > { %308 = sbr.rel (!%p306_p5) target bundleno = 47 (0x2f), region = 101 }
 0x2aa   : >> { %v4574_v4 = vpop.f32.mrb[2].mxu0  ;;  %v4647_v5 = vpop.f32.mrb[2].mxu1 }
 0x2ab   : >> { %v4651_v6 = vmax.f32 %v4574_v4, %v4647_v5  ;;  %v5532_v9 = vpop.f32.mrb[3].mxu0  ;;  %v5539_v10 = vpop.f32.mrb[3].mxu1 }
 0x2ad   : >> { %4655 = vst.msk [vmem:[%s4653_s9] sm:$0x7f] %vm4654_vm10, %v4651_v6 }
 0x2ae PF: > { %s13_s12 = sadd.s32 1, %s5875_s12  }
 0x2af   : > { %p10_p6 = scmp.ge.s32.totalorder %s13_s12, 4  }
 0x2b1   :  { %12 = sbr.rel (!%p10_p6) target bundleno = 1 (0x1), region = 112 }

</bundles_post_ra>
